<compile_context>
chip_gen: v6e
topology: v6e:2x2x1
jax: 0.10.0
libtpu: 0.0.40
codegen_flags: <defaults>
</compile_context>

<pallas_src>
import functools

import jax
import jax.numpy as jnp
from jax.experimental import pallas as pl
from jax.experimental.pallas import tpu as pltpu


def _round_up(x, m):
    return (x + m - 1) // m * m


def _nbytes(shape, itemsize=4):
    n = 1
    for d in shape:
        n *= d
    return n * itemsize


# ---------------------------------------------------------------------------
# Recurrent kernel: one grid step == one decode time step
# ---------------------------------------------------------------------------
def _decoder_step_kernel(
    # inputs
    feat_ref,      # (B, N, E)       encoder features (loop invariant)
    uhs_ref,       # (B, N, A)       precomputed U(features)  (loop invariant)
    emb_ref,       # (1, B, Em)      embedding for this time step
    h0_ref,        # (B, D)          precomputed init_h(mean(features))
    c0_ref,        # (B, D)          precomputed init_c(mean(features))
    ww_ref,        # (D, A)          attention W
    wb_ref,        # (1, A)
    aw_ref,        # (1, A)          attention A (row vector)
    ab_ref,        # (1, 1)
    wlstm_ref,     # (Em+E+D, 4D)    fused [W_ih_emb; W_ih_ctx; W_hh]
    blstm_ref,     # (1, 4D)         b_ih + b_hh
    # outputs
    h_out_ref,     # (1, B, D)       hidden state for this step (vocab head applied later)
    alphas_ref,    # (1, B, N_pad)   attention weights (lane-dense padded)
    # scratch
    h_sc,          # (B, D) f32
    c_sc,          # (B, D) f32
    x_sc,          # (B, Em+E+D) f32 staging buffer for the fused LSTM input
    *,
    use_mxu_context,
):
    s = pl.program_id(0)
    feats = feat_ref[...]                                   # (B, N, E)
    B, N, E = feats.shape
    Em = emb_ref.shape[2]
    D = h_sc.shape[1]
    N_pad = alphas_ref.shape[2]

    # Seed the recurrent state on the first step (init state precomputed outside).
    @pl.when(s == 0)
    def _():
        h_sc[...] = h0_ref[...]
        c_sc[...] = c0_ref[...]

    h = h_sc[...]                                           # (B, D)
    c = c_sc[...]                                           # (B, D)

    # ---------------- Attention (key projection hoisted) ----------------
    w_ah = jnp.dot(h, ww_ref[...], preferred_element_type=jnp.float32) + wb_ref[...]
    combined = jnp.tanh(uhs_ref[...] + w_ah[:, None, :])    # (B, N, A)
    scores = jnp.sum(combined * aw_ref[...][None], axis=-1) + ab_ref[...]   # (B, N)
    scores = scores - jnp.max(scores, axis=1, keepdims=True)
    e = jnp.exp(scores)
    denom = jnp.sum(e, axis=1, keepdims=True)
    alpha = e * pl.reciprocal(denom, approx=True)           # (B, N)

    if use_mxu_context:
        # (B,1,N) @ (B,N,E) -> (B,1,E): batched matmul on the MXU.
        context = jnp.einsum(
            "bqn,bne->bqe", alpha[:, None, :], feats,
            preferred_element_type=jnp.float32)[:, 0, :]
    else:
        context = jnp.sum(feats * alpha[:, :, None], axis=1)  # (B, E)

    # ---------------- LSTMCell (single fused matmul) ----------------
    x_sc[:, 0:Em] = emb_ref[0]
    x_sc[:, Em:Em + E] = context
    x_sc[:, Em + E:Em + E + D] = h
    gates = (
        jnp.dot(x_sc[...], wlstm_ref[...], preferred_element_type=jnp.float32)
        + blstm_ref[...]
    )                                                        # (B, 4D)
    i_g = jax.nn.sigmoid(gates[:, 0:D])
    f_g = jax.nn.sigmoid(gates[:, D:2 * D])
    g_g = jnp.tanh(gates[:, 2 * D:3 * D])
    o_g = jax.nn.sigmoid(gates[:, 3 * D:4 * D])
    c_new = f_g * c + i_g * g_g
    h_new = o_g * jnp.tanh(c_new)
    h_sc[...] = h_new
    c_sc[...] = c_new

    # ---------------- Emit h (vocab projection done outside) & alpha ----------------
    h_out_ref[...] = h_new[None].astype(h_out_ref.dtype)
    if N_pad > N:
        alpha = jnp.concatenate(
            [alpha, jnp.zeros((B, N_pad - N), alpha.dtype)], axis=1)
    alphas_ref[...] = alpha[None].astype(alphas_ref.dtype)


# ---------------------------------------------------------------------------
# Vocab projection: one big batched matmul over the whole sequence
# ---------------------------------------------------------------------------
def _proj_kernel(h_ref, w_ref, b_ref, o_ref):
    o_ref[...] = (
        jnp.dot(h_ref[...], w_ref[...], preferred_element_type=jnp.float32)
        + b_ref[...]
    ).astype(o_ref.dtype)


def _vocab_projection(h_flat, fw, fb):
    M, D = h_flat.shape
    V = fw.shape[1]
    TM, TN = 128, 128
    M_pad = _round_up(M, TM)
    V_pad = _round_up(V, TN)
    h_p = jnp.pad(h_flat, ((0, M_pad - M), (0, 0)))
    fw_p = jnp.pad(fw, ((0, 0), (0, V_pad - V)))
    fb_p = jnp.pad(fb, ((0, 0), (0, V_pad - V)))

    out = pl.pallas_call(
        _proj_kernel,
        out_shape=jax.ShapeDtypeStruct((M_pad, V_pad), jnp.float32),
        grid_spec=pltpu.PrefetchScalarGridSpec(
            num_scalar_prefetch=0,
            grid=(M_pad // TM, V_pad // TN),
            in_specs=[
                pl.BlockSpec((TM, D), lambda i, j: (i, 0)),
                pl.BlockSpec((D, TN), lambda i, j: (0, j)),
                pl.BlockSpec((1, TN), lambda i, j: (0, j)),
            ],
            out_specs=pl.BlockSpec((TM, TN), lambda i, j: (i, j)),
        ),
        compiler_params=pltpu.CompilerParams(
            dimension_semantics=("parallel", "parallel"),   # both v7x TCs can help here
        ),
    )(h_p, fw_p, fb_p)
    return out[:M, :V]


# ---------------------------------------------------------------------------
# Wrapper
# ---------------------------------------------------------------------------
@functools.partial(jax.jit, static_argnames=("optimized",))
def decoder_rnn_forward(features, captions, params, *, optimized=True):
    """Pallas implementation of DecoderRNN.forward (eval mode).

    features: (B, N, E_enc) f32, captions: (B, T) int32
    returns (preds (B, T-1, V), alphas (B, T-1, N))
    """
    B, N, E = features.shape
    T = captions.shape[1]
    seq_len = T - 1
    Em = params["emb_table"].shape[1]
    D = params["Ww"].shape[0]
    A = params["Uw"].shape[1]
    V = params["fw"].shape[1]

    B_pad = _round_up(max(B, 1), 8)                    # sublane-friendly batch
    N_pad = _round_up(N, 128) if optimized else N      # lane-dense alphas output

    # ---- once-per-sequence glue (plain XLA) ----
    pad_b = B_pad - B
    feats_p = jnp.pad(features, ((0, pad_b), (0, 0), (0, 0)))
    embeds = jnp.take(params["emb_table"], captions, axis=0)        # (B, T, Em)
    embeds = jnp.pad(embeds, ((0, pad_b), (0, 0), (0, 0)))
    embeds_tm = jnp.transpose(embeds[:, :seq_len], (1, 0, 2))       # (seq_len, B_pad, Em)

    # Hoisted attention key projection (loop invariant).
    u_hs = jnp.einsum("bne,ea->bna", feats_p, params["Uw"]) + params["Ub"]
    # Precomputed initial hidden state.
    mean_f = feats_p.mean(axis=1)
    h0 = mean_f @ params["ihw"] + params["ihb"]
    c0 = mean_f @ params["icw"] + params["icb"]
    # Fused LSTM input weight [emb; context; h] -> gates.
    w_lstm = jnp.concatenate(
        [params["wih_e"], params["wih_c"], params["whh"]], axis=0)  # (Em+E+D, 4D)
    X = Em + E + D

    # ---- BlockSpecs ----
    def _const_spec(shape):
        nd = len(shape)
        imap = lambda s, _nd=nd: (0,) * _nd
        if optimized:
            # Loop-invariant operand: single VMEM buffer (no pointless double buffering).
            return pl.BlockSpec(shape, imap, pipeline_mode=pl.Buffered(1))
        return pl.BlockSpec(shape, imap)

    in_specs = [
        _const_spec((B_pad, N, E)),                      # features
        _const_spec((B_pad, N, A)),                      # u_hs
        pl.BlockSpec((1, B_pad, Em), lambda s: (s, 0, 0)),  # per-step embedding (dbl-buf)
        _const_spec((B_pad, D)), _const_spec((B_pad, D)),   # h0, c0
        _const_spec((D, A)), _const_spec((1, A)),           # W
        _const_spec((1, A)), _const_spec((1, 1)),           # A
        _const_spec((X, 4 * D)), _const_spec((1, 4 * D)),   # fused LSTM weight / bias
    ]
    out_specs = [
        pl.BlockSpec((1, B_pad, D), lambda s: (s, 0, 0)),      # h per step
        pl.BlockSpec((1, B_pad, N_pad), lambda s: (s, 0, 0)),  # alpha per step
    ]

    # ---- explicit VMEM budget: resident set (conservatively x2 buffered) + headroom ----
    resident = 0
    for shp in [(B_pad, N, E), (B_pad, N, A), (B_pad, D), (B_pad, D),
                (D, A), (1, A), (1, A), (1, 1), (X, 4 * D), (1, 4 * D)]:
        resident += 2 * _nbytes(shp)
    resident += 2 * _nbytes((1, B_pad, Em))                              # emb blocks
    resident += 2 * (_nbytes((1, B_pad, D)) + _nbytes((1, B_pad, N_pad)))  # out blocks
    resident += 2 * _nbytes((B_pad, D)) + _nbytes((B_pad, X))            # scratch
    vmem_limit = int(min(resident + (8 << 20), 100 << 20))

    kernel = functools.partial(_decoder_step_kernel, use_mxu_context=optimized)

    h_seq, alphas_tm = pl.pallas_call(
        kernel,
        out_shape=(
            jax.ShapeDtypeStruct((seq_len, B_pad, D), jnp.float32),
            jax.ShapeDtypeStruct((seq_len, B_pad, N_pad), jnp.float32),
        ),
        grid_spec=pltpu.PrefetchScalarGridSpec(
            num_scalar_prefetch=0,
            grid=(seq_len,),
            in_specs=in_specs,
            out_specs=out_specs,
            scratch_shapes=[
                pltpu.VMEM((B_pad, D), jnp.float32),    # h carry
                pltpu.VMEM((B_pad, D), jnp.float32),    # c carry
                pltpu.VMEM((B_pad, X), jnp.float32),    # fused LSTM input staging
            ],
        ),
        compiler_params=pltpu.CompilerParams(
            dimension_semantics=("arbitrary",),          # sequential recurrence over time
            vmem_limit_bytes=vmem_limit,
        ),
    )(
        feats_p, u_hs, embeds_tm, h0, c0,
        params["Ww"], params["Wb"], params["Aw"], params["Ab"],
        w_lstm, params["b_lstm"],
    )

    # ---- vocab projection over the whole sequence at once (full-MXU matmul) ----
    h_flat = h_seq.reshape(seq_len * B_pad, D)
    preds_flat = _vocab_projection(h_flat, params["fw"], params["fb"])   # (seq*B_pad, V)
    preds = preds_flat.reshape(seq_len, B_pad, V)[:, :B]
    preds = jnp.transpose(preds, (1, 0, 2))                              # (B, seq_len, V)
    alphas = jnp.transpose(alphas_tm[:, :B, :N], (1, 0, 2))              # (B, seq_len, N)
    return preds, alphas


# ---------------------------------------------------------------------------
# Pure-JAX reference (mirrors PyTorch semantics) for validation
# ---------------------------------------------------------------------------
def decoder_rnn_reference(features, captions, params):
    emb = jnp.take(params["emb_table"], captions, axis=0)
    mean_f = features.mean(axis=1)
    h = mean_f @ params["ihw"] + params["ihb"]
    c = mean_f @ params["icw"] + params["icb"]
    T = captions.shape[1]
    D = h.shape[1]
    preds, alphas = [], []
    for s in range(T - 1):
        u_hs = features @ params["Uw"] + params["Ub"]
        w_ah = h @ params["Ww"] + params["Wb"]
        comb = jnp.tanh(u_hs + w_ah[:, None, :])
        scores = jnp.sum(comb * params["Aw"][None], axis=-1) + params["Ab"]
        alpha = jax.nn.softmax(scores, axis=1)
        context = jnp.sum(features * alpha[:, :, None], axis=1)
        gates = (emb[:, s] @ params["wih_e"] + context @ params["wih_c"]
                 + h @ params["whh"] + params["b_lstm"])
        i_g = jax.nn.sigmoid(gates[:, 0:D])
        f_g = jax.nn.sigmoid(gates[:, D:2 * D])
        g_g = jnp.tanh(gates[:, 2 * D:3 * D])
        o_g = jax.nn.sigmoid(gates[:, 3 * D:4 * D])
        c = f_g * c + i_g * g_g
        h = o_g * jnp.tanh(c)
        preds.append(h @ params["fw"] + params["fb"])
        alphas.append(alpha)
    return jnp.stack(preds, axis=1), jnp.stack(alphas, axis=1)


# ---------------------------------------------------------------------------
# Deterministic parameter init (weights stored transposed: matmuls are (in, out)).
# ---------------------------------------------------------------------------
def init_params(key, *, vocab_size, embed_size, attention_dim, encoder_dim, decoder_dim):
    ks = jax.random.split(key, 16)
    norm = lambda k, shape, sc=0.1: (sc * jax.random.normal(k, shape)).astype(jnp.float32)
    D, A, E, Em, V = decoder_dim, attention_dim, encoder_dim, embed_size, vocab_size
    return {
        "emb_table": norm(ks[0], (V, Em)),
        # attention
        "Uw": norm(ks[1], (E, A)), "Ub": norm(ks[2], (1, A)),
        "Ww": norm(ks[3], (D, A)), "Wb": norm(ks[4], (1, A)),
        "Aw": norm(ks[5], (1, A)), "Ab": norm(ks[6], (1, 1)),
        # init_h / init_c
        "ihw": norm(ks[7], (E, D)), "ihb": norm(ks[8], (1, D)),
        "icw": norm(ks[9], (E, D)), "icb": norm(ks[10], (1, D)),
        # lstm cell (W_ih split into embedding/context halves; b_ih+b_hh fused)
        "wih_e": norm(ks[11], (Em, 4 * D)),
        "wih_c": norm(ks[12], (E, 4 * D)),
        "b_lstm": norm(ks[13], (1, 4 * D)),
        "whh": norm(ks[14], (D, 4 * D)),
        # fcn
        "fw": norm(ks[15], (D, V)),
        "fb": jnp.zeros((1, V), jnp.float32),
    }


if __name__ == "__main__":
    B, N = 2, 16                      # batch, num encoder features
    encoder_dim = 32
    decoder_dim = 32
    attention_dim = 32
    embed_size = 32
    vocab_size = 64
    T = 8                             # caption length -> seq_length = 7

    key = jax.random.PRNGKey(0)
    k_feat, k_cap, k_par = jax.random.split(key, 3)

    params = init_params(
        k_par, vocab_size=vocab_size, embed_size=embed_size,
        attention_dim=attention_dim, encoder_dim=encoder_dim, decoder_dim=decoder_dim,
    )
    features = jax.random.normal(k_feat, (B, N, encoder_dim), dtype=jnp.float32)
    captions = jax.random.randint(k_cap, (B, T), 0, vocab_size, dtype=jnp.int32)

    try:
        preds, alphas = decoder_rnn_forward(features, captions, params, optimized=True)
        preds = jax.block_until_ready(preds)
        alphas = jax.block_until_ready(alphas)
    except Exception:
        # Conservative fallback (previously-validated op set) if this JAX build rejects
        # Buffered(1) single-buffering / lane-padding concat.
        preds, alphas = decoder_rnn_forward(features, captions, params, optimized=False)
        preds = jax.block_until_ready(preds)
        alphas = jax.block_until_ready(alphas)

    preds_ref, alphas_ref = decoder_rnn_reference(features, captions, params)
    assert preds.shape == (B, T - 1, vocab_size)
    assert alphas.shape == (B, T - 1, N)
    assert jnp.allclose(preds, preds_ref, atol=2e-3, rtol=2e-3)
    assert jnp.allclose(alphas, alphas_ref, atol=2e-3, rtol=2e-3)

    print("KERNEL_OK")
</pallas_src>

<mosaic_0001>
module attributes {stable_mosaic.version = 11 : i64} {
  func.func @_decoder_step_kernel(%arg0: i32, %arg1: memref<8x16x32xf32, #tpu.memory_space<vmem>>, %arg2: memref<8x16x32xf32, #tpu.memory_space<vmem>>, %arg3: memref<1x8x32xf32, #tpu.memory_space<vmem>>, %arg4: memref<8x32xf32, #tpu.memory_space<vmem>>, %arg5: memref<8x32xf32, #tpu.memory_space<vmem>>, %arg6: memref<32x32xf32, #tpu.memory_space<vmem>>, %arg7: memref<1x32xf32, #tpu.memory_space<vmem>>, %arg8: memref<1x32xf32, #tpu.memory_space<vmem>>, %arg9: memref<1x1xf32, #tpu.memory_space<vmem>>, %arg10: memref<96x128xf32, #tpu.memory_space<vmem>>, %arg11: memref<1x128xf32, #tpu.memory_space<vmem>>, %arg12: memref<1x8x32xf32, #tpu.memory_space<vmem>>, %arg13: memref<1x8x128xf32, #tpu.memory_space<vmem>>, %arg14: memref<8x32xf32, #tpu.memory_space<vmem>>, %arg15: memref<8x32xf32, #tpu.memory_space<vmem>>, %arg16: memref<8x96xf32, #tpu.memory_space<vmem>>) attributes {dimension_semantics = [#tpu.dimension_semantics<arbitrary>], iteration_bounds = array<i64: 7>, scalar_prefetch = 0 : i64, scratch_operands = 3 : i64, tpu.core_type = #tpu.core_type<tc>, window_params = [{pipeline_mode = #tpu.pipeline_mode<synchronous>, transform_indices = @transform_0, window_bounds = array<i64: 8, 16, 32>}, {pipeline_mode = #tpu.pipeline_mode<synchronous>, transform_indices = @transform_1, window_bounds = array<i64: 8, 16, 32>}, {transform_indices = @transform_2, window_bounds = array<i64: 1, 8, 32>}, {pipeline_mode = #tpu.pipeline_mode<synchronous>, transform_indices = @transform_3, window_bounds = array<i64: 8, 32>}, {pipeline_mode = #tpu.pipeline_mode<synchronous>, transform_indices = @transform_4, window_bounds = array<i64: 8, 32>}, {pipeline_mode = #tpu.pipeline_mode<synchronous>, transform_indices = @transform_5, window_bounds = array<i64: 32, 32>}, {pipeline_mode = #tpu.pipeline_mode<synchronous>, transform_indices = @transform_6, window_bounds = array<i64: 1, 32>}, {pipeline_mode = #tpu.pipeline_mode<synchronous>, transform_indices = @transform_7, window_bounds = array<i64: 1, 32>}, {pipeline_mode = #tpu.pipeline_mode<synchronous>, transform_indices = @transform_8, window_bounds = array<i64: 1, 1>}, {pipeline_mode = #tpu.pipeline_mode<synchronous>, transform_indices = @transform_9, window_bounds = array<i64: 96, 128>}, {pipeline_mode = #tpu.pipeline_mode<synchronous>, transform_indices = @transform_10, window_bounds = array<i64: 1, 128>}, {transform_indices = @transform_11, window_bounds = array<i64: 1, 8, 32>}, {transform_indices = @transform_12, window_bounds = array<i64: 1, 8, 128>}]} {
    %c0 = arith.constant 0 : index
    %c0_0 = arith.constant 0 : index
    %c0_1 = arith.constant 0 : index
    %0 = vector.load %arg1[%c0, %c0_0, %c0_1] : memref<8x16x32xf32, #tpu.memory_space<vmem>>, vector<8x16x32xf32>
    %c0_i32 = arith.constant 0 : i32
    %1 = arith.cmpi eq, %arg0, %c0_i32 : i32
    %2 = arith.extui %1 : i1 to i32
    %c0_i32_2 = arith.constant 0 : i32
    %3 = arith.cmpi ne, %2, %c0_i32_2 : i32
    scf.if %3 {
      %c0_50 = arith.constant 0 : index
      %c0_51 = arith.constant 0 : index
      %81 = vector.load %arg4[%c0_50, %c0_51] : memref<8x32xf32, #tpu.memory_space<vmem>>, vector<8x32xf32>
      %c0_52 = arith.constant 0 : index
      %c0_53 = arith.constant 0 : index
      %82 = vector.load %arg14[%c0_52, %c0_53] : memref<8x32xf32, #tpu.memory_space<vmem>>, vector<8x32xf32>
      tpu.vector_store %arg14[%c0_52, %c0_53], %81 {strides = array<i32>} : memref<8x32xf32, #tpu.memory_space<vmem>>, vector<8x32xf32>,
      %c0_54 = arith.constant 0 : index
      %c0_55 = arith.constant 0 : index
      %83 = vector.load %arg5[%c0_54, %c0_55] : memref<8x32xf32, #tpu.memory_space<vmem>>, vector<8x32xf32>
      %c0_56 = arith.constant 0 : index
      %c0_57 = arith.constant 0 : index
      %84 = vector.load %arg15[%c0_56, %c0_57] : memref<8x32xf32, #tpu.memory_space<vmem>>, vector<8x32xf32>
      tpu.vector_store %arg15[%c0_56, %c0_57], %83 {strides = array<i32>} : memref<8x32xf32, #tpu.memory_space<vmem>>, vector<8x32xf32>,
    } else {
    }
    %c0_3 = arith.constant 0 : index
    %c0_4 = arith.constant 0 : index
    %4 = vector.load %arg14[%c0_3, %c0_4] : memref<8x32xf32, #tpu.memory_space<vmem>>, vector<8x32xf32>
    %c0_5 = arith.constant 0 : index
    %c0_6 = arith.constant 0 : index
    %5 = vector.load %arg15[%c0_5, %c0_6] : memref<8x32xf32, #tpu.memory_space<vmem>>, vector<8x32xf32>
    %c0_7 = arith.constant 0 : index
    %c0_8 = arith.constant 0 : index
    %6 = vector.load %arg6[%c0_7, %c0_8] : memref<32x32xf32, #tpu.memory_space<vmem>>, vector<32x32xf32>
    %cst = arith.constant dense<0.000000e+00> : vector<8x32xf32>
    %7 = tpu.matmul %4, %6, %cst {dimension_numbers = #tpu.dot_dimension_numbers<[1], [0], [0], [1], [0, 0, 1, 1], [], []>} : vector<8x32xf32>, vector<32x32xf32>, vector<8x32xf32> -> vector<8x32xf32>
    %c0_9 = arith.constant 0 : index
    %c0_10 = arith.constant 0 : index
    %8 = vector.load %arg7[%c0_9, %c0_10] : memref<1x32xf32, #tpu.memory_space<vmem>>, vector<1x32xf32>
    %9 = vector.broadcast %8 : vector<1x32xf32> to vector<8x32xf32>
    %10 = arith.addf %7, %9 : vector<8x32xf32>
    %c0_11 = arith.constant 0 : index
    %c0_12 = arith.constant 0 : index
    %c0_13 = arith.constant 0 : index
    %11 = vector.load %arg2[%c0_11, %c0_12, %c0_13] : memref<8x16x32xf32, #tpu.memory_space<vmem>>, vector<8x16x32xf32>
    %12 = vector.shape_cast %10 : vector<8x32xf32> to vector<8x1x32xf32>
    %13 = vector.broadcast %12 : vector<8x1x32xf32> to vector<8x16x32xf32>
    %14 = arith.addf %11, %13 : vector<8x16x32xf32>
    %15 = math.tanh %14 : vector<8x16x32xf32>
    %c0_14 = arith.constant 0 : index
    %c0_15 = arith.constant 0 : index
    %16 = vector.load %arg8[%c0_14, %c0_15] : memref<1x32xf32, #tpu.memory_space<vmem>>, vector<1x32xf32>
    %17 = vector.shape_cast %16 : vector<1x32xf32> to vector<1x1x32xf32>
    %18 = vector.broadcast %17 : vector<1x1x32xf32> to vector<8x16x32xf32>
    %19 = arith.mulf %15, %18 : vector<8x16x32xf32>
    %cst_16 = arith.constant dense<0.000000e+00> : vector<8x16xf32>
    %20 = vector.multi_reduction <add>, %19, %cst_16 [2] : vector<8x16x32xf32> to vector<8x16xf32>
    %c0_17 = arith.constant 0 : index
    %c0_18 = arith.constant 0 : index
    %21 = vector.load %arg9[%c0_17, %c0_18] : memref<1x1xf32, #tpu.memory_space<vmem>>, vector<1x1xf32>
    %22 = vector.broadcast %21 : vector<1x1xf32> to vector<8x16xf32>
    %23 = arith.addf %20, %22 : vector<8x16xf32>
    %cst_19 = arith.constant dense<0xFF800000> : vector<8xf32>
    %24 = vector.multi_reduction <maximumf>, %23, %cst_19 [1] : vector<8x16xf32> to vector<8xf32>
    %25 = vector.shape_cast %24 : vector<8xf32> to vector<8x1xf32>
    %26 = vector.broadcast %25 : vector<8x1xf32> to vector<8x16xf32>
    %27 = arith.subf %23, %26 : vector<8x16xf32>
    %28 = math.exp %27 : vector<8x16xf32>
    %cst_20 = arith.constant dense<0.000000e+00> : vector<8xf32>
    %29 = vector.multi_reduction <add>, %28, %cst_20 [1] : vector<8x16xf32> to vector<8xf32>
    %30 = vector.shape_cast %29 : vector<8xf32> to vector<8x1xf32>
    %31 = tpu.reciprocal %30 {approx = true} : vector<8x1xf32> -> vector<8x1xf32>
    %32 = vector.broadcast %31 : vector<8x1xf32> to vector<8x16xf32>
    %33 = arith.mulf %28, %32 : vector<8x16xf32>
    %34 = vector.shape_cast %33 : vector<8x16xf32> to vector<8x1x16xf32>
    "tpu.trace_start"() <{level = 10 : i32, message = "bqn,bne->bqe"}> : () -> ()
    %cst_21 = arith.constant dense<0.000000e+00> : vector<8x1x32xf32>
    %35 = tpu.matmul %34, %0, %cst_21 {dimension_numbers = #tpu.dot_dimension_numbers<[2], [1], [1], [2], [0, 0, 0, 1, 1, 2], [0], [0]>} : vector<8x1x16xf32>, vector<8x16x32xf32>, vector<8x1x32xf32> -> vector<8x1x32xf32>
    "tpu.trace_stop"() : () -> ()
    %36 = vector.shape_cast %35 : vector<8x1x32xf32> to vector<8x32xf32>
    %c0_22 = arith.constant 0 : index
    %c0_23 = arith.constant 0 : index
    %c0_24 = arith.constant 0 : index
    %37 = vector.load %arg3[%c0_22, %c0_23, %c0_24] : memref<1x8x32xf32, #tpu.memory_space<vmem>>, vector<1x8x32xf32>
    %38 = vector.shape_cast %37 : vector<1x8x32xf32> to vector<8x32xf32>
    %c0_25 = arith.constant 0 : index
    %c0_26 = arith.constant 0 : index
    %39 = vector.load %arg16[%c0_25, %c0_26] : memref<8x96xf32, #tpu.memory_space<vmem>>, vector<8x32xf32>
    tpu.vector_store %arg16[%c0_25, %c0_26], %38 {strides = array<i32>} : memref<8x96xf32, #tpu.memory_space<vmem>>, vector<8x32xf32>,
    %c0_27 = arith.constant 0 : index
    %c32 = arith.constant 32 : index
    %40 = vector.load %arg16[%c0_27, %c32] : memref<8x96xf32, #tpu.memory_space<vmem>>, vector<8x32xf32>
    tpu.vector_store %arg16[%c0_27, %c32], %36 {strides = array<i32>} : memref<8x96xf32, #tpu.memory_space<vmem>>, vector<8x32xf32>,
    %c0_28 = arith.constant 0 : index
    %c64 = arith.constant 64 : index
    %41 = vector.load %arg16[%c0_28, %c64] : memref<8x96xf32, #tpu.memory_space<vmem>>, vector<8x32xf32>
    tpu.vector_store %arg16[%c0_28, %c64], %4 {strides = array<i32>} : memref<8x96xf32, #tpu.memory_space<vmem>>, vector<8x32xf32>,
    %c0_29 = arith.constant 0 : index
    %c0_30 = arith.constant 0 : index
    %42 = vector.load %arg16[%c0_29, %c0_30] : memref<8x96xf32, #tpu.memory_space<vmem>>, vector<8x96xf32>
    %c0_31 = arith.constant 0 : index
    %c0_32 = arith.constant 0 : index
    %43 = vector.load %arg10[%c0_31, %c0_32] : memref<96x128xf32, #tpu.memory_space<vmem>>, vector<96x128xf32>
    %cst_33 = arith.constant dense<0.000000e+00> : vector<8x128xf32>
    %44 = tpu.matmul %42, %43, %cst_33 {dimension_numbers = #tpu.dot_dimension_numbers<[1], [0], [0], [1], [0, 0, 1, 1], [], []>} : vector<8x96xf32>, vector<96x128xf32>, vector<8x128xf32> -> vector<8x128xf32>
    %c0_34 = arith.constant 0 : index
    %c0_35 = arith.constant 0 : index
    %45 = vector.load %arg11[%c0_34, %c0_35] : memref<1x128xf32, #tpu.memory_space<vmem>>, vector<1x128xf32>
    %46 = vector.broadcast %45 : vector<1x128xf32> to vector<8x128xf32>
    %47 = arith.addf %44, %46 : vector<8x128xf32>
    %48 = vector.extract_strided_slice %47 {offsets = [0, 0], sizes = [8, 32], strides = [1, 1]} : vector<8x128xf32> to vector<8x32xf32>
    %49 = arith.negf %48 : vector<8x32xf32>
    %50 = math.exp %49 : vector<8x32xf32>
    %cst_36 = arith.constant 1.000000e+00 : f32
    %51 = vector.broadcast %cst_36 : f32 to vector<8x32xf32>
    %52 = arith.addf %51, %50 : vector<8x32xf32>
    %53 = arith.divf %51, %52 : vector<8x32xf32>
    %54 = vector.extract_strided_slice %47 {offsets = [0, 32], sizes = [8, 32], strides = [1, 1]} : vector<8x128xf32> to vector<8x32xf32>
    %55 = arith.negf %54 : vector<8x32xf32>
    %56 = math.exp %55 : vector<8x32xf32>
    %cst_37 = arith.constant 1.000000e+00 : f32
    %57 = vector.broadcast %cst_37 : f32 to vector<8x32xf32>
    %58 = arith.addf %57, %56 : vector<8x32xf32>
    %59 = arith.divf %57, %58 : vector<8x32xf32>
    %60 = vector.extract_strided_slice %47 {offsets = [0, 64], sizes = [8, 32], strides = [1, 1]} : vector<8x128xf32> to vector<8x32xf32>
    %61 = math.tanh %60 : vector<8x32xf32>
    %62 = vector.extract_strided_slice %47 {offsets = [0, 96], sizes = [8, 32], strides = [1, 1]} : vector<8x128xf32> to vector<8x32xf32>
    %63 = arith.negf %62 : vector<8x32xf32>
    %64 = math.exp %63 : vector<8x32xf32>
    %cst_38 = arith.constant 1.000000e+00 : f32
    %65 = vector.broadcast %cst_38 : f32 to vector<8x32xf32>
    %66 = arith.addf %65, %64 : vector<8x32xf32>
    %67 = arith.divf %65, %66 : vector<8x32xf32>
    %68 = arith.mulf %59, %5 : vector<8x32xf32>
    %69 = arith.mulf %53, %61 : vector<8x32xf32>
    %70 = arith.addf %68, %69 : vector<8x32xf32>
    %71 = math.tanh %70 : vector<8x32xf32>
    %72 = arith.mulf %67, %71 : vector<8x32xf32>
    %c0_39 = arith.constant 0 : index
    %c0_40 = arith.constant 0 : index
    %73 = vector.load %arg14[%c0_39, %c0_40] : memref<8x32xf32, #tpu.memory_space<vmem>>, vector<8x32xf32>
    tpu.vector_store %arg14[%c0_39, %c0_40], %72 {strides = array<i32>} : memref<8x32xf32, #tpu.memory_space<vmem>>, vector<8x32xf32>,
    %c0_41 = arith.constant 0 : index
    %c0_42 = arith.constant 0 : index
    %74 = vector.load %arg15[%c0_41, %c0_42] : memref<8x32xf32, #tpu.memory_space<vmem>>, vector<8x32xf32>
    tpu.vector_store %arg15[%c0_41, %c0_42], %70 {strides = array<i32>} : memref<8x32xf32, #tpu.memory_space<vmem>>, vector<8x32xf32>,
    %75 = vector.shape_cast %72 : vector<8x32xf32> to vector<1x8x32xf32>
    %c0_43 = arith.constant 0 : index
    %c0_44 = arith.constant 0 : index
    %c0_45 = arith.constant 0 : index
    %76 = vector.load %arg12[%c0_43, %c0_44, %c0_45] : memref<1x8x32xf32, #tpu.memory_space<vmem>>, vector<1x8x32xf32>
    tpu.vector_store %arg12[%c0_43, %c0_44, %c0_45], %75 {strides = array<i32>} : memref<1x8x32xf32, #tpu.memory_space<vmem>>, vector<1x8x32xf32>,
    %cst_46 = arith.constant 0.000000e+00 : f32
    %77 = vector.broadcast %cst_46 : f32 to vector<8x112xf32>
    %78 = tpu.concatenate %33, %77 in 1 : vector<8x16xf32>, vector<8x112xf32> -> vector<8x128xf32>
    %79 = vector.shape_cast %78 : vector<8x128xf32> to vector<1x8x128xf32>
    %c0_47 = arith.constant 0 : index
    %c0_48 = arith.constant 0 : index
    %c0_49 = arith.constant 0 : index
    %80 = vector.load %arg13[%c0_47, %c0_48, %c0_49] : memref<1x8x128xf32, #tpu.memory_space<vmem>>, vector<1x8x128xf32>
    tpu.vector_store %arg13[%c0_47, %c0_48, %c0_49], %79 {strides = array<i32>} : memref<1x8x128xf32, #tpu.memory_space<vmem>>, vector<1x8x128xf32>,
    return
  }
  func.func @transform_0(%arg0: i32) -> (i32, i32, i32) {
    %c0_i32 = arith.constant 0 : i32
    %c0_i32_0 = arith.constant 0 : i32
    %c0_i32_1 = arith.constant 0 : i32
    %c0_i32_2 = arith.constant 0 : i32
    return %c0_i32, %c0_i32_0, %c0_i32_1 : i32, i32, i32
  }
  func.func @transform_1(%arg0: i32) -> (i32, i32, i32) {
    %c0_i32 = arith.constant 0 : i32
    %c0_i32_0 = arith.constant 0 : i32
    %c0_i32_1 = arith.constant 0 : i32
    %c0_i32_2 = arith.constant 0 : i32
    return %c0_i32, %c0_i32_0, %c0_i32_1 : i32, i32, i32
  }
  func.func @transform_2(%arg0: i32) -> (i32, i32, i32) {
    %c0_i32 = arith.constant 0 : i32
    %c0_i32_0 = arith.constant 0 : i32
    %c0_i32_1 = arith.constant 0 : i32
    return %arg0, %c0_i32, %c0_i32_0 : i32, i32, i32
  }
  func.func @transform_3(%arg0: i32) -> (i32, i32) {
    %c0_i32 = arith.constant 0 : i32
    %c0_i32_0 = arith.constant 0 : i32
    %c0_i32_1 = arith.constant 0 : i32
    return %c0_i32, %c0_i32_0 : i32, i32
  }
  func.func @transform_4(%arg0: i32) -> (i32, i32) {
    %c0_i32 = arith.constant 0 : i32
    %c0_i32_0 = arith.constant 0 : i32
    %c0_i32_1 = arith.constant 0 : i32
    return %c0_i32, %c0_i32_0 : i32, i32
  }
  func.func @transform_5(%arg0: i32) -> (i32, i32) {
    %c0_i32 = arith.constant 0 : i32
    %c0_i32_0 = arith.constant 0 : i32
    %c0_i32_1 = arith.constant 0 : i32
    return %c0_i32, %c0_i32_0 : i32, i32
  }
  func.func @transform_6(%arg0: i32) -> (i32, i32) {
    %c0_i32 = arith.constant 0 : i32
    %c0_i32_0 = arith.constant 0 : i32
    %c0_i32_1 = arith.constant 0 : i32
    return %c0_i32, %c0_i32_0 : i32, i32
  }
  func.func @transform_7(%arg0: i32) -> (i32, i32) {
    %c0_i32 = arith.constant 0 : i32
    %c0_i32_0 = arith.constant 0 : i32
    %c0_i32_1 = arith.constant 0 : i32
    return %c0_i32, %c0_i32_0 : i32, i32
  }
  func.func @transform_8(%arg0: i32) -> (i32, i32) {
    %c0_i32 = arith.constant 0 : i32
    %c0_i32_0 = arith.constant 0 : i32
    %c0_i32_1 = arith.constant 0 : i32
    return %c0_i32, %c0_i32_0 : i32, i32
  }
  func.func @transform_9(%arg0: i32) -> (i32, i32) {
    %c0_i32 = arith.constant 0 : i32
    %c0_i32_0 = arith.constant 0 : i32
    %c0_i32_1 = arith.constant 0 : i32
    return %c0_i32, %c0_i32_0 : i32, i32
  }
  func.func @transform_10(%arg0: i32) -> (i32, i32) {
    %c0_i32 = arith.constant 0 : i32
    %c0_i32_0 = arith.constant 0 : i32
    %c0_i32_1 = arith.constant 0 : i32
    return %c0_i32, %c0_i32_0 : i32, i32
  }
  func.func @transform_11(%arg0: i32) -> (i32, i32, i32) {
    %c0_i32 = arith.constant 0 : i32
    %c0_i32_0 = arith.constant 0 : i32
    %c0_i32_1 = arith.constant 0 : i32
    return %arg0, %c0_i32, %c0_i32_0 : i32, i32, i32
  }
  func.func @transform_12(%arg0: i32) -> (i32, i32, i32) {
    %c0_i32 = arith.constant 0 : i32
    %c0_i32_0 = arith.constant 0 : i32
    %c0_i32_1 = arith.constant 0 : i32
    return %arg0, %c0_i32, %c0_i32_0 : i32, i32, i32
  }
}

module attributes {stable_mosaic.version = 11 : i64} {
  func.func @_proj_kernel(%arg0: i32, %arg1: i32, %arg2: memref<128x32xf32, #tpu.memory_space<vmem>>, %arg3: memref<32x128xf32, #tpu.memory_space<vmem>>, %arg4: memref<1x128xf32, #tpu.memory_space<vmem>>, %arg5: memref<128x128xf32, #tpu.memory_space<vmem>>) attributes {dimension_semantics = [#tpu.dimension_semantics<parallel>, #tpu.dimension_semantics<parallel>], iteration_bounds = array<i64: 1, 1>, scalar_prefetch = 0 : i64, scratch_operands = 0 : i64, tpu.core_type = #tpu.core_type<tc>, window_params = [{transform_indices = @transform_0, window_bounds = array<i64: 128, 32>}, {transform_indices = @transform_1, window_bounds = array<i64: 32, 128>}, {transform_indices = @transform_2, window_bounds = array<i64: 1, 128>}, {transform_indices = @transform_3, window_bounds = array<i64: 128, 128>}]} {
    %c0 = arith.constant 0 : index
    %c0_0 = arith.constant 0 : index
    %0 = vector.load %arg2[%c0, %c0_0] : memref<128x32xf32, #tpu.memory_space<vmem>>, vector<128x32xf32>
    %c0_1 = arith.constant 0 : index
    %c0_2 = arith.constant 0 : index
    %1 = vector.load %arg3[%c0_1, %c0_2] : memref<32x128xf32, #tpu.memory_space<vmem>>, vector<32x128xf32>
    %cst = arith.constant dense<0.000000e+00> : vector<128x128xf32>
    %2 = tpu.matmul %0, %1, %cst {dimension_numbers = #tpu.dot_dimension_numbers<[1], [0], [0], [1], [0, 0, 1, 1], [], []>} : vector<128x32xf32>, vector<32x128xf32>, vector<128x128xf32> -> vector<128x128xf32>
    %c0_3 = arith.constant 0 : index
    %c0_4 = arith.constant 0 : index
    %3 = vector.load %arg4[%c0_3, %c0_4] : memref<1x128xf32, #tpu.memory_space<vmem>>, vector<1x128xf32>
    %4 = vector.broadcast %3 : vector<1x128xf32> to vector<128x128xf32>
    %5 = arith.addf %2, %4 : vector<128x128xf32>
    %c0_5 = arith.constant 0 : index
    %c0_6 = arith.constant 0 : index
    %6 = vector.load %arg5[%c0_5, %c0_6] : memref<128x128xf32, #tpu.memory_space<vmem>>, vector<128x128xf32>
    tpu.vector_store %arg5[%c0_5, %c0_6], %5 {strides = array<i32>} : memref<128x128xf32, #tpu.memory_space<vmem>>, vector<128x128xf32>,
    return
  }
  func.func @transform_0(%arg0: i32, %arg1: i32) -> (i32, i32) {
    %c0_i32 = arith.constant 0 : i32
    %c0_i32_0 = arith.constant 0 : i32
    return %arg0, %c0_i32 : i32, i32
  }
  func.func @transform_1(%arg0: i32, %arg1: i32) -> (i32, i32) {
    %c0_i32 = arith.constant 0 : i32
    %c0_i32_0 = arith.constant 0 : i32
    return %c0_i32, %arg1 : i32, i32
  }
  func.func @transform_2(%arg0: i32, %arg1: i32) -> (i32, i32) {
    %c0_i32 = arith.constant 0 : i32
    %c0_i32_0 = arith.constant 0 : i32
    return %c0_i32, %arg1 : i32, i32
  }
  func.func @transform_3(%arg0: i32, %arg1: i32) -> (i32, i32) {
    %c0_i32 = arith.constant 0 : i32
    return %arg0, %arg1 : i32, i32
  }
}

module attributes {stable_mosaic.version = 11 : i64} {
  func.func @_decoder_step_kernel(%arg0: i32, %arg1: memref<8x16x32xf32, #tpu.memory_space<vmem>>, %arg2: memref<8x16x32xf32, #tpu.memory_space<vmem>>, %arg3: memref<1x8x32xf32, #tpu.memory_space<vmem>>, %arg4: memref<8x32xf32, #tpu.memory_space<vmem>>, %arg5: memref<8x32xf32, #tpu.memory_space<vmem>>, %arg6: memref<32x32xf32, #tpu.memory_space<vmem>>, %arg7: memref<1x32xf32, #tpu.memory_space<vmem>>, %arg8: memref<1x32xf32, #tpu.memory_space<vmem>>, %arg9: memref<1x1xf32, #tpu.memory_space<vmem>>, %arg10: memref<96x128xf32, #tpu.memory_space<vmem>>, %arg11: memref<1x128xf32, #tpu.memory_space<vmem>>, %arg12: memref<1x8x32xf32, #tpu.memory_space<vmem>>, %arg13: memref<1x8x16xf32, #tpu.memory_space<vmem>>, %arg14: memref<8x32xf32, #tpu.memory_space<vmem>>, %arg15: memref<8x32xf32, #tpu.memory_space<vmem>>, %arg16: memref<8x96xf32, #tpu.memory_space<vmem>>) attributes {dimension_semantics = [#tpu.dimension_semantics<arbitrary>], iteration_bounds = array<i64: 7>, scalar_prefetch = 0 : i64, scratch_operands = 3 : i64, tpu.core_type = #tpu.core_type<tc>, window_params = [{pipeline_mode = #tpu.pipeline_mode<synchronous>, transform_indices = @transform_0, window_bounds = array<i64: 8, 16, 32>}, {pipeline_mode = #tpu.pipeline_mode<synchronous>, transform_indices = @transform_1, window_bounds = array<i64: 8, 16, 32>}, {transform_indices = @transform_2, window_bounds = array<i64: 1, 8, 32>}, {pipeline_mode = #tpu.pipeline_mode<synchronous>, transform_indices = @transform_3, window_bounds = array<i64: 8, 32>}, {pipeline_mode = #tpu.pipeline_mode<synchronous>, transform_indices = @transform_4, window_bounds = array<i64: 8, 32>}, {pipeline_mode = #tpu.pipeline_mode<synchronous>, transform_indices = @transform_5, window_bounds = array<i64: 32, 32>}, {pipeline_mode = #tpu.pipeline_mode<synchronous>, transform_indices = @transform_6, window_bounds = array<i64: 1, 32>}, {pipeline_mode = #tpu.pipeline_mode<synchronous>, transform_indices = @transform_7, window_bounds = array<i64: 1, 32>}, {pipeline_mode = #tpu.pipeline_mode<synchronous>, transform_indices = @transform_8, window_bounds = array<i64: 1, 1>}, {pipeline_mode = #tpu.pipeline_mode<synchronous>, transform_indices = @transform_9, window_bounds = array<i64: 96, 128>}, {pipeline_mode = #tpu.pipeline_mode<synchronous>, transform_indices = @transform_10, window_bounds = array<i64: 1, 128>}, {transform_indices = @transform_11, window_bounds = array<i64: 1, 8, 32>}, {transform_indices = @transform_12, window_bounds = array<i64: 1, 8, 16>}]} {
    %c0 = arith.constant 0 : index
    %c0_0 = arith.constant 0 : index
    %c0_1 = arith.constant 0 : index
    %0 = vector.load %arg1[%c0, %c0_0, %c0_1] : memref<8x16x32xf32, #tpu.memory_space<vmem>>, vector<8x16x32xf32>
    %c0_i32 = arith.constant 0 : i32
    %1 = arith.cmpi eq, %arg0, %c0_i32 : i32
    %2 = arith.extui %1 : i1 to i32
    %c0_i32_2 = arith.constant 0 : i32
    %3 = arith.cmpi ne, %2, %c0_i32_2 : i32
    scf.if %3 {
      %c0_49 = arith.constant 0 : index
      %c0_50 = arith.constant 0 : index
      %80 = vector.load %arg4[%c0_49, %c0_50] : memref<8x32xf32, #tpu.memory_space<vmem>>, vector<8x32xf32>
      %c0_51 = arith.constant 0 : index
      %c0_52 = arith.constant 0 : index
      %81 = vector.load %arg14[%c0_51, %c0_52] : memref<8x32xf32, #tpu.memory_space<vmem>>, vector<8x32xf32>
      tpu.vector_store %arg14[%c0_51, %c0_52], %80 {strides = array<i32>} : memref<8x32xf32, #tpu.memory_space<vmem>>, vector<8x32xf32>,
      %c0_53 = arith.constant 0 : index
      %c0_54 = arith.constant 0 : index
      %82 = vector.load %arg5[%c0_53, %c0_54] : memref<8x32xf32, #tpu.memory_space<vmem>>, vector<8x32xf32>
      %c0_55 = arith.constant 0 : index
      %c0_56 = arith.constant 0 : index
      %83 = vector.load %arg15[%c0_55, %c0_56] : memref<8x32xf32, #tpu.memory_space<vmem>>, vector<8x32xf32>
      tpu.vector_store %arg15[%c0_55, %c0_56], %82 {strides = array<i32>} : memref<8x32xf32, #tpu.memory_space<vmem>>, vector<8x32xf32>,
    } else {
    }
    %c0_3 = arith.constant 0 : index
    %c0_4 = arith.constant 0 : index
    %4 = vector.load %arg14[%c0_3, %c0_4] : memref<8x32xf32, #tpu.memory_space<vmem>>, vector<8x32xf32>
    %c0_5 = arith.constant 0 : index
    %c0_6 = arith.constant 0 : index
    %5 = vector.load %arg15[%c0_5, %c0_6] : memref<8x32xf32, #tpu.memory_space<vmem>>, vector<8x32xf32>
    %c0_7 = arith.constant 0 : index
    %c0_8 = arith.constant 0 : index
    %6 = vector.load %arg6[%c0_7, %c0_8] : memref<32x32xf32, #tpu.memory_space<vmem>>, vector<32x32xf32>
    %cst = arith.constant dense<0.000000e+00> : vector<8x32xf32>
    %7 = tpu.matmul %4, %6, %cst {dimension_numbers = #tpu.dot_dimension_numbers<[1], [0], [0], [1], [0, 0, 1, 1], [], []>} : vector<8x32xf32>, vector<32x32xf32>, vector<8x32xf32> -> vector<8x32xf32>
    %c0_9 = arith.constant 0 : index
    %c0_10 = arith.constant 0 : index
    %8 = vector.load %arg7[%c0_9, %c0_10] : memref<1x32xf32, #tpu.memory_space<vmem>>, vector<1x32xf32>
    %9 = vector.broadcast %8 : vector<1x32xf32> to vector<8x32xf32>
    %10 = arith.addf %7, %9 : vector<8x32xf32>
    %c0_11 = arith.constant 0 : index
    %c0_12 = arith.constant 0 : index
    %c0_13 = arith.constant 0 : index
    %11 = vector.load %arg2[%c0_11, %c0_12, %c0_13] : memref<8x16x32xf32, #tpu.memory_space<vmem>>, vector<8x16x32xf32>
    %12 = vector.shape_cast %10 : vector<8x32xf32> to vector<8x1x32xf32>
    %13 = vector.broadcast %12 : vector<8x1x32xf32> to vector<8x16x32xf32>
    %14 = arith.addf %11, %13 : vector<8x16x32xf32>
    %15 = math.tanh %14 : vector<8x16x32xf32>
    %c0_14 = arith.constant 0 : index
    %c0_15 = arith.constant 0 : index
    %16 = vector.load %arg8[%c0_14, %c0_15] : memref<1x32xf32, #tpu.memory_space<vmem>>, vector<1x32xf32>
    %17 = vector.shape_cast %16 : vector<1x32xf32> to vector<1x1x32xf32>
    %18 = vector.broadcast %17 : vector<1x1x32xf32> to vector<8x16x32xf32>
    %19 = arith.mulf %15, %18 : vector<8x16x32xf32>
    %cst_16 = arith.constant dense<0.000000e+00> : vector<8x16xf32>
    %20 = vector.multi_reduction <add>, %19, %cst_16 [2] : vector<8x16x32xf32> to vector<8x16xf32>
    %c0_17 = arith.constant 0 : index
    %c0_18 = arith.constant 0 : index
    %21 = vector.load %arg9[%c0_17, %c0_18] : memref<1x1xf32, #tpu.memory_space<vmem>>, vector<1x1xf32>
    %22 = vector.broadcast %21 : vector<1x1xf32> to vector<8x16xf32>
    %23 = arith.addf %20, %22 : vector<8x16xf32>
    %cst_19 = arith.constant dense<0xFF800000> : vector<8xf32>
    %24 = vector.multi_reduction <maximumf>, %23, %cst_19 [1] : vector<8x16xf32> to vector<8xf32>
    %25 = vector.shape_cast %24 : vector<8xf32> to vector<8x1xf32>
    %26 = vector.broadcast %25 : vector<8x1xf32> to vector<8x16xf32>
    %27 = arith.subf %23, %26 : vector<8x16xf32>
    %28 = math.exp %27 : vector<8x16xf32>
    %cst_20 = arith.constant dense<0.000000e+00> : vector<8xf32>
    %29 = vector.multi_reduction <add>, %28, %cst_20 [1] : vector<8x16xf32> to vector<8xf32>
    %30 = vector.shape_cast %29 : vector<8xf32> to vector<8x1xf32>
    %31 = tpu.reciprocal %30 {approx = true} : vector<8x1xf32> -> vector<8x1xf32>
    %32 = vector.broadcast %31 : vector<8x1xf32> to vector<8x16xf32>
    %33 = arith.mulf %28, %32 : vector<8x16xf32>
    %34 = vector.shape_cast %33 : vector<8x16xf32> to vector<8x16x1xf32>
    %35 = vector.broadcast %34 : vector<8x16x1xf32> to vector<8x16x32xf32>
    %36 = arith.mulf %0, %35 : vector<8x16x32xf32>
    %cst_21 = arith.constant dense<0.000000e+00> : vector<8x32xf32>
    %37 = vector.multi_reduction <add>, %36, %cst_21 [1] : vector<8x16x32xf32> to vector<8x32xf32>
    %c0_22 = arith.constant 0 : index
    %c0_23 = arith.constant 0 : index
    %c0_24 = arith.constant 0 : index
    %38 = vector.load %arg3[%c0_22, %c0_23, %c0_24] : memref<1x8x32xf32, #tpu.memory_space<vmem>>, vector<1x8x32xf32>
    %39 = vector.shape_cast %38 : vector<1x8x32xf32> to vector<8x32xf32>
    %c0_25 = arith.constant 0 : index
    %c0_26 = arith.constant 0 : index
    %40 = vector.load %arg16[%c0_25, %c0_26] : memref<8x96xf32, #tpu.memory_space<vmem>>, vector<8x32xf32>
    tpu.vector_store %arg16[%c0_25, %c0_26], %39 {strides = array<i32>} : memref<8x96xf32, #tpu.memory_space<vmem>>, vector<8x32xf32>,
    %c0_27 = arith.constant 0 : index
    %c32 = arith.constant 32 : index
    %41 = vector.load %arg16[%c0_27, %c32] : memref<8x96xf32, #tpu.memory_space<vmem>>, vector<8x32xf32>
    tpu.vector_store %arg16[%c0_27, %c32], %37 {strides = array<i32>} : memref<8x96xf32, #tpu.memory_space<vmem>>, vector<8x32xf32>,
    %c0_28 = arith.constant 0 : index
    %c64 = arith.constant 64 : index
    %42 = vector.load %arg16[%c0_28, %c64] : memref<8x96xf32, #tpu.memory_space<vmem>>, vector<8x32xf32>
    tpu.vector_store %arg16[%c0_28, %c64], %4 {strides = array<i32>} : memref<8x96xf32, #tpu.memory_space<vmem>>, vector<8x32xf32>,
    %c0_29 = arith.constant 0 : index
    %c0_30 = arith.constant 0 : index
    %43 = vector.load %arg16[%c0_29, %c0_30] : memref<8x96xf32, #tpu.memory_space<vmem>>, vector<8x96xf32>
    %c0_31 = arith.constant 0 : index
    %c0_32 = arith.constant 0 : index
    %44 = vector.load %arg10[%c0_31, %c0_32] : memref<96x128xf32, #tpu.memory_space<vmem>>, vector<96x128xf32>
    %cst_33 = arith.constant dense<0.000000e+00> : vector<8x128xf32>
    %45 = tpu.matmul %43, %44, %cst_33 {dimension_numbers = #tpu.dot_dimension_numbers<[1], [0], [0], [1], [0, 0, 1, 1], [], []>} : vector<8x96xf32>, vector<96x128xf32>, vector<8x128xf32> -> vector<8x128xf32>
    %c0_34 = arith.constant 0 : index
    %c0_35 = arith.constant 0 : index
    %46 = vector.load %arg11[%c0_34, %c0_35] : memref<1x128xf32, #tpu.memory_space<vmem>>, vector<1x128xf32>
    %47 = vector.broadcast %46 : vector<1x128xf32> to vector<8x128xf32>
    %48 = arith.addf %45, %47 : vector<8x128xf32>
    %49 = vector.extract_strided_slice %48 {offsets = [0, 0], sizes = [8, 32], strides = [1, 1]} : vector<8x128xf32> to vector<8x32xf32>
    %50 = arith.negf %49 : vector<8x32xf32>
    %51 = math.exp %50 : vector<8x32xf32>
    %cst_36 = arith.constant 1.000000e+00 : f32
    %52 = vector.broadcast %cst_36 : f32 to vector<8x32xf32>
    %53 = arith.addf %52, %51 : vector<8x32xf32>
    %54 = arith.divf %52, %53 : vector<8x32xf32>
    %55 = vector.extract_strided_slice %48 {offsets = [0, 32], sizes = [8, 32], strides = [1, 1]} : vector<8x128xf32> to vector<8x32xf32>
    %56 = arith.negf %55 : vector<8x32xf32>
    %57 = math.exp %56 : vector<8x32xf32>
    %cst_37 = arith.constant 1.000000e+00 : f32
    %58 = vector.broadcast %cst_37 : f32 to vector<8x32xf32>
    %59 = arith.addf %58, %57 : vector<8x32xf32>
    %60 = arith.divf %58, %59 : vector<8x32xf32>
    %61 = vector.extract_strided_slice %48 {offsets = [0, 64], sizes = [8, 32], strides = [1, 1]} : vector<8x128xf32> to vector<8x32xf32>
    %62 = math.tanh %61 : vector<8x32xf32>
    %63 = vector.extract_strided_slice %48 {offsets = [0, 96], sizes = [8, 32], strides = [1, 1]} : vector<8x128xf32> to vector<8x32xf32>
    %64 = arith.negf %63 : vector<8x32xf32>
    %65 = math.exp %64 : vector<8x32xf32>
    %cst_38 = arith.constant 1.000000e+00 : f32
    %66 = vector.broadcast %cst_38 : f32 to vector<8x32xf32>
    %67 = arith.addf %66, %65 : vector<8x32xf32>
    %68 = arith.divf %66, %67 : vector<8x32xf32>
    %69 = arith.mulf %60, %5 : vector<8x32xf32>
    %70 = arith.mulf %54, %62 : vector<8x32xf32>
    %71 = arith.addf %69, %70 : vector<8x32xf32>
    %72 = math.tanh %71 : vector<8x32xf32>
    %73 = arith.mulf %68, %72 : vector<8x32xf32>
    %c0_39 = arith.constant 0 : index
    %c0_40 = arith.constant 0 : index
    %74 = vector.load %arg14[%c0_39, %c0_40] : memref<8x32xf32, #tpu.memory_space<vmem>>, vector<8x32xf32>
    tpu.vector_store %arg14[%c0_39, %c0_40], %73 {strides = array<i32>} : memref<8x32xf32, #tpu.memory_space<vmem>>, vector<8x32xf32>,
    %c0_41 = arith.constant 0 : index
    %c0_42 = arith.constant 0 : index
    %75 = vector.load %arg15[%c0_41, %c0_42] : memref<8x32xf32, #tpu.memory_space<vmem>>, vector<8x32xf32>
    tpu.vector_store %arg15[%c0_41, %c0_42], %71 {strides = array<i32>} : memref<8x32xf32, #tpu.memory_space<vmem>>, vector<8x32xf32>,
    %76 = vector.shape_cast %73 : vector<8x32xf32> to vector<1x8x32xf32>
    %c0_43 = arith.constant 0 : index
    %c0_44 = arith.constant 0 : index
    %c0_45 = arith.constant 0 : index
    %77 = vector.load %arg12[%c0_43, %c0_44, %c0_45] : memref<1x8x32xf32, #tpu.memory_space<vmem>>, vector<1x8x32xf32>
    tpu.vector_store %arg12[%c0_43, %c0_44, %c0_45], %76 {strides = array<i32>} : memref<1x8x32xf32, #tpu.memory_space<vmem>>, vector<1x8x32xf32>,
    %78 = vector.shape_cast %33 : vector<8x16xf32> to vector<1x8x16xf32>
    %c0_46 = arith.constant 0 : index
    %c0_47 = arith.constant 0 : index
    %c0_48 = arith.constant 0 : index
    %79 = vector.load %arg13[%c0_46, %c0_47, %c0_48] : memref<1x8x16xf32, #tpu.memory_space<vmem>>, vector<1x8x16xf32>
    tpu.vector_store %arg13[%c0_46, %c0_47, %c0_48], %78 {strides = array<i32>} : memref<1x8x16xf32, #tpu.memory_space<vmem>>, vector<1x8x16xf32>,
    return
  }
  func.func @transform_0(%arg0: i32) -> (i32, i32, i32) {
    %c0_i32 = arith.constant 0 : i32
    %c0_i32_0 = arith.constant 0 : i32
    %c0_i32_1 = arith.constant 0 : i32
    %c0_i32_2 = arith.constant 0 : i32
    return %c0_i32, %c0_i32_0, %c0_i32_1 : i32, i32, i32
  }
  func.func @transform_1(%arg0: i32) -> (i32, i32, i32) {
    %c0_i32 = arith.constant 0 : i32
    %c0_i32_0 = arith.constant 0 : i32
    %c0_i32_1 = arith.constant 0 : i32
    %c0_i32_2 = arith.constant 0 : i32
    return %c0_i32, %c0_i32_0, %c0_i32_1 : i32, i32, i32
  }
  func.func @transform_2(%arg0: i32) -> (i32, i32, i32) {
    %c0_i32 = arith.constant 0 : i32
    %c0_i32_0 = arith.constant 0 : i32
    %c0_i32_1 = arith.constant 0 : i32
    return %arg0, %c0_i32, %c0_i32_0 : i32, i32, i32
  }
  func.func @transform_3(%arg0: i32) -> (i32, i32) {
    %c0_i32 = arith.constant 0 : i32
    %c0_i32_0 = arith.constant 0 : i32
    %c0_i32_1 = arith.constant 0 : i32
    return %c0_i32, %c0_i32_0 : i32, i32
  }
  func.func @transform_4(%arg0: i32) -> (i32, i32) {
    %c0_i32 = arith.constant 0 : i32
    %c0_i32_0 = arith.constant 0 : i32
    %c0_i32_1 = arith.constant 0 : i32
    return %c0_i32, %c0_i32_0 : i32, i32
  }
  func.func @transform_5(%arg0: i32) -> (i32, i32) {
    %c0_i32 = arith.constant 0 : i32
    %c0_i32_0 = arith.constant 0 : i32
    %c0_i32_1 = arith.constant 0 : i32
    return %c0_i32, %c0_i32_0 : i32, i32
  }
  func.func @transform_6(%arg0: i32) -> (i32, i32) {
    %c0_i32 = arith.constant 0 : i32
    %c0_i32_0 = arith.constant 0 : i32
    %c0_i32_1 = arith.constant 0 : i32
    return %c0_i32, %c0_i32_0 : i32, i32
  }
  func.func @transform_7(%arg0: i32) -> (i32, i32) {
    %c0_i32 = arith.constant 0 : i32
    %c0_i32_0 = arith.constant 0 : i32
    %c0_i32_1 = arith.constant 0 : i32
    return %c0_i32, %c0_i32_0 : i32, i32
  }
  func.func @transform_8(%arg0: i32) -> (i32, i32) {
    %c0_i32 = arith.constant 0 : i32
    %c0_i32_0 = arith.constant 0 : i32
    %c0_i32_1 = arith.constant 0 : i32
    return %c0_i32, %c0_i32_0 : i32, i32
  }
  func.func @transform_9(%arg0: i32) -> (i32, i32) {
    %c0_i32 = arith.constant 0 : i32
    %c0_i32_0 = arith.constant 0 : i32
    %c0_i32_1 = arith.constant 0 : i32
    return %c0_i32, %c0_i32_0 : i32, i32
  }
  func.func @transform_10(%arg0: i32) -> (i32, i32) {
    %c0_i32 = arith.constant 0 : i32
    %c0_i32_0 = arith.constant 0 : i32
    %c0_i32_1 = arith.constant 0 : i32
    return %c0_i32, %c0_i32_0 : i32, i32
  }
  func.func @transform_11(%arg0: i32) -> (i32, i32, i32) {
    %c0_i32 = arith.constant 0 : i32
    %c0_i32_0 = arith.constant 0 : i32
    %c0_i32_1 = arith.constant 0 : i32
    return %arg0, %c0_i32, %c0_i32_0 : i32, i32, i32
  }
  func.func @transform_12(%arg0: i32) -> (i32, i32, i32) {
    %c0_i32 = arith.constant 0 : i32
    %c0_i32_0 = arith.constant 0 : i32
    %c0_i32_1 = arith.constant 0 : i32
    return %arg0, %c0_i32, %c0_i32_0 : i32, i32, i32
  }
}

module attributes {stable_mosaic.version = 11 : i64} {
  func.func @_proj_kernel(%arg0: i32, %arg1: i32, %arg2: memref<128x32xf32, #tpu.memory_space<vmem>>, %arg3: memref<32x128xf32, #tpu.memory_space<vmem>>, %arg4: memref<1x128xf32, #tpu.memory_space<vmem>>, %arg5: memref<128x128xf32, #tpu.memory_space<vmem>>) attributes {dimension_semantics = [#tpu.dimension_semantics<parallel>, #tpu.dimension_semantics<parallel>], iteration_bounds = array<i64: 1, 1>, scalar_prefetch = 0 : i64, scratch_operands = 0 : i64, tpu.core_type = #tpu.core_type<tc>, window_params = [{transform_indices = @transform_0, window_bounds = array<i64: 128, 32>}, {transform_indices = @transform_1, window_bounds = array<i64: 32, 128>}, {transform_indices = @transform_2, window_bounds = array<i64: 1, 128>}, {transform_indices = @transform_3, window_bounds = array<i64: 128, 128>}]} {
    %c0 = arith.constant 0 : index
    %c0_0 = arith.constant 0 : index
    %0 = vector.load %arg2[%c0, %c0_0] : memref<128x32xf32, #tpu.memory_space<vmem>>, vector<128x32xf32>
    %c0_1 = arith.constant 0 : index
    %c0_2 = arith.constant 0 : index
    %1 = vector.load %arg3[%c0_1, %c0_2] : memref<32x128xf32, #tpu.memory_space<vmem>>, vector<32x128xf32>
    %cst = arith.constant dense<0.000000e+00> : vector<128x128xf32>
    %2 = tpu.matmul %0, %1, %cst {dimension_numbers = #tpu.dot_dimension_numbers<[1], [0], [0], [1], [0, 0, 1, 1], [], []>} : vector<128x32xf32>, vector<32x128xf32>, vector<128x128xf32> -> vector<128x128xf32>
    %c0_3 = arith.constant 0 : index
    %c0_4 = arith.constant 0 : index
    %3 = vector.load %arg4[%c0_3, %c0_4] : memref<1x128xf32, #tpu.memory_space<vmem>>, vector<1x128xf32>
    %4 = vector.broadcast %3 : vector<1x128xf32> to vector<128x128xf32>
    %5 = arith.addf %2, %4 : vector<128x128xf32>
    %c0_5 = arith.constant 0 : index
    %c0_6 = arith.constant 0 : index
    %6 = vector.load %arg5[%c0_5, %c0_6] : memref<128x128xf32, #tpu.memory_space<vmem>>, vector<128x128xf32>
    tpu.vector_store %arg5[%c0_5, %c0_6], %5 {strides = array<i32>} : memref<128x128xf32, #tpu.memory_space<vmem>>, vector<128x128xf32>,
    return
  }
  func.func @transform_0(%arg0: i32, %arg1: i32) -> (i32, i32) {
    %c0_i32 = arith.constant 0 : i32
    %c0_i32_0 = arith.constant 0 : i32
    return %arg0, %c0_i32 : i32, i32
  }
  func.func @transform_1(%arg0: i32, %arg1: i32) -> (i32, i32) {
    %c0_i32 = arith.constant 0 : i32
    %c0_i32_0 = arith.constant 0 : i32
    return %c0_i32, %arg1 : i32, i32
  }
  func.func @transform_2(%arg0: i32, %arg1: i32) -> (i32, i32) {
    %c0_i32 = arith.constant 0 : i32
    %c0_i32_0 = arith.constant 0 : i32
    return %c0_i32, %arg1 : i32, i32
  }
  func.func @transform_3(%arg0: i32, %arg1: i32) -> (i32, i32) {
    %c0_i32 = arith.constant 0 : i32
    return %arg0, %arg1 : i32, i32
  }
}

</mosaic_0001>

<bundles_post_ra>
// kernel: decoder_rnn_forward.3
= control target key start
LH: loop header
LB: loop body
LE: loop exit
PB: predicated region body
PF: predicated region fallthrough
CT: control target
= control target key end

     0   :  { %vm41_vm0 = vcmask 261120   ;;  %s479_s1 = inlined_call_operand.vmem [shape: f32[32,128], index: 1, kind: input, shape index: {}]   ;;  %s480_s0 = inlined_call_operand.vmem [shape: f32[128,32], index: 0, kind: input, shape index: {}]   ;;  %s481_s2 = inlined_call_operand.vmem [shape: f32[1,128], index: 2, kind: input, shape index: {}]   ;;  %s482_s3 = inlined_call_operand.vmem [shape: f32[128,128], index: 3, kind: output, shape index: {}]  }
   0x1   :  { %v33_v0 = vld [vmem:[%s479_s1 + $0x18] sm:$0xff]  ;;  %v32_v1 = vld [vmem:[%s479_s1 + $0x10] sm:$0xff]  ;;  %v31_v2 = vld [vmem:[%s479_s1 + $0x8] sm:$0xff] }
   0x2   :  { %292 = vmatprep.subr.mxu0 %v33_v0  ;;  %324 = vmatprep.subr.mxu1 %v33_v0  ;;  %v30_v3 = vld [vmem:[%s479_s1] sm:$0xff]  ;;  %v15_v6 = vld [vmem:[%s480_s0 + $0x8] sm:$0xff]  ;;  %v16_v8 = vld [vmem:[%s480_s0 + $0x10] sm:$0xff] }
   0x3   :  { %293 = vmatpush3.msra.mxu0 %v33_v0  ;;  %328 = vmatpush3.msra.mxu1 %v33_v0  ;;  %v14_v4 = vld [vmem:[%s480_s0] sm:$0xff]  ;;  %v23_v7 = vld [vmem:[%s480_s0 + $0x48] sm:$0xff]  ;;  %v24_v9 = vld [vmem:[%s480_s0 + $0x50] sm:$0xff] }
   0x4   :  { %294 = vmatprep.subr.mxu0 %v32_v1  ;;  %325 = vmatprep.subr.mxu1 %v32_v1  ;;  %v22_v5 = vld [vmem:[%s480_s0 + $0x40] sm:$0xff]  ;;  %v17_v10 = vld [vmem:[%s480_s0 + $0x18] sm:$0xff]  ;;  %v19_v14 = vld [vmem:[%s480_s0 + $0x28] sm:$0xff] }
   0x5   :  { %295 = vmatpush3.msra.mxu0 %v32_v1  ;;  %329 = vmatpush3.msra.mxu1 %v32_v1  ;;  %v25_v11 = vld [vmem:[%s480_s0 + $0x58] sm:$0xff]  ;;  %v18_v12 = vld [vmem:[%s480_s0 + $0x20] sm:$0xff]  ;;  %v27_v15 = vld [vmem:[%s480_s0 + $0x68] sm:$0xff] }
   0x6   :  { %296 = vmatprep.subr.mxu0 %v31_v2  ;;  %326 = vmatprep.subr.mxu1 %v31_v2  ;;  %v26_v13 = vld [vmem:[%s480_s0 + $0x60] sm:$0xff]  ;;  %v20_v16 = vld [vmem:[%s480_s0 + $0x30] sm:$0xff]  ;;  %v21_v18 = vld [vmem:[%s480_s0 + $0x38] sm:$0xff] }
   0x7   :  { %297 = vmatpush3.msra.mxu0 %v31_v2  ;;  %330 = vmatpush3.msra.mxu1 %v31_v2  ;;  %v28_v17 = vld [vmem:[%s480_s0 + $0x70] sm:$0xff]  ;;  %v29_v19 = vld [vmem:[%s480_s0 + $0x78] sm:$0xff]  ;;  %v255_v20 = vld [vmem:[%s481_s2] ss:$0 sm:$0xff] }
   0x8   :  { %298 = vmatprep.subr.mxu0 %v30_v3  ;;  %327 = vmatprep.subr.mxu1 %v30_v3 }
   0x9   :  { %299 = vmatpush3.msra.mxu0 %v30_v3  ;;  %331 = vmatpush3.msra.mxu1 %v30_v3 }
   0xa   :  { %300 = vmatprep.mubr.msk.f32.mxu0 %vm41_vm0, %v14_v4  ;;  %312 = vmatprep.mubr.msk.f32.mxu1 %vm41_vm0, %v22_v5 }
   0xb   :  { %301 = vmatmul.mubr.msk.f32.vlgmr.msra.gmra.mxu0 %vm41_vm0, %v15_v6  ;;  %313 = vmatmul.mubr.msk.f32.vlgmr.msra.gmra.mxu1 %vm41_vm0, %v23_v7 }
   0xc   :  { %303 = vmatprep.mubr.msk.f32.mxu0 %vm41_vm0, %v16_v8  ;;  %315 = vmatprep.mubr.msk.f32.mxu1 %vm41_vm0, %v24_v9 }
   0xf   :  { %304 = vmatmul.mubr.msk.f32.gmra.mxu0 %vm41_vm0, %v17_v10  ;;  %316 = vmatmul.mubr.msk.f32.gmra.mxu1 %vm41_vm0, %v25_v11 }
  0x10   :  { %306 = vmatprep.mubr.msk.f32.mxu0 %vm41_vm0, %v18_v12  ;;  %318 = vmatprep.mubr.msk.f32.mxu1 %vm41_vm0, %v26_v13 }
  0x13   :  { %307 = vmatmul.mubr.msk.f32.gmra.mxu0 %vm41_vm0, %v19_v14  ;;  %319 = vmatmul.mubr.msk.f32.gmra.mxu1 %vm41_vm0, %v27_v15 }
  0x14   :  { %309 = vmatprep.mubr.msk.f32.mxu0 %vm41_vm0, %v20_v16  ;;  %321 = vmatprep.mubr.msk.f32.mxu1 %vm41_vm0, %v28_v17 }
  0x17   :  { %310 = vmatmul.mubr.msk.f32.gmra.mxu0 %vm41_vm0, %v21_v18  ;;  %322 = vmatmul.mubr.msk.f32.gmra.mxu1 %vm41_vm0, %v29_v19 }
  0xcb   :  { %v302_v21 = vpop.f32.mrf.mxu0  ;;  %v314_v22 = vpop.f32.mrf.mxu1 }
  0xcc   :  { %v162_v23 = vadd.f32 %v302_v21, %v255_v20  ;;  %v202_v24 = vadd.f32 %v314_v22, %v255_v20 }
  0xcd   :  { %v156_v25 = vpop.f32.mrf.mxu0  ;;  %v196_v26 = vpop.f32.mrf.mxu1 }
  0xce   :  { %236 = vst [vmem:[%s482_s3 + $0x8] sm:$0xff] %v162_v23  ;;  %244 = vst [vmem:[%s482_s3 + $0x48] sm:$0xff] %v202_v24  ;;  %v157_v27 = vadd.f32 %v255_v20, %v156_v25  ;;  %v197_v28 = vadd.f32 %v255_v20, %v196_v26 }
  0xcf   :  { %v305_v29 = vpop.f32.mrf.mxu0  ;;  %v317_v30 = vpop.f32.mrf.mxu1 }
  0xd0   :  { %235 = vst [vmem:[%s482_s3] sm:$0xff] %v157_v27  ;;  %243 = vst [vmem:[%s482_s3 + $0x40] sm:$0xff] %v197_v28  ;;  %v172_v31 = vadd.f32 %v305_v29, %v255_v20  ;;  %v212_v32 = vadd.f32 %v317_v30, %v255_v20 }
  0xd1   :  { %v166_v33 = vpop.f32.mrf.mxu0  ;;  %v206_v34 = vpop.f32.mrf.mxu1 }
  0xd2   :  { %238 = vst [vmem:[%s482_s3 + $0x18] sm:$0xff] %v172_v31  ;;  %246 = vst [vmem:[%s482_s3 + $0x58] sm:$0xff] %v212_v32  ;;  %v167_v35 = vadd.f32 %v255_v20, %v166_v33  ;;  %v207_v36 = vadd.f32 %v255_v20, %v206_v34 }
  0xd3   :  { %v308_v37 = vpop.f32.mrf.mxu0  ;;  %v320_v38 = vpop.f32.mrf.mxu1 }
  0xd4   :  { %237 = vst [vmem:[%s482_s3 + $0x10] sm:$0xff] %v167_v35  ;;  %245 = vst [vmem:[%s482_s3 + $0x50] sm:$0xff] %v207_v36  ;;  %v182_v39 = vadd.f32 %v308_v37, %v255_v20  ;;  %v222_v40 = vadd.f32 %v320_v38, %v255_v20 }
  0xd5   :  { %v176_v41 = vpop.f32.mrf.mxu0  ;;  %v216_v42 = vpop.f32.mrf.mxu1 }
  0xd6   :  { %240 = vst [vmem:[%s482_s3 + $0x28] sm:$0xff] %v182_v39  ;;  %248 = vst [vmem:[%s482_s3 + $0x68] sm:$0xff] %v222_v40  ;;  %v177_v43 = vadd.f32 %v255_v20, %v176_v41  ;;  %v217_v44 = vadd.f32 %v255_v20, %v216_v42 }
  0xd7   :  { %v311_v45 = vpop.f32.mrf.mxu0  ;;  %v323_v46 = vpop.f32.mrf.mxu1 }
  0xd8   :  { %239 = vst [vmem:[%s482_s3 + $0x20] sm:$0xff] %v177_v43  ;;  %247 = vst [vmem:[%s482_s3 + $0x60] sm:$0xff] %v217_v44  ;;  %v192_v47 = vadd.f32 %v311_v45, %v255_v20  ;;  %v232_v48 = vadd.f32 %v323_v46, %v255_v20 }
  0xd9   :  { %v186_v49 = vpop.f32.mrf.mxu0  ;;  %v226_v50 = vpop.f32.mrf.mxu1 }
  0xda   :  { %242 = vst [vmem:[%s482_s3 + $0x38] sm:$0xff] %v192_v47  ;;  %250 = vst [vmem:[%s482_s3 + $0x78] sm:$0xff] %v232_v48  ;;  %v187_v51 = vadd.f32 %v255_v20, %v186_v49  ;;  %v227_v52 = vadd.f32 %v255_v20, %v226_v50 }
  0xdc   :  { %241 = vst [vmem:[%s482_s3 + $0x30] sm:$0xff] %v187_v51  ;;  %249 = vst [vmem:[%s482_s3 + $0x70] sm:$0xff] %v227_v52 }

// kernel: decoder_rnn_forward.2
= control target key start
LH: loop header
LB: loop body
LE: loop exit
PB: predicated region body
PF: predicated region fallthrough
CT: control target
= control target key end

     0   :  { %s2484_s23 = smov 0   ;;  %s3115_s0 = inlined_call_operand.vmem [shape: f32[8,16,32], index: 0, kind: input, shape index: {}]   ;;  %s3116_s1 = inlined_call_operand.vmem [shape: f32[8,16,32], index: 1, kind: input, shape index: {}]   ;;  %s3117_s2 = inlined_call_operand.vmem [shape: f32[7,8,32], index: 2, kind: input, shape index: {}]   ;;  %s3118_s3 = inlined_call_operand.vmem [shape: f32[8,32], index: 3, kind: input, shape index: {}]   ;;  %s3119_s4 = inlined_call_operand.vmem [shape: f32[8,32], index: 4, kind: input, shape index: {}]   ;;  %s3120_s5 = inlined_call_operand.vmem [shape: f32[32,32], index: 5, kind: input, shape index: {}]   ;;  %s3121_s6 = inlined_call_operand.vmem [shape: f32[1,32], index: 6, kind: input, shape index: {}]   ;;  %s3122_s7 = inlined_call_operand.vmem [shape: f32[1,32], index: 7, kind: input, shape index: {}]   ;;  %s3123_s8 = inlined_call_operand.<no memory space> [shape: f32[1,1], index: 8, kind: input, shape index: {}]   ;;  %s3124_s9 = inlined_call_operand.vmem [shape: f32[96,128], index: 9, kind: input, shape index: {}]   ;;  %s3125_s10 = inlined_call_operand.vmem [shape: f32[1,128], index: 10, kind: input, shape index: {}]   ;;  %s3126_s11 = inlined_call_operand.vmem [shape: f32[7,8,32], index: 11, kind: output, shape index: {0}]   ;;  %s3127_s12 = inlined_call_operand.vmem [shape: f32[7,8,128], index: 12, kind: output, shape index: {1}]  }
   0x1   :  { %v18_v0 = vstv %s3123_s8 }
   0x2   :  { %19 = vst [vmem:[#allocation5] sm:$0x1] %v18_v0 }
   0x3 LB: > { %s2147_s24 = sadd.s32 4294967295, %s2407_s23   ;;  %p2151_p0 = scmp.ge.s32.totalorder %s2407_s23, 1  ;;  %s2407_s23 = sphi %s2484_s23, %s25_s23  }
   0x4   : > { %p366_p1 = scmp.lt.s32.totalorder %s2407_s23, 8 }
   0x6   : > { %p367_p2 = pnand %p2151_p0, %p366_p1 }
   0x7   : > { %p410_p3 = scmp.lt.s32.totalorder (!%p367_p2), %s2147_s24, 6  ;;  %p2155_p4 = scmp.ne.s32.totalorder (!%p367_p2), %s2147_s24, 0 }
   0x8   : > { %370 = sbr.rel (%p367_p2) target bundleno = 2113 (0x841), region = 64 }
   0xd   : > { %v422_v1 = vld [vmem:[%s3115_s0] sm:$0xff]  ;;  %v423_v2 = vld [vmem:[%s3115_s0 + $0x8] sm:$0xff]  ;;  %v2501_v3 = vld [vmem:[%s3115_s0 + $0x10] sm:$0xff]  ;;  %s411_s18 = scalar_select %p410_p3, %s2147_s24, 6 }
   0xe   : > { %v2506_v4 = vld [vmem:[%s3115_s0 + $0x18] sm:$0xff]  ;;  %v2511_v5 = vld [vmem:[%s3115_s0 + $0x20] sm:$0xff]  ;;  %v2516_v6 = vld [vmem:[%s3115_s0 + $0x28] sm:$0xff]  ;;  %441 = sbr.rel (%p2155_p4) target bundleno = 22 (0x16), region = 68 }
   0xf   : > { %v2521_v7 = vld [vmem:[%s3115_s0 + $0x30] sm:$0xff]  ;;  %v2526_v8 = vld [vmem:[%s3115_s0 + $0x38] sm:$0xff]  ;;  %v430_v9 = vld [vmem:[%s3115_s0 + $0x40] sm:$0xff]  ;;  %s2544_s14 = sshll.u32 %s411_s18, 3 }
  0x10   : > { %v431_v10 = vld [vmem:[%s3115_s0 + $0x48] sm:$0xff]  ;;  %v2537_v11 = vld [vmem:[%s3115_s0 + $0x50] sm:$0xff]  ;;  %v2542_v12 = vld [vmem:[%s3115_s0 + $0x58] sm:$0xff]  ;;  %s413_s25 = scalar_lea.vmem %s3117_s2, %s2544_s14  ;;  %s417_s27 = scalar_lea.vmem %s3126_s11, %s2544_s14 }
  0x11   : > { %v2549_v13 = vld [vmem:[%s3115_s0 + $0x60] sm:$0xff]  ;;  %v2554_v14 = vld [vmem:[%s3115_s0 + $0x68] sm:$0xff]  ;;  %v2559_v15 = vld [vmem:[%s3115_s0 + $0x70] sm:$0xff]  ;;  %s421_s15 = scalar_lea.vmem %s3127_s12, %s2544_s14 }
  0x12   : > { %v2572_v16 = vld [vmem:[%s3115_s0 + $0x78] sm:$0xff] }
  0x13   : > { %v442_v17 = vld [vmem:[%s3118_s3] sm:$0xff]  ;;  %vm443_vm0 = vcmask 261120  }
  0x14   : > { %v445_v18 = vld [vmem:[%s3119_s4] sm:$0xff]  ;;  %444 = vst.msk [vmem:[#allocation2] sm:$0xff] %vm443_vm0, %v442_v17 }
  0x15   : > { %446 = vst.msk [vmem:[#allocation3] sm:$0xff] %vm443_vm0, %v445_v18 }
  0x16 PF: > { %v452_v19 = vld [vmem:[%s3120_s5 + $0x18] sm:$0xff]  ;;  %v2409_v20 = vmov 0.0   ;;  %v451_v21 = vld [vmem:[%s3120_s5 + $0x10] sm:$0xff]  ;;  %vm2410_vm1 = vmmov 0   ;;  %v450_v22 = vld [vmem:[%s3120_s5 + $0x8] sm:$0xff]  ;;  %vm460_vm2 = vcmask 261120   ;;  %v555_v28 = vlaneseq }
  0x17   : > { %2215 = vmatprep.subr.mxu1 %v2409_v20  ;;  %2223 = vmatprep.mubr.msk.f32.mxu1 %vm2410_vm1, %v2409_v20  ;;  %v449_v23 = vld [vmem:[%s3120_s5] sm:$0xff]  ;;  %v2411_v25 = vmov 0   ;;  %v2412_v26 = vmov 1966171168   ;;  %v535_v46 = vld [vmem:[%s3116_s1 + $0x8] sm:$0xff]  ;;  %v536_v48 = vld [vmem:[%s3116_s1 + $0x10] sm:$0xff] }
  0x18   : > { %2216 = vmatpush3.msra.mxu1 %v452_v19  ;;  %2254 = vmatprep.subr.mxu0 %v2409_v20  ;;  %v553_v27 = vunpack.c.l.s4 %v2412_v26  ;;  %v2614_v30 = vshrl.u32 %v555_v28, 7  ;;  %v2156_v31 = vld [vmem:[%s3121_s6] ss:$0 sm:$0xff]  ;;  %v537_v49 = vld [vmem:[%s3116_s1 + $0x18] sm:$0xff]  ;;  %v539_v56 = vld [vmem:[%s3116_s1 + $0x28] sm:$0xff]  ;;  %vm796_vm3 = vcmask 130112  }
  0x19   : > { %2217 = vmatprep.subr.mxu1 %v2409_v20  ;;  %2255 = vmatpush3.msra.mxu0 %v431_v10  ;;  %v534_v44 = vld [vmem:[%s3116_s1] sm:$0xff]  ;;  %v543_v0 = vld [vmem:[%s3116_s1 + $0x48] sm:$0xff]  ;;  %v540_v10 = vld [vmem:[%s3116_s1 + $0x30] sm:$0xff]  ;;  %vm861_vm4 = vcmask 1041409   ;;  %vm863_vm5 = vcmask 1042434   ;;  %vm865_vm6 = vcmask 1043459  }
  0x1a   : > { %2218 = vmatpush3.msra.mxu1 %v451_v21  ;;  %2256 = vmatprep.subr.mxu0 %v2409_v20  ;;  %v554_v29 = vunpack.c.0.s8 %v553_v27  ;;  %v2621_v38 = vsub.s32 0, %v2614_v30  ;;  %v538_v53 = vld [vmem:[%s3116_s1 + $0x20] sm:$0xff]  ;;  %v541_v18 = vld [vmem:[%s3116_s1 + $0x38] sm:$0xff]  ;;  %vm867_vm7 = vcmask 1044484   ;;  %vm869_vm8 = vcmask 1045509   ;;  %s2413_s30 = smov 64  }
  0x1b   : > { %2219 = vmatprep.subr.mxu1 %v2409_v20  ;;  %2257 = vmatpush3.msra.mxu0 %v430_v9  ;;  %v447_v24 = vld [vmem:[#allocation2] sm:$0xff]  ;;  %vm871_vm9 = vcmask 1046534   ;;  %vm873_vm10 = vcmask 1047559   ;;  %vm876_vm11 = vcmask 130048   ;;  %s2414_s18 = smov 32   ;;  %vm1913_vm12 = vcmask 523520  }
  0x1c   : > { %2220 = vmatpush3.msra.mxu1 %v450_v22  ;;  %2258 = vmatprep.mubr.msk.f32.mxu0 %vm2410_vm1, %v2409_v20  ;;  %v557_v32 = vsub.s32 %v554_v29, %v2614_v30  ;;  %v542_v62 = vld [vmem:[%s3116_s1 + $0x40] sm:$0xff]  ;;  %vm1918_vm13 = vcmask 785920   ;;  %vm1940_vm14 = vcmask 785408   ;;  %s2415_s22 = smov 96  }
  0x1d   : > { %2221 = vmatprep.subr.mxu1 %v2409_v20  ;;  %2268 = vmatprep.subr.mxu0 %v2409_v20  ;;  %v2669_v29 = vld [vmem:[%s3122_s7] ss:$0 sm:$0xff] }
  0x1e   : > { %2222 = vmatpush3.msra.mxu1 %v449_v23  ;;  %2324 = vset.pattern.permute.xlu0 %v2411_v25  ;;  %v544_v23 = vld [vmem:[%s3116_s1 + $0x50] sm:$0xff] }
  0x1f   : > { %2224 = vmatmul.mubr.msk.f32.vlgmr.msra.gmra.mxu1 %vm460_vm2, %v447_v24  ;;  %2226 = vmatprep.subr.mxu1 %v2409_v20 }
  0x20   : > { %2227 = vmatpush3.msra.mxu1 %v423_v2  ;;  %2230 = vmatprep.mubr.msk.f32.mxu1 %vm2410_vm1, %v2409_v20 }
  0x21   : > { %2228 = vmatprep.subr.mxu1 %v2409_v20  ;;  %2325 = vset.pattern.permute.xlu1 %v2411_v25  ;;  %v545_v25 = vld [vmem:[%s3116_s1 + $0x58] sm:$0xff] }
  0x22   : > { %2229 = vmatpush3.msra.mxu1 %v422_v1 }
  0x23   : > { %2233 = vmatprep.subr.mxu1 %v2409_v20 }
  0xdf   : > { %v530_v33 = vpop.f32.mrf.mxu1 }
  0xe0   : > { %v531_v34 = vadd.f32 %v2156_v31, %v530_v33  ;;  %v546_v31 = vld [vmem:[%s3116_s1 + $0x60] sm:$0xff] }
  0xe1   : > { %v2225_v35 = vpop.f32.mrf.mxu1 }
  0xe2   : > { %v551_v36 = vcombine.high %v531_v34, %v531_v34  ;;  %v558_v37 = vrot.slane %v531_v34, %v557_v32 }
  0xe4   : > { %v566_v39 = vcombine.high %v558_v37, %v558_v37  ;;  %v574_v40 = vrot.slane %v558_v37, %v557_v32  ;;  %v565_v41 = vrot.slane %v551_v36, %v557_v32 }
  0xe6   : > { %v588_v42 = vrot.slane %v566_v39, %v557_v32  ;;  %v596_v43 = vcombine.high %v574_v40, %v574_v40  ;;  %v603_v45 = vrot.slane %v574_v40, %v2621_v38  ;;  %v581_v50 = vrot.slane %v565_v41, %v557_v32  ;;  %v547_v39 = vld [vmem:[%s3116_s1 + $0x68] sm:$0xff] }
  0xe7   : > { %v567_v57 = vcombine.high %v565_v41, %v565_v41 }
  0xe8   : > { %v607_v47 = vrot.slane %v588_v42, %v2621_v38  ;;  %v611_v51 = vrot.slane %v596_v43, %v2621_v38  ;;  %v640_v52 = vadd.f32 %v603_v45, %v534_v44  ;;  %v641_v54 = vadd.f32 %v603_v45, %v535_v46 }
  0xe9   : > { %v598_v59 = vcombine.high %v588_v42, %v588_v42  ;;  %v619_v60 = vrot.slane %v581_v50, %v2621_v38  ;;  %v595_v1 = vrot.slane %v567_v57, %v557_v32  ;;  %v597_v19 = vcombine.high %v581_v50, %v581_v50 }
  0xea   : > { %v642_v55 = vadd.f32 %v607_v47, %v536_v48  ;;  %v643_v58 = vadd.f32 %v607_v47, %v537_v49  ;;  %v644_v61 = vadd.f32 %v611_v51, %v538_v53  ;;  %2326 = vtanh.f32 %v640_v52  ;;  %v548_v47 = vld [vmem:[%s3116_s1 + $0x70] sm:$0xff]  ;;  %v549_v52 = vld [vmem:[%s3116_s1 + $0x78] sm:$0xff] }
  0xeb   : > { %2328 = vtanh.f32 %v641_v54  ;;  %v645_v63 = vadd.f32 %v611_v51, %v539_v56  ;;  %v615_v2 = vrot.slane %v598_v59, %v2621_v38  ;;  %v648_v9 = vadd.f32 %v619_v60, %v542_v62 }
  0xec   : > { %2330 = vtanh.f32 %v642_v55  ;;  %v649_v17 = vadd.f32 %v619_v60, %v543_v0  ;;  %v623_v21 = vrot.slane %v595_v1, %v2621_v38  ;;  %v599_v26 = vcombine.high %v595_v1, %v595_v1 }
  0xed   : > { %2332 = vtanh.f32 %v643_v58  ;;  %v646_v22 = vadd.f32 %v615_v2, %v540_v10  ;;  %v647_v24 = vadd.f32 %v615_v2, %v541_v18  ;;  %v627_v27 = vrot.slane %v597_v19, %v2621_v38 }
  0xee   : > { %2334 = vtanh.f32 %v644_v61  ;;  %v650_v32 = vadd.f32 %v623_v21, %v544_v23  ;;  %v651_v35 = vadd.f32 %v623_v21, %v545_v25  ;;  %v631_v40 = vrot.slane %v599_v26, %v2621_v38 }
  0xef   : > { %2336 = vtanh.f32 %v645_v63  ;;  %v652_v41 = vadd.f32 %v627_v27, %v546_v31  ;;  %v653_v48 = vadd.f32 %v627_v27, %v547_v39 }
  0xf0   : > { %2338 = vtanh.f32 %v648_v9  ;;  %v654_v53 = vadd.f32 %v631_v40, %v548_v47  ;;  %v655_v57 = vadd.f32 %v631_v40, %v549_v52 }
  0xf1   : > { %2340 = vtanh.f32 %v649_v17 }
  0xf2   : > { %2342 = vtanh.f32 %v646_v22 }
  0xf3   : > { %2344 = vtanh.f32 %v647_v24 }
  0xf4   : > { %2346 = vtanh.f32 %v650_v32 }
  0xf5   : > { %2348 = vtanh.f32 %v651_v35 }
  0xf6   : > { %2350 = vtanh.f32 %v652_v41 }
  0xf7   : > { %v2327_v33 = vpop.eup %2326  ;;  %2352 = vtanh.f32 %v653_v48 }
  0xf8   : > { %v2329_v34 = vpop.eup %2328  ;;  %v679_v36 = vmul.f32 %v2327_v33, %v2669_v29  ;;  %2354 = vtanh.f32 %v654_v53 }
  0xf9   : > { %v2331_v37 = vpop.eup %2330  ;;  %v680_v45 = vmul.f32 %v2329_v34, %v2669_v29  ;;  %2356 = vtanh.f32 %v655_v57 }
  0xfa   : > { %v2333_v42 = vpop.eup %2332  ;;  %v695_v43 = vsel %vm460_vm2, %v679_v36, 0.0  ;;  %v681_v44 = vmul.f32 %v2331_v37, %v2669_v29 }
  0xfb   : > { %v2335_v46 = vpop.eup %2334  ;;  %696 = vadd.xlane.f32.xlu0 %v695_v43  ;;  %v682_v50 = vmul.f32 %v2333_v42, %v2669_v29  ;;  %v698_v54 = vsel %vm460_vm2, %v680_v45, 0.0 }
  0xfc   : > { %v701_v49 = vsel %vm460_vm2, %v681_v44, 0.0  ;;  %v2337_v51 = vpop.eup %2336  ;;  %v683_v55 = vmul.f32 %v2335_v46, %v2669_v29  ;;  %v2159_v44 = vld [vmem:[#allocation5] ss:$0 sm:$0xff] }
  0xfd   : > { %702 = vadd.xlane.f32.xlu1 %v701_v49  ;;  %v2339_v56 = vpop.eup %2338  ;;  %v704_v58 = vsel %vm460_vm2, %v682_v50, 0.0  ;;  %v684_v59 = vmul.f32 %v2337_v51, %v2669_v29 }
  0xfe   : > { %v2341_v60 = vpop.eup %2340  ;;  %v707_v61 = vsel %vm460_vm2, %v683_v55, 0.0  ;;  %v687_v62 = vmul.f32 %v2339_v56, %v2669_v29  ;;  %v786_v56 = vand.u32 127, %v555_v28 }
  0xff   : > { %699 = vadd.xlane.f32.xlu0 %v698_v54  ;;  %v2343_v63 = vpop.eup %2342  ;;  %v710_v0 = vsel %vm460_vm2, %v684_v59, 0.0  ;;  %v688_v1 = vmul.f32 %v2341_v60, %v2669_v29 }
 0x100   : > { %v2345_v2 = vpop.eup %2344  ;;  %v719_v9 = vsel %vm460_vm2, %v687_v62, 0.0  ;;  %v685_v10 = vmul.f32 %v2343_v63, %v2669_v29 }
 0x101   : > { %705 = vadd.xlane.f32.xlu1 %v704_v58  ;;  %v2347_v17 = vpop.eup %2346  ;;  %v722_v18 = vsel %vm460_vm2, %v688_v1, 0.0  ;;  %v686_v19 = vmul.f32 %v2345_v2, %v2669_v29  ;;  %v791_v58 = vadd.s32 4294967288, %v786_v56 }
 0x102   : > { %v2349_v21 = vpop.eup %2348  ;;  %v713_v22 = vsel %vm460_vm2, %v685_v10, 0.0  ;;  %v689_v23 = vmul.f32 %v2347_v17, %v2669_v29 }
 0x103   : > { %708 = vadd.xlane.f32.xlu0 %v707_v61  ;;  %v2351_v24 = vpop.eup %2350  ;;  %v716_v25 = vsel %vm460_vm2, %v686_v19, 0.0  ;;  %v690_v26 = vmul.f32 %v2349_v21, %v2669_v29  ;;  %v2718_v61 = vsub.s32 %v786_v56, %v2614_v30  ;;  %v2721_v62 = vsub.s32 %v791_v58, %v2614_v30 }
 0x104   : > { %v2353_v27 = vpop.eup %2352  ;;  %v725_v31 = vsel %vm460_vm2, %v689_v23, 0.0  ;;  %v691_v32 = vmul.f32 %v2351_v24, %v2669_v29 }
 0x105   : > { %711 = vadd.xlane.f32.xlu1 %v710_v0  ;;  %v2355_v33 = vpop.eup %2354  ;;  %v728_v34 = vsel %vm460_vm2, %v690_v26, 0.0  ;;  %v692_v35 = vmul.f32 %v2353_v27, %v2669_v29 }
 0x106   : > { %v2357_v36 = vpop.eup %2356  ;;  %v731_v37 = vsel %vm460_vm2, %v691_v32, 0.0  ;;  %v693_v39 = vmul.f32 %v2355_v33, %v2669_v29 }
 0x107   : > { %720 = vadd.xlane.f32.xlu0 %v719_v9  ;;  %v734_v40 = vsel %vm460_vm2, %v692_v35, 0.0  ;;  %v694_v41 = vmul.f32 %v2357_v36, %v2669_v29 }
 0x108   : > { %v737_v42 = vsel %vm460_vm2, %v693_v39, 0.0 }
 0x109   : > { %723 = vadd.xlane.f32.xlu1 %v722_v18  ;;  %v740_v43 = vsel %vm460_vm2, %v694_v41, 0.0 }
 0x10b   : > { %714 = vadd.xlane.f32.xlu0 %v713_v22 }
 0x10d   : > { %717 = vadd.xlane.f32.xlu1 %v716_v25 }
 0x10f   : > { %726 = vadd.xlane.f32.xlu0 %v725_v31 }
 0x111   : > { %729 = vadd.xlane.f32.xlu1 %v728_v34 }
 0x113   : > { %732 = vadd.xlane.f32.xlu0 %v731_v37 }
 0x115   : > { %735 = vadd.xlane.f32.xlu1 %v734_v40 }
 0x117   : > { %738 = vadd.xlane.f32.xlu0 %v737_v42 }
 0x119   : > { %741 = vadd.xlane.f32.xlu1 %v740_v43 }
 0x12d   : > { %750 = vperm.xlu0 %2324, %v2159_v44  }
 0x184   : > { %v697_v45 = vpop.xlane.xlu0 %696 }
 0x186   : > { %v703_v46 = vpop.xlane.xlu1 %702 }
 0x188   : > { %v700_v47 = vpop.xlane.xlu0 %699 }
 0x18a   : > { %v706_v48 = vpop.xlane.xlu1 %705 }
 0x18c   : > { %v709_v49 = vpop.xlane.xlu0 %708 }
 0x18e   : > { %v712_v50 = vpop.xlane.xlu1 %711 }
 0x190   : > { %v721_v51 = vpop.xlane.xlu0 %720 }
 0x192   : > { %v724_v53 = vpop.xlane.xlu1 %723 }
 0x194   : > { %v715_v52 = vpop.xlane.xlu0 %714 }
 0x196   : > { %v718_v29 = vpop.xlane.xlu1 %717 }
 0x198   : > { %v727_v54 = vpop.xlane.xlu0 %726 }
 0x19a   : > { %v730_v57 = vpop.xlane.xlu1 %729 }
 0x19c   : > { %v733_v55 = vpop.xlane.xlu0 %732 }
 0x19e   : > { %v736_v60 = vpop.xlane.xlu1 %735 }
 0x1a0   : > { %v739_v59 = vpop.xlane.xlu0 %738 }
 0x1a2   : > { %v742_v26 = vpop.xlane.xlu1 %741 }
 0x1a8   : > { %v751_v63 = vpop.permute.xlu0 %750 }
 0x1a9   : > { %v2723_v0 = vadd.f32 %v751_v63, %v697_v45  ;;  %v2725_v1 = vadd.f32 %v751_v63, %v700_v47  ;;  %v2727_v2 = vadd.f32 %v751_v63, %v703_v46  ;;  %v2729_v9 = vadd.f32 %v751_v63, %v706_v48 }
 0x1aa   : > { %v2731_v28 = vadd.f32 %v751_v63, %v709_v49  ;;  %v2733_v10 = vadd.f32 %v751_v63, %v712_v50  ;;  %v2735_v17 = vadd.f32 %v751_v63, %v715_v52  ;;  %v2737_v18 = vadd.f32 %v751_v63, %v718_v29 }
 0x1ab   : > { %v2739_v19 = vadd.f32 %v751_v63, %v721_v51  ;;  %v2741_v21 = vadd.f32 %v751_v63, %v724_v53  ;;  %v2743_v22 = vadd.f32 %v751_v63, %v727_v54  ;;  %v2745_v23 = vadd.f32 %v751_v63, %v730_v57 }
 0x1ac   : > { %v2747_v24 = vadd.f32 %v751_v63, %v733_v55  ;;  %v2749_v25 = vadd.f32 %v751_v63, %v736_v60  ;;  %v790_v27 = vrot.slane %v2723_v0, %v2718_v61  ;;  %v795_v31 = vrot.slane %v2725_v1, %v2721_v62 }
 0x1ad   : > { %v801_v32 = vrot.slane %v2727_v2, %v2718_v61  ;;  %v805_v33 = vrot.slane %v2729_v9, %v2721_v62  ;;  %v2759_v34 = vadd.f32 %v751_v63, %v739_v59  ;;  %v2761_v35 = vadd.f32 %v751_v63, %v742_v26 }
 0x1ae   : > { %v810_v36 = vrot.slane %v2731_v28, %v2718_v61  ;;  %v814_v37 = vrot.slane %v2733_v10, %v2721_v62  ;;  %v797_v39 = vsel %vm796_vm3, %v795_v31, %v790_v27  ;;  %v819_v41 = vrot.slane %v2735_v17, %v2718_v61 }
 0x1af   : > { %v806_v40 = vsel %vm796_vm3, %v805_v33, %v801_v32  ;;  %v823_v42 = vrot.slane %v2737_v18, %v2721_v62  ;;  %v828_v44 = vrot.slane %v2739_v19, %v2718_v61  ;;  %v832_v45 = vrot.slane %v2741_v21, %v2721_v62 }
 0x1b0   : > { %v815_v43 = vsel %vm796_vm3, %v814_v37, %v810_v36  ;;  %v837_v46 = vrot.slane %v2743_v22, %v2718_v61  ;;  %v841_v47 = vrot.slane %v2745_v23, %v2721_v62  ;;  %v846_v48 = vrot.slane %v2747_v24, %v2718_v61 }
 0x1b1   : > { %v850_v49 = vrot.slane %v2749_v25, %v2721_v62  ;;  %v862_v50 = vsel %vm861_vm4, %v806_v40, %v797_v39  ;;  %v824_v51 = vsel %vm796_vm3, %v823_v42, %v819_v41  ;;  %v855_v52 = vrot.slane %v2759_v34, %v2718_v61 }
 0x1b2   : > { %v859_v53 = vrot.slane %v2761_v35, %v2721_v62  ;;  %v864_v54 = vsel %vm863_vm5, %v815_v43, %v862_v50  ;;  %v833_v29 = vsel %vm796_vm3, %v832_v45, %v828_v44  ;;  %v842_v56 = vsel %vm796_vm3, %v841_v47, %v837_v46 }
 0x1b3   : > { %v866_v55 = vsel %vm865_vm6, %v824_v51, %v864_v54  ;;  %v851_v58 = vsel %vm796_vm3, %v850_v49, %v846_v48  ;;  %v895_v31 = vsub.s32 3, %v2614_v30  ;;  %v887_v33 = vsub.s32 1, %v2614_v30 }
 0x1b4   : > { %v868_v57 = vsel %vm867_vm7, %v833_v29, %v866_v55  ;;  %v860_v60 = vsel %vm796_vm3, %v859_v53, %v855_v52  ;;  %v899_v39 = vsub.s32 4, %v2614_v30  ;;  %v903_v44 = vsub.s32 5, %v2614_v30 }
 0x1b5   : > { %v870_v59 = vsel %vm869_vm8, %v842_v56, %v868_v57  ;;  %v907_v49 = vsub.s32 6, %v2614_v30  ;;  %v911_v54 = vsub.s32 7, %v2614_v30 }
 0x1b6   : > { %v872_v63 = vsel %vm871_vm9, %v851_v58, %v870_v59 }
 0x1b7   : > { %v874_v26 = vsel %vm873_vm10, %v860_v60, %v872_v63 }
 0x1b8   : > { %v877_v27 = vsel %vm876_vm11, %v874_v26, -inf }
 0x1b9   : > { %878 = vmax.xlane.f32.xlu1 %v877_v27 }
 0x242   : > { %v879_v32 = vpop.xlane.xlu1 %878 }
 0x243   : > { %v884_v36 = vrot.slane %v879_v32, %v2621_v38  ;;  %v896_v40 = vrot.slane %v879_v32, %v895_v31  ;;  %v888_v41 = vrot.slane %v879_v32, %v887_v33  ;;  %v900_v45 = vrot.slane %v879_v32, %v899_v39 }
 0x244   : > { %v904_v50 = vrot.slane %v879_v32, %v903_v44  ;;  %v912_v57 = vrot.slane %v879_v32, %v911_v54 }
 0x245   : > { %v921_v37 = vsub.f32 %v2723_v0, %v884_v36  ;;  %v922_v42 = vsub.f32 %v2725_v1, %v884_v36  ;;  %v928_v46 = vsub.f32 %v2737_v18, %v896_v40  ;;  %v891_v0 = vsub.s32 2, %v2614_v30 }
 0x246   : > { %v923_v47 = vsub.f32 %v2727_v2, %v888_v41  ;;  %v930_v1 = vsub.f32 %v2741_v21, %v900_v45  ;;  %v924_v53 = vsub.f32 %v2729_v9, %v888_v41  ;;  %v908_v2 = vrot.slane %v879_v32, %v907_v49 }
 0x247   : > { %v937_v43 = vmul.f32 1.442695, %v921_v37  ;;  %v939_v48 = vmul.f32 1.442695, %v922_v42  ;;  %v951_v51 = vmul.f32 1.442695, %v928_v46  ;;  %v892_v52 = vrot.slane %v879_v32, %v891_v0 }
 0x248   : > { %v941_v18 = vmul.f32 1.442695, %v923_v47  ;;  %v932_v29 = vsub.f32 %v2745_v23, %v904_v50  ;;  %v955_v55 = vmul.f32 1.442695, %v930_v1  ;;  %v943_v21 = vmul.f32 1.442695, %v924_v53 }
 0x249   : > { %2358 = vpow2.f32 %v937_v43  ;;  %v925_v56 = vsub.f32 %v2731_v28, %v892_v52  ;;  %v934_v9 = vsub.f32 %v2749_v25, %v908_v2  ;;  %v926_v59 = vsub.f32 %v2733_v10, %v892_v52 }
 0x24a   : > { %2360 = vpow2.f32 %v939_v48  ;;  %v959_v58 = vmul.f32 1.442695, %v932_v29  ;;  %v936_v23 = vsub.f32 %v2761_v35, %v912_v57  ;;  %v927_v26 = vsub.f32 %v2735_v17, %v896_v40 }
 0x24b   : > { %2362 = vpow2.f32 %v951_v51  ;;  %v945_v60 = vmul.f32 1.442695, %v925_v56  ;;  %v963_v28 = vmul.f32 1.442695, %v934_v9  ;;  %v947_v27 = vmul.f32 1.442695, %v926_v59 }
 0x24c   : > { %2364 = vpow2.f32 %v941_v18  ;;  %v967_v10 = vmul.f32 1.442695, %v936_v23  ;;  %v929_v36 = vsub.f32 %v2739_v19, %v900_v45  ;;  %v949_v37 = vmul.f32 1.442695, %v927_v26 }
 0x24d   : > { %2366 = vpow2.f32 %v955_v55  ;;  %v931_v35 = vsub.f32 %v2743_v22, %v904_v50  ;;  %v933_v43 = vsub.f32 %v2747_v24, %v908_v2  ;;  %v935_v47 = vsub.f32 %v2759_v34, %v912_v57 }
 0x24e   : > { %2368 = vpow2.f32 %v943_v21  ;;  %v953_v40 = vmul.f32 1.442695, %v929_v36 }
 0x24f   : > { %2370 = vpow2.f32 %v959_v58  ;;  %v957_v45 = vmul.f32 1.442695, %v931_v35  ;;  %v961_v48 = vmul.f32 1.442695, %v933_v43  ;;  %v965_v1 = vmul.f32 1.442695, %v935_v47 }
 0x250   : > { %2372 = vpow2.f32 %v945_v60 }
 0x251   : > { %2374 = vpow2.f32 %v963_v28 }
 0x252   : > { %2376 = vpow2.f32 %v947_v27 }
 0x253   : > { %2378 = vpow2.f32 %v967_v10 }
 0x254   : > { %2380 = vpow2.f32 %v949_v37 }
 0x255   : > { %2382 = vpow2.f32 %v953_v40 }
 0x256   : > { %v2835_v63 = vpop.eup %2358  ;;  %2384 = vpow2.f32 %v957_v45 }
 0x257   : > { %986 = vperm.xlu1 %2325, %v2835_v63   ;;  %v2840_v32 = vpop.eup %2360  ;;  %2386 = vpow2.f32 %v961_v48 }
 0x258   : > { %v2843_v25 = vpop.eup %2362  ;;  %2388 = vpow2.f32 %v965_v1 }
 0x259   : > { %v2846_v41 = vpop.eup %2364  ;;  %1007 = vperm.xlu0 %2324, %v2843_v25  }
 0x25a   : > { %v2850_v17 = vpop.eup %2366 }
 0x25b   : > { %989 = vperm.xlu1 %2325, %v2840_v32   ;;  %v2853_v42 = vpop.eup %2368 }
 0x25c   : > { %v2857_v19 = vpop.eup %2370 }
 0x25d   : > { %1013 = vperm.xlu0 %2324, %v2850_v17   ;;  %v2860_v46 = vpop.eup %2372 }
 0x25e   : > { %v2864_v22 = vpop.eup %2374 }
 0x25f   : > { %992 = vperm.xlu1 %2325, %v2846_v41   ;;  %v2867_v50 = vpop.eup %2376 }
 0x260   : > { %v2871_v24 = vpop.eup %2378 }
 0x261   : > { %1019 = vperm.xlu0 %2324, %v2857_v19   ;;  %v2873_v51 = vpop.eup %2380 }
 0x262   : > { %v2877_v34 = vpop.eup %2382 }
 0x263   : > { %995 = vperm.xlu1 %2325, %v2853_v42   ;;  %v2880_v52 = vpop.eup %2384 }
 0x264   : > { %v2883_v53 = vpop.eup %2386 }
 0x265   : > { %1025 = vperm.xlu0 %2324, %v2864_v22   ;;  %v2389_v18 = vpop.eup %2388 }
 0x267   : > { %998 = vperm.xlu1 %2325, %v2860_v46  }
 0x269   : > { %1031 = vperm.xlu0 %2324, %v2871_v24  }
 0x26b   : > { %1001 = vperm.xlu1 %2325, %v2867_v50  }
 0x26f   : > { %1004 = vperm.xlu1 %2325, %v2873_v51  }
 0x273   : > { %1010 = vperm.xlu1 %2325, %v2877_v34  }
 0x277   : > { %1016 = vperm.xlu1 %2325, %v2880_v52  }
 0x27b   : > { %1022 = vperm.xlu1 %2325, %v2883_v53  }
 0x27f   : > { %1028 = vperm.xlu1 %2325, %v2389_v18  }
 0x2d2   : > { %v987_v2 = vpop.permute.xlu1 %986 }
 0x2d3   : > { %v1036_v47 = vrot.slane %v987_v2, %v2718_v61 }
 0x2d4   : > { %v1008_v21 = vpop.permute.xlu0 %1007 }
 0x2d5   : > { %v1067_v45 = vrot.slane %v1008_v21, %v2721_v62 }
 0x2d6   : > { %v990_v29 = vpop.permute.xlu1 %989 }
 0x2d7   : > { %v1040_v36 = vrot.slane %v990_v29, %v2721_v62 }
 0x2d8   : > { %v1014_v9 = vpop.permute.xlu0 %1013 }
 0x2da   : > { %v993_v55 = vpop.permute.xlu1 %992 }
 0x2db   : > { %v1045_v37 = vrot.slane %v993_v55, %v2718_v61  ;;  %v1041_v55 = vsel %vm796_vm3, %v1040_v36, %v1036_v47 }
 0x2dc   : > { %v1020_v60 = vpop.permute.xlu0 %1019 }
 0x2de   : > { %v996_v56 = vpop.permute.xlu1 %995 }
 0x2df   : > { %v1049_v28 = vrot.slane %v996_v56, %v2721_v62  ;;  %v1076_v56 = vrot.slane %v1014_v9, %v2721_v62 }
 0x2e0   : > { %v1026_v26 = vpop.permute.xlu0 %1025 }
 0x2e1   : > { %v1050_v48 = vsel %vm796_vm3, %v1049_v28, %v1045_v37  ;;  %v1094_v21 = vrot.slane %v1026_v26, %v2721_v62 }
 0x2e2   : > { %v999_v57 = vpop.permute.xlu1 %998  ;;  %v1105_v2 = vsel %vm861_vm4, %v1050_v48, %v1041_v55 }
 0x2e3   : > { %v1054_v40 = vrot.slane %v999_v57, %v2718_v61 }
 0x2e4   : > { %v1032_v28 = vpop.permute.xlu0 %1031 }
 0x2e6   : > { %v1002_v58 = vpop.permute.xlu1 %1001 }
 0x2e7   : > { %v1058_v27 = vrot.slane %v1002_v58, %v2721_v62 }
 0x2e9   : > { %v1059_v29 = vsel %vm796_vm3, %v1058_v27, %v1054_v40 }
 0x2ea   : > { %v1005_v59 = vpop.permute.xlu1 %1004  ;;  %v1106_v9 = vsel %vm863_vm5, %v1059_v29, %v1105_v2 }
 0x2eb   : > { %v1063_v35 = vrot.slane %v1005_v59, %v2718_v61  ;;  %v1085_v59 = vrot.slane %v1020_v60, %v2721_v62 }
 0x2ed   : > { %v1068_v57 = vsel %vm796_vm3, %v1067_v45, %v1063_v35  ;;  %v1103_v35 = vrot.slane %v1032_v28, %v2721_v62 }
 0x2ee   : > { %v1011_v23 = vpop.permute.xlu1 %1010  ;;  %v1107_v37 = vsel %vm865_vm6, %v1068_v57, %v1106_v9 }
 0x2ef   : > { %v1072_v43 = vrot.slane %v1011_v23, %v2718_v61 }
 0x2f2   : > { %v1017_v10 = vpop.permute.xlu1 %1016 }
 0x2f3   : > { %v1081_v1 = vrot.slane %v1017_v10, %v2718_v61  ;;  %v1077_v10 = vsel %vm796_vm3, %v1076_v56, %v1072_v43 }
 0x2f4   : > { %v1108_v40 = vsel %vm867_vm7, %v1077_v10, %v1107_v37 }
 0x2f5   : > { %v1086_v27 = vsel %vm796_vm3, %v1085_v59, %v1081_v1 }
 0x2f6   : > { %v1023_v58 = vpop.permute.xlu1 %1022  ;;  %v1109_v45 = vsel %vm869_vm8, %v1086_v27, %v1108_v40 }
 0x2f7   : > { %v1090_v23 = vrot.slane %v1023_v58, %v2718_v61 }
 0x2f9   : > { %v1095_v36 = vsel %vm796_vm3, %v1094_v21, %v1090_v23 }
 0x2fa   : > { %v1029_v60 = vpop.permute.xlu1 %1028  ;;  %v1110_v43 = vsel %vm871_vm9, %v1095_v36, %v1109_v45 }
 0x2fb   : > { %v1099_v26 = vrot.slane %v1029_v60, %v2718_v61 }
 0x2fd   : > { %v1104_v47 = vsel %vm796_vm3, %v1103_v35, %v1099_v26 }
 0x2fe   : > { %v1111_v48 = vsel %vm873_vm10, %v1104_v47, %v1110_v43 }
 0x2ff   : > { %v1113_v1 = vsel %vm876_vm11, %v1111_v48, 0.0 }
 0x300   : > { %1114 = vadd.xlane.f32.xlu1 %v1113_v1 }
 0x389   : > { %v1115_v56 = vpop.xlane.xlu1 %1114 }
 0x38a   : > { %2390 = vrcp.f32 %v1115_v56 }
 0x397   : > { %v2391_v29 = vpop.eup %2390 }
 0x398   : > { %v1137_v58 = vrot.slane %v2391_v29, %v899_v39  ;;  %v1121_v55 = vrot.slane %v2391_v29, %v2621_v38  ;;  %v1149_v23 = vrot.slane %v2391_v29, %v911_v54  ;;  %v1125_v28 = vrot.slane %v2391_v29, %v887_v33 }
 0x39a   : > { %v1167_v59 = vmul.f32 %v2850_v17, %v1137_v58  ;;  %v1158_v57 = vmul.f32 %v2835_v63, %v1121_v55  ;;  %v1172_v21 = vmul.f32 %v2389_v18, %v1149_v23  ;;  %v1159_v2 = vmul.f32 %v2840_v32, %v1121_v55 }
 0x39b   : > { %v1160_v39 = vmul.f32 %v2846_v41, %v1125_v28  ;;  %v1161_v38 = vmul.f32 %v2853_v42, %v1125_v28  ;;  %v1129_v63 = vrot.slane %v2391_v29, %v891_v0  ;;  %v1133_v32 = vrot.slane %v2391_v29, %v895_v31 }
 0x39c   : > { %1536 = vperm.xlu1 %2325, %v1167_v59   ;;  %1177 = vperm.xlu0 %2324, %v1158_v57   ;;  %v1166_v42 = vmul.f32 %v2877_v34, %v1137_v58  ;;  %v1141_v0 = vrot.slane %v2391_v29, %v903_v44  ;;  %v1145_v31 = vrot.slane %v2391_v29, %v907_v49 }
 0x39d   : > { %v1162_v54 = vmul.f32 %v2860_v46, %v1129_v63  ;;  %v1163_v17 = vmul.f32 %v2867_v50, %v1129_v63  ;;  %v1164_v33 = vmul.f32 %v2873_v51, %v1133_v32  ;;  %v1165_v41 = vmul.f32 %v2843_v25, %v1133_v32  ;;  %v1931_v63 = vld [vmem:[%s3124_s9 + $0x50] sm:$0xff]  ;;  %v1886_v32 = vld [vmem:[%s413_s25] sm:$0xff] }
 0x39e   : > { %v1168_v46 = vmul.f32 %v2880_v52, %v1141_v0  ;;  %v1169_v50 = vmul.f32 %v2857_v19, %v1141_v0  ;;  %v1170_v51 = vmul.f32 %v2883_v53, %v1145_v31  ;;  %v1171_v25 = vmul.f32 %v2864_v22, %v1145_v31  ;;  %1887 = vst.msk [vmem:[#allocation4] sm:$0xff] %vm460_vm2, %v1886_v32  ;;  %v1926_v0 = vld [vmem:[%s3124_s9 + $0x28] sm:$0xff] }
 0x39f   : > { %v1173_v34 = vmul.f32 %v2871_v24, %v1149_v23 }
 0x3a0   : > { %1800 = vperm.xlu1 %2325, %v1172_v21   ;;  %1180 = vperm.xlu0 %2324, %v1159_v2  }
 0x3a4   : > { %1266 = vperm.xlu0 %2324, %v1160_v39  }
 0x3a8   : > { %1269 = vperm.xlu0 %2324, %v1161_v38  }
 0x3ac   : > { %1355 = vperm.xlu0 %2324, %v1162_v54   ;;  %v2400_v54 = vld [vmem:[#allocation2] sm:$0xff] }
 0x3b0   : > { %1358 = vperm.xlu0 %2324, %v1163_v17   ;;  %v1930_v17 = vld [vmem:[%s3124_s9 + $0x48] sm:$0xff] }
 0x3b4   : > { %1444 = vperm.xlu0 %2324, %v1164_v33   ;;  %v1929_v33 = vld [vmem:[%s3124_s9 + $0x40] sm:$0xff] }
 0x3b8   : > { %1447 = vperm.xlu0 %2324, %v1165_v41   ;;  %v1928_v41 = vld [vmem:[%s3124_s9 + $0x38] sm:$0xff] }
 0x3bc   : > { %1533 = vperm.xlu0 %2324, %v1166_v42   ;;  %v1927_v42 = vld [vmem:[%s3124_s9 + $0x30] sm:$0xff] }
 0x3c0   : > { %1622 = vperm.xlu0 %2324, %v1168_v46  }
 0x3c4   : > { %1625 = vperm.xlu0 %2324, %v1169_v50  }
 0x3c8   : > { %1711 = vperm.xlu0 %2324, %v1170_v51  }
 0x3cc   : > { %1714 = vperm.xlu0 %2324, %v1171_v25  }
 0x3d0   : > { %1803 = vperm.xlu0 %2324, %v1173_v34  }
 0x3d4   : > { %1915 = vrot.lane.b32.xlu0 %v2400_v54, %s2413_s30 }
 0x417   : > { %v1178_v44 = vpop.permute.xlu0 %1177  ;;  %v1537_v35 = vpop.permute.xlu1 %1536 }
 0x418   : > { %v1185_v52 = vrot.slane %v1178_v44, %v2718_v61  ;;  %v1545_v26 = vrot.slane %v1537_v35, %v2721_v62 }
 0x41b   : > { %v1181_v18 = vpop.permute.xlu0 %1180  ;;  %v1801_v29 = vpop.permute.xlu1 %1800 }
 0x41c   : > { %v1189_v10 = vrot.slane %v1181_v18, %v2721_v62 }
 0x41e   : > { %v2951_v19 = vsel %vm796_vm3, %v1189_v10, %v1185_v52 }
 0x41f   : > { %2231 = vmatmul.mubr.msk.f32.vlgmr.msra.gmra.mxu1 %vm876_vm11, %v2951_v19  ;;  %v1267_v30 = vpop.permute.xlu0 %1266 }
 0x420   : > { %2234 = vmatpush3.msra.mxu1 %v2506_v4  ;;  %2237 = vmatprep.mubr.msk.f32.mxu1 %vm2410_vm1, %v2409_v20  ;;  %v1274_v22 = vrot.slane %v1267_v30, %v2718_v61 }
 0x421   : > { %2235 = vmatprep.subr.mxu1 %v2409_v20 }
 0x422   : > { %2236 = vmatpush3.msra.mxu1 %v2501_v3 }
 0x423   : > { %v1270_v49 = vpop.permute.xlu0 %1269  ;;  %2240 = vmatprep.subr.mxu1 %v2409_v20 }
 0x424   : > { %v1278_v24 = vrot.slane %v1270_v49, %v2721_v62  ;;  %v1925_v49 = vld [vmem:[%s3124_s9 + $0x20] sm:$0xff] }
 0x426   : > { %v1279_v53 = vsel %vm796_vm3, %v1278_v24, %v1274_v22  ;;  %v1924_v22 = vld [vmem:[%s3124_s9 + $0x18] sm:$0xff] }
 0x427   : > { %2238 = vmatmul.mubr.msk.f32.vlgmr.msra.gmra.mxu1 %vm876_vm11, %v1279_v53  ;;  %v1356_v9 = vpop.permute.xlu0 %1355  ;;  %v2053_v58 = vsel %vm861_vm4, %v1279_v53, %v2951_v19  ;;  %v1923_v53 = vld [vmem:[%s3124_s9 + $0x10] sm:$0xff] }
 0x428   : > { %2241 = vmatpush3.msra.mxu1 %v2516_v6  ;;  %2244 = vmatprep.mubr.msk.f32.mxu1 %vm2410_vm1, %v2409_v20  ;;  %v1363_v4 = vrot.slane %v1356_v9, %v2718_v61 }
 0x429   : > { %2242 = vmatprep.subr.mxu1 %v2409_v20 }
 0x42a   : > { %2243 = vmatpush3.msra.mxu1 %v2511_v5 }
 0x42b   : > { %v1359_v3 = vpop.permute.xlu0 %1358  ;;  %2247 = vmatprep.subr.mxu1 %v2409_v20 }
 0x42c   : > { %v1367_v27 = vrot.slane %v1359_v3, %v2721_v62 }
 0x42e   : > { %v1368_v37 = vsel %vm796_vm3, %v1367_v27, %v1363_v4  ;;  %v1922_v4 = vld [vmem:[%s3124_s9 + $0x8] sm:$0xff] }
 0x42f   : > { %2245 = vmatmul.mubr.msk.f32.vlgmr.msra.gmra.mxu1 %vm876_vm11, %v1368_v37  ;;  %v1445_v36 = vpop.permute.xlu0 %1444  ;;  %v2054_v55 = vsel %vm863_vm5, %v1368_v37, %v2053_v58 }
 0x430   : > { %2248 = vmatpush3.msra.mxu1 %v2526_v8  ;;  %2251 = vmatprep.mubr.msk.f32.mxu1 %vm2410_vm1, %v2409_v20  ;;  %v1452_v6 = vrot.slane %v1445_v36, %v2718_v61 }
 0x431   : > { %2249 = vmatprep.subr.mxu1 %v2409_v20 }
 0x432   : > { %2250 = vmatpush3.msra.mxu1 %v2521_v7 }
 0x433   : > { %v1448_v5 = vpop.permute.xlu0 %1447  ;;  %2261 = vmatprep.subr.mxu1 %v2409_v20 }
 0x434   : > { %v1456_v60 = vrot.slane %v1448_v5, %v2721_v62 }
 0x436   : > { %v1457_v40 = vsel %vm796_vm3, %v1456_v60, %v1452_v6  ;;  %v1921_v6 = vld [vmem:[%s3124_s9] sm:$0xff] }
 0x437   : > { %2252 = vmatmul.mubr.msk.f32.vlgmr.msra.gmra.mxu1 %vm876_vm11, %v1457_v40  ;;  %v1534_v8 = vpop.permute.xlu0 %1533  ;;  %v2055_v59 = vsel %vm865_vm6, %v1457_v40, %v2054_v55 }
 0x438   : > { %v1541_v45 = vrot.slane %v1534_v8, %v2718_v61  ;;  %2262 = vmatpush3.msra.mxu1 %v2542_v12  ;;  %2265 = vmatprep.mubr.msk.f32.mxu1 %vm2410_vm1, %v2409_v20 }
 0x439   : > { %2263 = vmatprep.subr.mxu1 %v2409_v20 }
 0x43a   : > { %v1546_v7 = vsel %vm796_vm3, %v1545_v26, %v1541_v45  ;;  %2264 = vmatpush3.msra.mxu1 %v2537_v11 }
 0x43b   : > { %2259 = vmatmul.mubr.msk.f32.vlgmr.msra.gmra.mxu0 %vm876_vm11, %v1546_v7  ;;  %v1623_v47 = vpop.permute.xlu0 %1622  ;;  %2275 = vmatprep.subr.mxu1 %v2409_v20  ;;  %v2056_v23 = vsel %vm867_vm7, %v1546_v7, %v2055_v59  ;;  %v448_v7 = vld [vmem:[#allocation3] sm:$0xff] }
 0x43c   : > { %2269 = vmatpush3.msra.mxu0 %v2554_v14  ;;  %2272 = vmatprep.mubr.msk.f32.mxu0 %vm2410_vm1, %v2409_v20  ;;  %v1630_v43 = vrot.slane %v1623_v47, %v2718_v61 }
 0x43d   : > { %2270 = vmatprep.subr.mxu0 %v2409_v20  ;;  %2022 = vrot.lane.b32.xlu0 %v448_v7, %s2414_s18 }
 0x43e   : > { %2271 = vmatpush3.msra.mxu0 %v2549_v13 }
 0x43f   : > { %v1626_v12 = vpop.permute.xlu0 %1625  ;;  %2282 = vmatprep.subr.mxu0 %v2409_v20 }
 0x440   : > { %v1634_v11 = vrot.slane %v1626_v12, %v2721_v62 }
 0x442   : > { %v1635_v48 = vsel %vm796_vm3, %v1634_v11, %v1630_v43 }
 0x443   : > { %2266 = vmatmul.mubr.msk.f32.vlgmr.msra.gmra.mxu1 %vm876_vm11, %v1635_v48  ;;  %v1712_v1 = vpop.permute.xlu0 %1711  ;;  %v2057_v2 = vsel %vm869_vm8, %v1635_v48, %v2056_v23 }
 0x444   : > { %2276 = vmatpush3.msra.mxu1 %v2572_v16  ;;  %2279 = vmatprep.mubr.msk.f32.mxu1 %vm2410_vm1, %v2409_v20  ;;  %v1719_v14 = vrot.slane %v1712_v1, %v2718_v61 }
 0x445   : > { %2277 = vmatprep.subr.mxu1 %v2409_v20 }
 0x446   : > { %2278 = vmatpush3.msra.mxu1 %v2559_v15  ;;  %v1808_v15 = vrot.slane %v1801_v29, %v2718_v61 }
 0x447   : > { %v1715_v13 = vpop.permute.xlu0 %1714 }
 0x448   : > { %v1723_v56 = vrot.slane %v1715_v13, %v2721_v62 }
 0x44a   : > { %v1724_v16 = vsel %vm796_vm3, %v1723_v56, %v1719_v14  ;;  %v2168_v14 = vld [vmem:[%s3125_s10] ss:$0 sm:$0xff] }
 0x44b   : > { %2273 = vmatmul.mubr.msk.f32.vlgmr.msra.gmra.mxu0 %vm876_vm11, %v1724_v16  ;;  %v1804_v57 = vpop.permute.xlu0 %1803  ;;  %v2058_v28 = vsel %vm871_vm9, %v1724_v16, %v2057_v2 }
 0x44c   : > { %v1812_v21 = vrot.slane %v1804_v57, %v2721_v62  ;;  %2306 = vmatprep.mubr.msk.f32.mxu0 %vm2410_vm1, %v2409_v20  ;;  %v1932_v62 = vld [vmem:[%s3124_s9 + $0x58] sm:$0xff] }
 0x44d   : > { %2283 = vmatpush3.msra.mxu0 %v1932_v62 }
 0x44e   : > { %v1813_v39 = vsel %vm796_vm3, %v1812_v21, %v1808_v15  ;;  %2284 = vmatprep.subr.mxu0 %v2409_v20 }
 0x44f   : > { %v2059_v38 = vsel %vm873_vm10, %v1813_v39, %v2058_v28  ;;  %2280 = vmatmul.mubr.msk.f32.vlgmr.msra.gmra.mxu1 %vm876_vm11, %v1813_v39  ;;  %2285 = vmatpush3.msra.mxu0 %v1931_v63 }
 0x450   : > { %v2061_v61 = vsel %vm876_vm11, %v2059_v38, 0.0  ;;  %2286 = vmatprep.subr.mxu0 %v2409_v20 }
 0x451   : > { %2062 = vst [vmem:[%s421_s15] sm:$0xff] %v2061_v61  ;;  %2287 = vmatpush3.msra.mxu0 %v1930_v17 }
 0x452   : > { %2288 = vmatprep.subr.mxu0 %v2409_v20 }
 0x453   : > { %2289 = vmatpush3.msra.mxu0 %v1929_v33 }
 0x454   : > { %2290 = vmatprep.subr.mxu0 %v2409_v20 }
 0x455   : > { %2291 = vmatpush3.msra.mxu0 %v1928_v41 }
 0x456   : > { %2292 = vmatprep.subr.mxu0 %v2409_v20 }
 0x457   : > { %2293 = vmatpush3.msra.mxu0 %v1927_v42 }
 0x458   : > { %2294 = vmatprep.subr.mxu0 %v2409_v20 }
 0x459   : > { %2295 = vmatpush3.msra.mxu0 %v1926_v0 }
 0x45a   : > { %2296 = vmatprep.subr.mxu0 %v2409_v20 }
 0x45b   : > { %2297 = vmatpush3.msra.mxu0 %v1925_v49 }
 0x45c   : > { %2298 = vmatprep.subr.mxu0 %v2409_v20 }
 0x45d   : > { %2299 = vmatpush3.msra.mxu0 %v1924_v22 }
 0x45e   : > { %2300 = vmatprep.subr.mxu0 %v2409_v20 }
 0x45f   : > { %2301 = vmatpush3.msra.mxu0 %v1923_v53 }
 0x460   : > { %2302 = vmatprep.subr.mxu0 %v2409_v20 }
 0x461   : > { %2303 = vmatpush3.msra.mxu0 %v1922_v4 }
 0x462   : > { %2304 = vmatprep.subr.mxu0 %v2409_v20  ;;  %v1916_v20 = vpop.permute.xlu0 %1915 }
 0x463   : > { %2305 = vmatpush3.msra.mxu0 %v1921_v6 }
 0x4af   : > { %v2023_v2 = vpop.permute.xlu0 %2022 }
 0x4df   : > { %v1259_v46 = vpop.f32.mrf.mxu1 }
 0x4e1   : > { %v2232_v50 = vpop.f32.mrf.mxu1 }
 0x4e7   : > { %v1348_v31 = vpop.f32.mrf.mxu1 }
 0x4e8   : > { %v1896_v24 = vrot.slane %v1348_v31, 7 }
 0x4e9   : > { %v2239_v51 = vpop.f32.mrf.mxu1 }
 0x4ea   : > { %v1897_v36 = vsel %vm861_vm4, %v1896_v24, %v1259_v46 }
 0x4ef   : > { %v1437_v25 = vpop.f32.mrf.mxu1 }
 0x4f0   : > { %v1898_v9 = vrot.slane %v1437_v25, 6 }
 0x4f1   : > { %v2246_v34 = vpop.f32.mrf.mxu1 }
 0x4f2   : > { %v1899_v60 = vsel %vm863_vm5, %v1898_v9, %v1897_v36 }
 0x4f7   : > { %v1526_v44 = vpop.f32.mrf.mxu1 }
 0x4f8   : > { %v1900_v3 = vrot.slane %v1526_v44, 5 }
 0x4f9   : > { %v2253_v18 = vpop.f32.mrf.mxu1 }
 0x4fa   : > { %v1901_v8 = vsel %vm865_vm6, %v1900_v3, %v1899_v60 }
 0x4fb   : > { %v1615_v52 = vpop.f32.mrf.mxu0 }
 0x4fc   : > { %v1902_v27 = vrot.slane %v1615_v52, 4 }
 0x4fd   : > { %v2260_v10 = vpop.f32.mrf.mxu0 }
 0x4fe   : > { %v1903_v26 = vsel %vm867_vm7, %v1902_v27, %v1901_v8 }
 0x503   : > { %v1704_v19 = vpop.f32.mrf.mxu1 }
 0x504   : > { %v1904_v5 = vrot.slane %v1704_v19, 3 }
 0x505   : > { %v2267_v30 = vpop.f32.mrf.mxu1 }
 0x506   : > { %v1905_v47 = vsel %vm869_vm8, %v1904_v5, %v1903_v26 }
 0x50b   : > { %v1793_v37 = vpop.f32.mrf.mxu0 }
 0x50c   : > { %v1906_v35 = vrot.slane %v1793_v37, 2 }
 0x50d   : > { %v2274_v40 = vpop.f32.mrf.mxu0 }
 0x50e   : > { %v1907_v11 = vsel %vm871_vm9, %v1906_v35, %v1905_v47 }
 0x50f   : > { %v1882_v45 = vpop.f32.mrf.mxu1 }
 0x510   : > { %v1908_v12 = vrot.slane %v1882_v45, 1 }
 0x511   : > { %v2281_v43 = vpop.f32.mrf.mxu1 }
 0x512   : > { %v1909_v48 = vsel %vm873_vm10, %v1908_v12, %v1907_v11 }
 0x513   : > { %1910 = vrot.lane.b32.xlu1 %v1909_v48, %s2414_s18 }
 0x585   : > { %v1911_v1 = vpop.permute.xlu1 %1910 }
 0x586   : > { %1914 = vst.msk [vmem:[#allocation4] sm:$0xff] %vm1913_vm12, %v1911_v1 }
 0x587   : > { %1919 = vst.msk [vmem:[#allocation4] sm:$0xff] %vm1918_vm13, %v1916_v20 }
 0x58e   : > { %v1920_v13 = vld [vmem:[#allocation4] sm:$0xff] }
 0x58f   : > { %2307 = vmatmul.mubr.msk.f32.vlgmr.msra.gmra.mxu0 %vm1940_vm14, %v1920_v13 }
 0x64f   : > { %v2010_v56 = vpop.f32.mrf.mxu0 }
 0x650   : > { %v2011_v29 = vadd.f32 %v2168_v14, %v2010_v56 }
 0x651   : > { %v2308_v58 = vpop.f32.mrf.mxu0 }
 0x652   : > { %2392 = vtanh.f32 %v2011_v29  ;;  %v2170_v16 = vmul.f32 -1.442695, %v2011_v29 }
 0x654   : > { %2394 = vpow2.f32 %v2170_v16 }
 0x65f   : > { %v2393_v55 = vpop.eup %2392 }
 0x660   : > { %2027 = vrot.lane.b32.xlu1 %v2393_v55, %s2413_s30 }
 0x661   : > { %v2395_v59 = vpop.eup %2394 }
 0x662   : > { %v2017_v57 = vadd.f32 1.0, %v2395_v59 }
 0x664   : > { %2396 = vrcp.f32 %v2017_v57 }
 0x671   : > { %v2397_v15 = vpop.eup %2396 }
 0x672   : > { %v2025_v28 = vmul.f32 %v2397_v15, %v2023_v2 }
 0x6d2   : > { %v2028_v23 = vpop.permute.xlu1 %2027 }
 0x6d3   : > { %v2030_v21 = vmul.f32 %v2397_v15, %v2028_v23 }
 0x6d5   : > { %2032 = vrot.lane.b32.xlu1 %v2030_v21, %s2414_s18 }
 0x747   : > { %v2033_v39 = vpop.permute.xlu1 %2032 }
 0x748   : > { %v2035_v38 = vadd.f32 %v2033_v39, %v2025_v28 }
 0x74a   : > { %2398 = vtanh.f32 %v2035_v38 }
 0x757   : > { %v2399_v61 = vpop.eup %2398 }
 0x758   : > { %2038 = vrot.lane.b32.xlu0 %v2399_v61, %s2413_s30 }
 0x75c   : > { %2048 = vrot.lane.b32.xlu0 %v2035_v38, %s2415_s22 }
 0x7ca   : > { %v2039_v62 = vpop.permute.xlu0 %2038 }
 0x7cb   : > { %v2041_v63 = vmul.f32 %v2397_v15, %v2039_v62 }
 0x7cd   : > { %2043 = vrot.lane.b32.xlu1 %v2041_v63, %s2414_s18 }
 0x7ce   : > { %v2049_v54 = vpop.permute.xlu0 %2048 }
 0x7cf   : > { %2051 = vst.msk [vmem:[#allocation3] sm:$0xff] %vm460_vm2, %v2049_v54 }
 0x83f   : > { %v2044_v17 = vpop.permute.xlu1 %2043 }
 0x840   : > { %2046 = vst.msk [vmem:[#allocation2] sm:$0xff] %vm460_vm2, %v2044_v17  ;;  %2052 = vst.msk [vmem:[%s417_s27] sm:$0xff] %vm460_vm2, %v2044_v17 }
 0x841 PF: > { %s25_s23 = sadd.s32 1, %s2407_s23  }
 0x842   : > { %p22_p5 = scmp.ge.s32.totalorder %s25_s23, 9  }
 0x844   :  { %24 = sbr.rel (!%p22_p5) target bundleno = 3 (0x3), region = 110 }

// kernel: decoder_rnn_forward.3
= control target key start
LH: loop header
LB: loop body
LE: loop exit
PB: predicated region body
PF: predicated region fallthrough
CT: control target
= control target key end

     0   :  { %vm41_vm0 = vcmask 261120   ;;  %s479_s1 = inlined_call_operand.vmem [shape: f32[32,128], index: 1, kind: input, shape index: {}]   ;;  %s480_s0 = inlined_call_operand.vmem [shape: f32[128,32], index: 0, kind: input, shape index: {}]   ;;  %s481_s2 = inlined_call_operand.vmem [shape: f32[1,128], index: 2, kind: input, shape index: {}]   ;;  %s482_s3 = inlined_call_operand.vmem [shape: f32[128,128], index: 3, kind: output, shape index: {}]  }
   0x1   :  { %v33_v0 = vld [vmem:[%s479_s1 + $0x18] sm:$0xff]  ;;  %v32_v1 = vld [vmem:[%s479_s1 + $0x10] sm:$0xff]  ;;  %v31_v2 = vld [vmem:[%s479_s1 + $0x8] sm:$0xff] }
   0x2   :  { %292 = vmatprep.subr.mxu0 %v33_v0  ;;  %324 = vmatprep.subr.mxu1 %v33_v0  ;;  %v30_v3 = vld [vmem:[%s479_s1] sm:$0xff]  ;;  %v15_v6 = vld [vmem:[%s480_s0 + $0x8] sm:$0xff]  ;;  %v16_v8 = vld [vmem:[%s480_s0 + $0x10] sm:$0xff] }
   0x3   :  { %293 = vmatpush3.msra.mxu0 %v33_v0  ;;  %328 = vmatpush3.msra.mxu1 %v33_v0  ;;  %v14_v4 = vld [vmem:[%s480_s0] sm:$0xff]  ;;  %v23_v7 = vld [vmem:[%s480_s0 + $0x48] sm:$0xff]  ;;  %v24_v9 = vld [vmem:[%s480_s0 + $0x50] sm:$0xff] }
   0x4   :  { %294 = vmatprep.subr.mxu0 %v32_v1  ;;  %325 = vmatprep.subr.mxu1 %v32_v1  ;;  %v22_v5 = vld [vmem:[%s480_s0 + $0x40] sm:$0xff]  ;;  %v17_v10 = vld [vmem:[%s480_s0 + $0x18] sm:$0xff]  ;;  %v19_v14 = vld [vmem:[%s480_s0 + $0x28] sm:$0xff] }
   0x5   :  { %295 = vmatpush3.msra.mxu0 %v32_v1  ;;  %329 = vmatpush3.msra.mxu1 %v32_v1  ;;  %v25_v11 = vld [vmem:[%s480_s0 + $0x58] sm:$0xff]  ;;  %v18_v12 = vld [vmem:[%s480_s0 + $0x20] sm:$0xff]  ;;  %v27_v15 = vld [vmem:[%s480_s0 + $0x68] sm:$0xff] }
   0x6   :  { %296 = vmatprep.subr.mxu0 %v31_v2  ;;  %326 = vmatprep.subr.mxu1 %v31_v2  ;;  %v26_v13 = vld [vmem:[%s480_s0 + $0x60] sm:$0xff]  ;;  %v20_v16 = vld [vmem:[%s480_s0 + $0x30] sm:$0xff]  ;;  %v21_v18 = vld [vmem:[%s480_s0 + $0x38] sm:$0xff] }
   0x7   :  { %297 = vmatpush3.msra.mxu0 %v31_v2  ;;  %330 = vmatpush3.msra.mxu1 %v31_v2  ;;  %v28_v17 = vld [vmem:[%s480_s0 + $0x70] sm:$0xff]  ;;  %v29_v19 = vld [vmem:[%s480_s0 + $0x78] sm:$0xff]  ;;  %v255_v20 = vld [vmem:[%s481_s2] ss:$0 sm:$0xff] }
   0x8   :  { %298 = vmatprep.subr.mxu0 %v30_v3  ;;  %327 = vmatprep.subr.mxu1 %v30_v3 }
   0x9   :  { %299 = vmatpush3.msra.mxu0 %v30_v3  ;;  %331 = vmatpush3.msra.mxu1 %v30_v3 }
   0xa   :  { %300 = vmatprep.mubr.msk.f32.mxu0 %vm41_vm0, %v14_v4  ;;  %312 = vmatprep.mubr.msk.f32.mxu1 %vm41_vm0, %v22_v5 }
   0xb   :  { %301 = vmatmul.mubr.msk.f32.vlgmr.msra.gmra.mxu0 %vm41_vm0, %v15_v6  ;;  %313 = vmatmul.mubr.msk.f32.vlgmr.msra.gmra.mxu1 %vm41_vm0, %v23_v7 }
   0xc   :  { %303 = vmatprep.mubr.msk.f32.mxu0 %vm41_vm0, %v16_v8  ;;  %315 = vmatprep.mubr.msk.f32.mxu1 %vm41_vm0, %v24_v9 }
   0xf   :  { %304 = vmatmul.mubr.msk.f32.gmra.mxu0 %vm41_vm0, %v17_v10  ;;  %316 = vmatmul.mubr.msk.f32.gmra.mxu1 %vm41_vm0, %v25_v11 }
  0x10   :  { %306 = vmatprep.mubr.msk.f32.mxu0 %vm41_vm0, %v18_v12  ;;  %318 = vmatprep.mubr.msk.f32.mxu1 %vm41_vm0, %v26_v13 }
  0x13   :  { %307 = vmatmul.mubr.msk.f32.gmra.mxu0 %vm41_vm0, %v19_v14  ;;  %319 = vmatmul.mubr.msk.f32.gmra.mxu1 %vm41_vm0, %v27_v15 }
  0x14   :  { %309 = vmatprep.mubr.msk.f32.mxu0 %vm41_vm0, %v20_v16  ;;  %321 = vmatprep.mubr.msk.f32.mxu1 %vm41_vm0, %v28_v17 }
  0x17   :  { %310 = vmatmul.mubr.msk.f32.gmra.mxu0 %vm41_vm0, %v21_v18  ;;  %322 = vmatmul.mubr.msk.f32.gmra.mxu1 %vm41_vm0, %v29_v19 }
  0xcb   :  { %v302_v21 = vpop.f32.mrf.mxu0  ;;  %v314_v22 = vpop.f32.mrf.mxu1 }
  0xcc   :  { %v162_v23 = vadd.f32 %v302_v21, %v255_v20  ;;  %v202_v24 = vadd.f32 %v314_v22, %v255_v20 }
  0xcd   :  { %v156_v25 = vpop.f32.mrf.mxu0  ;;  %v196_v26 = vpop.f32.mrf.mxu1 }
  0xce   :  { %236 = vst [vmem:[%s482_s3 + $0x8] sm:$0xff] %v162_v23  ;;  %244 = vst [vmem:[%s482_s3 + $0x48] sm:$0xff] %v202_v24  ;;  %v157_v27 = vadd.f32 %v255_v20, %v156_v25  ;;  %v197_v28 = vadd.f32 %v255_v20, %v196_v26 }
  0xcf   :  { %v305_v29 = vpop.f32.mrf.mxu0  ;;  %v317_v30 = vpop.f32.mrf.mxu1 }
  0xd0   :  { %235 = vst [vmem:[%s482_s3] sm:$0xff] %v157_v27  ;;  %243 = vst [vmem:[%s482_s3 + $0x40] sm:$0xff] %v197_v28  ;;  %v172_v31 = vadd.f32 %v305_v29, %v255_v20  ;;  %v212_v32 = vadd.f32 %v317_v30, %v255_v20 }
  0xd1   :  { %v166_v33 = vpop.f32.mrf.mxu0  ;;  %v206_v34 = vpop.f32.mrf.mxu1 }
  0xd2   :  { %238 = vst [vmem:[%s482_s3 + $0x18] sm:$0xff] %v172_v31  ;;  %246 = vst [vmem:[%s482_s3 + $0x58] sm:$0xff] %v212_v32  ;;  %v167_v35 = vadd.f32 %v255_v20, %v166_v33  ;;  %v207_v36 = vadd.f32 %v255_v20, %v206_v34 }
  0xd3   :  { %v308_v37 = vpop.f32.mrf.mxu0  ;;  %v320_v38 = vpop.f32.mrf.mxu1 }
  0xd4   :  { %237 = vst [vmem:[%s482_s3 + $0x10] sm:$0xff] %v167_v35  ;;  %245 = vst [vmem:[%s482_s3 + $0x50] sm:$0xff] %v207_v36  ;;  %v182_v39 = vadd.f32 %v308_v37, %v255_v20  ;;  %v222_v40 = vadd.f32 %v320_v38, %v255_v20 }
  0xd5   :  { %v176_v41 = vpop.f32.mrf.mxu0  ;;  %v216_v42 = vpop.f32.mrf.mxu1 }
  0xd6   :  { %240 = vst [vmem:[%s482_s3 + $0x28] sm:$0xff] %v182_v39  ;;  %248 = vst [vmem:[%s482_s3 + $0x68] sm:$0xff] %v222_v40  ;;  %v177_v43 = vadd.f32 %v255_v20, %v176_v41  ;;  %v217_v44 = vadd.f32 %v255_v20, %v216_v42 }
  0xd7   :  { %v311_v45 = vpop.f32.mrf.mxu0  ;;  %v323_v46 = vpop.f32.mrf.mxu1 }
  0xd8   :  { %239 = vst [vmem:[%s482_s3 + $0x20] sm:$0xff] %v177_v43  ;;  %247 = vst [vmem:[%s482_s3 + $0x60] sm:$0xff] %v217_v44  ;;  %v192_v47 = vadd.f32 %v311_v45, %v255_v20  ;;  %v232_v48 = vadd.f32 %v323_v46, %v255_v20 }
  0xd9   :  { %v186_v49 = vpop.f32.mrf.mxu0  ;;  %v226_v50 = vpop.f32.mrf.mxu1 }
  0xda   :  { %242 = vst [vmem:[%s482_s3 + $0x38] sm:$0xff] %v192_v47  ;;  %250 = vst [vmem:[%s482_s3 + $0x78] sm:$0xff] %v232_v48  ;;  %v187_v51 = vadd.f32 %v255_v20, %v186_v49  ;;  %v227_v52 = vadd.f32 %v255_v20, %v226_v50 }
  0xdc   :  { %241 = vst [vmem:[%s482_s3 + $0x30] sm:$0xff] %v187_v51  ;;  %249 = vst [vmem:[%s482_s3 + $0x70] sm:$0xff] %v227_v52 }

// kernel: decoder_rnn_forward.2
= control target key start
LH: loop header
LB: loop body
LE: loop exit
PB: predicated region body
PF: predicated region fallthrough
CT: control target
= control target key end

     0   :  { %s1915_s23 = smov 0   ;;  %s2580_s0 = inlined_call_operand.vmem [shape: f32[8,16,32], index: 0, kind: input, shape index: {}]   ;;  %s2581_s1 = inlined_call_operand.vmem [shape: f32[8,16,32], index: 1, kind: input, shape index: {}]   ;;  %s2582_s2 = inlined_call_operand.vmem [shape: f32[7,8,32], index: 2, kind: input, shape index: {}]   ;;  %s2583_s3 = inlined_call_operand.vmem [shape: f32[8,32], index: 3, kind: input, shape index: {}]   ;;  %s2584_s4 = inlined_call_operand.vmem [shape: f32[8,32], index: 4, kind: input, shape index: {}]   ;;  %s2585_s5 = inlined_call_operand.vmem [shape: f32[32,32], index: 5, kind: input, shape index: {}]   ;;  %s2586_s6 = inlined_call_operand.vmem [shape: f32[1,32], index: 6, kind: input, shape index: {}]   ;;  %s2587_s7 = inlined_call_operand.vmem [shape: f32[1,32], index: 7, kind: input, shape index: {}]   ;;  %s2588_s8 = inlined_call_operand.<no memory space> [shape: f32[1,1], index: 8, kind: input, shape index: {}]   ;;  %s2589_s9 = inlined_call_operand.vmem [shape: f32[96,128], index: 9, kind: input, shape index: {}]   ;;  %s2590_s10 = inlined_call_operand.vmem [shape: f32[1,128], index: 10, kind: input, shape index: {}]   ;;  %s2591_s11 = inlined_call_operand.vmem [shape: f32[7,8,32], index: 11, kind: output, shape index: {0}]   ;;  %s2592_s12 = inlined_call_operand.vmem [shape: f32[7,8,16], index: 12, kind: output, shape index: {1}]  }
   0x1   :  { %v18_v0 = vstv %s2588_s8 }
   0x2   :  { %19 = vst [vmem:[#allocation5] sm:$0x1] %v18_v0 }
   0x3 LB: > { %s1667_s24 = sadd.s32 4294967295, %s1838_s23   ;;  %p1671_p0 = scmp.ge.s32.totalorder %s1838_s23, 1  ;;  %s1838_s23 = sphi %s1915_s23, %s25_s23  }
   0x4   : > { %p366_p1 = scmp.lt.s32.totalorder %s1838_s23, 8 }
   0x6   : > { %p367_p2 = pnand %p1671_p0, %p366_p1 }
   0x7   : > { %p410_p3 = scmp.lt.s32.totalorder (!%p367_p2), %s1667_s24, 6  ;;  %p1675_p4 = scmp.ne.s32.totalorder (!%p367_p2), %s1667_s24, 0 }
   0x8   : > { %370 = sbr.rel (%p367_p2) target bundleno = 1932 (0x78c), region = 64 }
   0xd   : > { %v1926_v1 = vld [vmem:[%s2580_s0] sm:$0xff]  ;;  %v1931_v2 = vld [vmem:[%s2580_s0 + $0x8] sm:$0xff]  ;;  %v1936_v3 = vld [vmem:[%s2580_s0 + $0x10] sm:$0xff]  ;;  %s411_s18 = scalar_select %p410_p3, %s1667_s24, 6 }
   0xe   : > { %v1941_v4 = vld [vmem:[%s2580_s0 + $0x18] sm:$0xff]  ;;  %v1946_v5 = vld [vmem:[%s2580_s0 + $0x20] sm:$0xff]  ;;  %v1951_v6 = vld [vmem:[%s2580_s0 + $0x28] sm:$0xff]  ;;  %441 = sbr.rel (%p1675_p4) target bundleno = 22 (0x16), region = 68 }
   0xf   : > { %v1956_v7 = vld [vmem:[%s2580_s0 + $0x30] sm:$0xff]  ;;  %v1961_v8 = vld [vmem:[%s2580_s0 + $0x38] sm:$0xff]  ;;  %v1966_v9 = vld [vmem:[%s2580_s0 + $0x40] sm:$0xff]  ;;  %s1983_s14 = sshll.u32 %s411_s18, 3 }
  0x10   : > { %v1971_v10 = vld [vmem:[%s2580_s0 + $0x48] sm:$0xff]  ;;  %v1976_v11 = vld [vmem:[%s2580_s0 + $0x50] sm:$0xff]  ;;  %v1981_v12 = vld [vmem:[%s2580_s0 + $0x58] sm:$0xff]  ;;  %s413_s25 = scalar_lea.vmem %s2582_s2, %s1983_s14  ;;  %s417_s27 = scalar_lea.vmem %s2591_s11, %s1983_s14 }
  0x11   : > { %v1988_v13 = vld [vmem:[%s2580_s0 + $0x60] sm:$0xff]  ;;  %v1993_v14 = vld [vmem:[%s2580_s0 + $0x68] sm:$0xff]  ;;  %v1998_v15 = vld [vmem:[%s2580_s0 + $0x70] sm:$0xff]  ;;  %s421_s15 = scalar_lea.vmem %s2592_s12, %s1983_s14 }
  0x12   : > { %v2011_v16 = vld [vmem:[%s2580_s0 + $0x78] sm:$0xff] }
  0x13   : > { %v442_v17 = vld [vmem:[%s2583_s3] sm:$0xff]  ;;  %vm443_vm0 = vcmask 261120  }
  0x14   : > { %v445_v18 = vld [vmem:[%s2584_s4] sm:$0xff]  ;;  %444 = vst.msk [vmem:[#allocation2] sm:$0xff] %vm443_vm0, %v442_v17 }
  0x15   : > { %446 = vst.msk [vmem:[#allocation3] sm:$0xff] %vm443_vm0, %v445_v18 }
  0x16 PF: > { %v452_v19 = vld [vmem:[%s2585_s5 + $0x18] sm:$0xff]  ;;  %v2593_v20 = vmov 0.0   ;;  %v451_v21 = vld [vmem:[%s2585_s5 + $0x10] sm:$0xff]  ;;  %vm1841_vm1 = vmmov 0   ;;  %v450_v22 = vld [vmem:[%s2585_s5 + $0x8] sm:$0xff]  ;;  %vm460_vm2 = vcmask 261120   ;;  %v555_v28 = vlaneseq }
  0x17   : > { %1703 = vmatprep.subr.mxu0 %v2593_v20  ;;  %1711 = vmatprep.mubr.msk.f32.mxu0 %vm1841_vm1, %v2593_v20  ;;  %v449_v23 = vld [vmem:[%s2585_s5] sm:$0xff]  ;;  %v1842_v25 = vmov 0   ;;  %v1843_v26 = vmov 1966171168   ;;  %v535_v46 = vld [vmem:[%s2581_s1 + $0x8] sm:$0xff]  ;;  %v536_v48 = vld [vmem:[%s2581_s1 + $0x10] sm:$0xff] }
  0x18   : > { %1704 = vmatpush3.msra.mxu0 %v452_v19  ;;  %1714 = vmatprep.subr.mxu1 %v2593_v20  ;;  %v553_v27 = vunpack.c.l.s4 %v1843_v26  ;;  %v2047_v30 = vshrl.u32 %v555_v28, 7  ;;  %v1676_v31 = vld [vmem:[%s2586_s6] ss:$0 sm:$0xff]  ;;  %v537_v49 = vld [vmem:[%s2581_s1 + $0x18] sm:$0xff]  ;;  %v539_v56 = vld [vmem:[%s2581_s1 + $0x28] sm:$0xff]  ;;  %vm796_vm3 = vcmask 130112  }
  0x19   : > { %1705 = vmatprep.subr.mxu0 %v2593_v20  ;;  %1738 = vmatprep.mubr.msk.f32.mxu1 %vm1841_vm1, %v2593_v20  ;;  %v534_v44 = vld [vmem:[%s2581_s1] sm:$0xff]  ;;  %v543_v0 = vld [vmem:[%s2581_s1 + $0x48] sm:$0xff]  ;;  %vm861_vm4 = vcmask 1041409   ;;  %vm863_vm5 = vcmask 1042434   ;;  %vm865_vm6 = vcmask 1043459   ;;  %vm867_vm7 = vcmask 1044484  }
  0x1a   : > { %1706 = vmatpush3.msra.mxu0 %v451_v21  ;;  %1756 = vset.pattern.permute.xlu0 %v1842_v25  ;;  %v554_v29 = vunpack.c.0.s8 %v553_v27  ;;  %v2054_v38 = vsub.s32 0, %v2047_v30  ;;  %v538_v53 = vld [vmem:[%s2581_s1 + $0x20] sm:$0xff]  ;;  %v540_v21 = vld [vmem:[%s2581_s1 + $0x30] sm:$0xff]  ;;  %vm869_vm8 = vcmask 1045509   ;;  %vm871_vm9 = vcmask 1046534   ;;  %s1844_s28 = smov 64  }
  0x1b   : > { %1707 = vmatprep.subr.mxu0 %v2593_v20  ;;  %v2041_v24 = vld [vmem:[#allocation2] sm:$0xff]  ;;  %1757 = vset.pattern.permute.xlu1 %v1842_v25  ;;  %vm873_vm10 = vcmask 1047559   ;;  %vm876_vm11 = vcmask 130048   ;;  %s1845_s18 = smov 32   ;;  %vm1362_vm12 = vcmask 523520   ;;  %vm1367_vm13 = vcmask 785920  }
  0x1c   : > { %1708 = vmatpush3.msra.mxu0 %v450_v22  ;;  %v557_v32 = vsub.s32 %v554_v29, %v2047_v30  ;;  %v542_v62 = vld [vmem:[%s2581_s1 + $0x40] sm:$0xff]  ;;  %v544_v29 = vld [vmem:[%s2581_s1 + $0x50] sm:$0xff]  ;;  %vm1389_vm14 = vcmask 785408   ;;  %s1846_s26 = smov 96  }
  0x1d   : > { %1709 = vmatprep.subr.mxu0 %v2593_v20 }
  0x1e   : > { %1710 = vmatpush3.msra.mxu0 %v449_v23  ;;  %v541_v23 = vld [vmem:[%s2581_s1 + $0x38] sm:$0xff] }
  0x1f   : > { %1712 = vmatmul.mubr.msk.f32.vlgmr.msra.gmra.mxu0 %vm460_vm2, %v2041_v24 }
  0xdf   : > { %v530_v33 = vpop.f32.mrf.mxu0 }
  0xe0   : > { %v531_v34 = vadd.f32 %v1676_v31, %v530_v33 }
  0xe1   : > { %v1713_v35 = vpop.f32.mrf.mxu0 }
  0xe2   : > { %v551_v36 = vcombine.high %v531_v34, %v531_v34  ;;  %v558_v37 = vrot.slane %v531_v34, %v557_v32  ;;  %v2102_v35 = vld [vmem:[%s2587_s7] ss:$0 sm:$0xff] }
  0xe4   : > { %v566_v39 = vcombine.high %v558_v37, %v558_v37  ;;  %v574_v40 = vrot.slane %v558_v37, %v557_v32  ;;  %v565_v41 = vrot.slane %v551_v36, %v557_v32  ;;  %v546_v36 = vld [vmem:[%s2581_s1 + $0x60] sm:$0xff] }
  0xe6   : > { %v588_v42 = vrot.slane %v566_v39, %v557_v32  ;;  %v596_v43 = vcombine.high %v574_v40, %v574_v40  ;;  %v603_v45 = vrot.slane %v574_v40, %v2054_v38  ;;  %v581_v50 = vrot.slane %v565_v41, %v557_v32 }
  0xe7   : > { %v567_v57 = vcombine.high %v565_v41, %v565_v41 }
  0xe8   : > { %v607_v47 = vrot.slane %v588_v42, %v2054_v38  ;;  %v611_v51 = vrot.slane %v596_v43, %v2054_v38  ;;  %v640_v52 = vadd.f32 %v603_v45, %v534_v44  ;;  %v641_v54 = vadd.f32 %v603_v45, %v535_v46  ;;  %v547_v44 = vld [vmem:[%s2581_s1 + $0x68] sm:$0xff] }
  0xe9   : > { %v598_v59 = vcombine.high %v588_v42, %v588_v42  ;;  %v619_v60 = vrot.slane %v581_v50, %v2054_v38  ;;  %v595_v17 = vrot.slane %v567_v57, %v557_v32  ;;  %v597_v25 = vcombine.high %v581_v50, %v581_v50  ;;  %v545_v32 = vld [vmem:[%s2581_s1 + $0x58] sm:$0xff] }
  0xea   : > { %v642_v55 = vadd.f32 %v607_v47, %v536_v48  ;;  %v643_v58 = vadd.f32 %v607_v47, %v537_v49  ;;  %v644_v61 = vadd.f32 %v611_v51, %v538_v53  ;;  %1758 = vtanh.f32 %v640_v52  ;;  %v548_v52 = vld [vmem:[%s2581_s1 + $0x70] sm:$0xff]  ;;  %v549_v57 = vld [vmem:[%s2581_s1 + $0x78] sm:$0xff] }
  0xeb   : > { %1760 = vtanh.f32 %v641_v54  ;;  %v645_v63 = vadd.f32 %v611_v51, %v539_v56  ;;  %v615_v18 = vrot.slane %v598_v59, %v2054_v38  ;;  %v648_v19 = vadd.f32 %v619_v60, %v542_v62 }
  0xec   : > { %1762 = vtanh.f32 %v642_v55  ;;  %v649_v22 = vadd.f32 %v619_v60, %v543_v0  ;;  %v623_v26 = vrot.slane %v595_v17, %v2054_v38  ;;  %v599_v33 = vcombine.high %v595_v17, %v595_v17 }
  0xed   : > { %1764 = vtanh.f32 %v643_v58  ;;  %v646_v27 = vadd.f32 %v615_v18, %v540_v21  ;;  %v647_v31 = vadd.f32 %v615_v18, %v541_v23  ;;  %v627_v34 = vrot.slane %v597_v25, %v2054_v38 }
  0xee   : > { %1766 = vtanh.f32 %v644_v61  ;;  %v650_v37 = vadd.f32 %v623_v26, %v544_v29  ;;  %v651_v41 = vadd.f32 %v623_v26, %v545_v32  ;;  %v631_v45 = vrot.slane %v599_v33, %v2054_v38 }
  0xef   : > { %1768 = vtanh.f32 %v645_v63  ;;  %v652_v46 = vadd.f32 %v627_v34, %v546_v36  ;;  %v653_v53 = vadd.f32 %v627_v34, %v547_v44 }
  0xf0   : > { %1770 = vtanh.f32 %v648_v19  ;;  %v654_v58 = vadd.f32 %v631_v45, %v548_v52  ;;  %v655_v62 = vadd.f32 %v631_v45, %v549_v57 }
  0xf1   : > { %1772 = vtanh.f32 %v649_v22 }
  0xf2   : > { %1774 = vtanh.f32 %v646_v27 }
  0xf3   : > { %1776 = vtanh.f32 %v647_v31 }
  0xf4   : > { %1778 = vtanh.f32 %v650_v37 }
  0xf5   : > { %1780 = vtanh.f32 %v651_v41 }
  0xf6   : > { %1782 = vtanh.f32 %v652_v46 }
  0xf7   : > { %v1759_v39 = vpop.eup %1758  ;;  %1784 = vtanh.f32 %v653_v53 }
  0xf8   : > { %v1761_v40 = vpop.eup %1760  ;;  %v679_v42 = vmul.f32 %v1759_v39, %v2102_v35  ;;  %1786 = vtanh.f32 %v654_v58 }
  0xf9   : > { %v1763_v43 = vpop.eup %1762  ;;  %v680_v50 = vmul.f32 %v1761_v40, %v2102_v35  ;;  %1788 = vtanh.f32 %v655_v62 }
  0xfa   : > { %v1765_v47 = vpop.eup %1764  ;;  %v695_v48 = vsel %vm460_vm2, %v679_v42, 0.0  ;;  %v681_v49 = vmul.f32 %v1763_v43, %v2102_v35 }
  0xfb   : > { %v1767_v51 = vpop.eup %1766  ;;  %696 = vadd.xlane.f32.xlu0 %v695_v48  ;;  %v682_v55 = vmul.f32 %v1765_v47, %v2102_v35  ;;  %v698_v59 = vsel %vm460_vm2, %v680_v50, 0.0 }
  0xfc   : > { %v701_v54 = vsel %vm460_vm2, %v681_v49, 0.0  ;;  %v1769_v56 = vpop.eup %1768  ;;  %v683_v60 = vmul.f32 %v1767_v51, %v2102_v35 }
  0xfd   : > { %702 = vadd.xlane.f32.xlu1 %v701_v54  ;;  %v1771_v61 = vpop.eup %1770  ;;  %v704_v63 = vsel %vm460_vm2, %v682_v55, 0.0  ;;  %v684_v0 = vmul.f32 %v1769_v56, %v2102_v35  ;;  %v1679_v54 = vld [vmem:[#allocation5] ss:$0 sm:$0xff] }
  0xfe   : > { %v1773_v17 = vpop.eup %1772  ;;  %v707_v18 = vsel %vm460_vm2, %v683_v60, 0.0  ;;  %v687_v19 = vmul.f32 %v1771_v61, %v2102_v35 }
  0xff   : > { %699 = vadd.xlane.f32.xlu0 %v698_v59  ;;  %v1775_v21 = vpop.eup %1774  ;;  %v710_v22 = vsel %vm460_vm2, %v684_v0, 0.0  ;;  %v688_v23 = vmul.f32 %v1773_v17, %v2102_v35 }
 0x100   : > { %v1777_v25 = vpop.eup %1776  ;;  %v719_v26 = vsel %vm460_vm2, %v687_v19, 0.0  ;;  %v685_v27 = vmul.f32 %v1775_v21, %v2102_v35 }
 0x101   : > { %705 = vadd.xlane.f32.xlu1 %v704_v63  ;;  %v1779_v29 = vpop.eup %1778  ;;  %v722_v31 = vsel %vm460_vm2, %v688_v23, 0.0  ;;  %v686_v32 = vmul.f32 %v1777_v25, %v2102_v35 }
 0x102   : > { %v1781_v33 = vpop.eup %1780  ;;  %v713_v34 = vsel %vm460_vm2, %v685_v27, 0.0  ;;  %v689_v36 = vmul.f32 %v1779_v29, %v2102_v35 }
 0x103   : > { %708 = vadd.xlane.f32.xlu0 %v707_v18  ;;  %v1783_v37 = vpop.eup %1782  ;;  %v716_v39 = vsel %vm460_vm2, %v686_v32, 0.0  ;;  %v690_v40 = vmul.f32 %v1781_v33, %v2102_v35  ;;  %v786_v18 = vand.u32 127, %v555_v28 }
 0x104   : > { %v1785_v41 = vpop.eup %1784  ;;  %v725_v42 = vsel %vm460_vm2, %v689_v36, 0.0  ;;  %v691_v43 = vmul.f32 %v1783_v37, %v2102_v35 }
 0x105   : > { %711 = vadd.xlane.f32.xlu1 %v710_v22  ;;  %v1787_v44 = vpop.eup %1786  ;;  %v728_v45 = vsel %vm460_vm2, %v690_v40, 0.0  ;;  %v692_v46 = vmul.f32 %v1785_v41, %v2102_v35  ;;  %v791_v21 = vadd.s32 4294967288, %v786_v18  ;;  %v2151_v25 = vsub.s32 %v786_v18, %v2047_v30 }
 0x106   : > { %v1789_v47 = vpop.eup %1788  ;;  %v731_v48 = vsel %vm460_vm2, %v691_v43, 0.0  ;;  %v693_v49 = vmul.f32 %v1787_v44, %v2102_v35 }
 0x107   : > { %720 = vadd.xlane.f32.xlu0 %v719_v26  ;;  %v734_v50 = vsel %vm460_vm2, %v692_v46, 0.0  ;;  %v694_v51 = vmul.f32 %v1789_v47, %v2102_v35  ;;  %v2154_v26 = vsub.s32 %v791_v21, %v2047_v30 }
 0x108   : > { %v737_v52 = vsel %vm460_vm2, %v693_v49, 0.0 }
 0x109   : > { %723 = vadd.xlane.f32.xlu1 %v722_v31  ;;  %v740_v53 = vsel %vm460_vm2, %v694_v51, 0.0 }
 0x10b   : > { %714 = vadd.xlane.f32.xlu0 %v713_v34 }
 0x10d   : > { %717 = vadd.xlane.f32.xlu1 %v716_v39 }
 0x10f   : > { %726 = vadd.xlane.f32.xlu0 %v725_v42 }
 0x111   : > { %729 = vadd.xlane.f32.xlu1 %v728_v45 }
 0x113   : > { %732 = vadd.xlane.f32.xlu0 %v731_v48 }
 0x115   : > { %735 = vadd.xlane.f32.xlu1 %v734_v50 }
 0x117   : > { %738 = vadd.xlane.f32.xlu0 %v737_v52 }
 0x119   : > { %741 = vadd.xlane.f32.xlu1 %v740_v53 }
 0x12d   : > { %750 = vperm.xlu0 %1756, %v1679_v54  }
 0x184   : > { %v697_v55 = vpop.xlane.xlu0 %696 }
 0x186   : > { %v703_v56 = vpop.xlane.xlu1 %702 }
 0x188   : > { %v700_v57 = vpop.xlane.xlu0 %699 }
 0x18a   : > { %v706_v58 = vpop.xlane.xlu1 %705 }
 0x18c   : > { %v709_v59 = vpop.xlane.xlu0 %708 }
 0x18e   : > { %v712_v60 = vpop.xlane.xlu1 %711 }
 0x190   : > { %v721_v61 = vpop.xlane.xlu0 %720 }
 0x192   : > { %v724_v63 = vpop.xlane.xlu1 %723 }
 0x194   : > { %v715_v62 = vpop.xlane.xlu0 %714 }
 0x196   : > { %v718_v35 = vpop.xlane.xlu1 %717 }
 0x198   : > { %v727_v0 = vpop.xlane.xlu0 %726 }
 0x19a   : > { %v730_v19 = vpop.xlane.xlu1 %729 }
 0x19c   : > { %v733_v17 = vpop.xlane.xlu0 %732 }
 0x19e   : > { %v736_v23 = vpop.xlane.xlu1 %735 }
 0x1a0   : > { %v739_v22 = vpop.xlane.xlu0 %738 }
 0x1a2   : > { %v742_v45 = vpop.xlane.xlu1 %741 }
 0x1a8   : > { %v751_v27 = vpop.permute.xlu0 %750 }
 0x1a9   : > { %v2156_v29 = vadd.f32 %v751_v27, %v697_v55  ;;  %v2158_v31 = vadd.f32 %v751_v27, %v700_v57  ;;  %v2160_v32 = vadd.f32 %v751_v27, %v703_v56  ;;  %v2162_v33 = vadd.f32 %v751_v27, %v706_v58 }
 0x1aa   : > { %v2164_v28 = vadd.f32 %v751_v27, %v709_v59  ;;  %v2166_v34 = vadd.f32 %v751_v27, %v712_v60  ;;  %v2168_v36 = vadd.f32 %v751_v27, %v715_v62  ;;  %v2170_v37 = vadd.f32 %v751_v27, %v718_v35 }
 0x1ab   : > { %v2172_v39 = vadd.f32 %v751_v27, %v721_v61  ;;  %v2174_v40 = vadd.f32 %v751_v27, %v724_v63  ;;  %v2176_v41 = vadd.f32 %v751_v27, %v727_v0  ;;  %v2178_v42 = vadd.f32 %v751_v27, %v730_v19 }
 0x1ac   : > { %v2180_v43 = vadd.f32 %v751_v27, %v733_v17  ;;  %v2182_v44 = vadd.f32 %v751_v27, %v736_v23  ;;  %v790_v46 = vrot.slane %v2156_v29, %v2151_v25  ;;  %v795_v47 = vrot.slane %v2158_v31, %v2154_v26 }
 0x1ad   : > { %v801_v48 = vrot.slane %v2160_v32, %v2151_v25  ;;  %v805_v49 = vrot.slane %v2162_v33, %v2154_v26  ;;  %v2192_v50 = vadd.f32 %v751_v27, %v739_v22  ;;  %v2194_v51 = vadd.f32 %v751_v27, %v742_v45 }
 0x1ae   : > { %v810_v52 = vrot.slane %v2164_v28, %v2151_v25  ;;  %v814_v53 = vrot.slane %v2166_v34, %v2154_v26  ;;  %v797_v54 = vsel %vm796_vm3, %v795_v47, %v790_v46  ;;  %v819_v56 = vrot.slane %v2168_v36, %v2151_v25 }
 0x1af   : > { %v806_v55 = vsel %vm796_vm3, %v805_v49, %v801_v48  ;;  %v823_v57 = vrot.slane %v2170_v37, %v2154_v26  ;;  %v828_v59 = vrot.slane %v2172_v39, %v2151_v25  ;;  %v832_v60 = vrot.slane %v2174_v40, %v2154_v26 }
 0x1b0   : > { %v815_v58 = vsel %vm796_vm3, %v814_v53, %v810_v52  ;;  %v837_v61 = vrot.slane %v2176_v41, %v2151_v25  ;;  %v841_v62 = vrot.slane %v2178_v42, %v2154_v26  ;;  %v846_v63 = vrot.slane %v2180_v43, %v2151_v25 }
 0x1b1   : > { %v850_v0 = vrot.slane %v2182_v44, %v2154_v26  ;;  %v862_v35 = vsel %vm861_vm4, %v806_v55, %v797_v54  ;;  %v824_v17 = vsel %vm796_vm3, %v823_v57, %v819_v56  ;;  %v855_v18 = vrot.slane %v2192_v50, %v2151_v25 }
 0x1b2   : > { %v859_v19 = vrot.slane %v2194_v51, %v2154_v26  ;;  %v864_v21 = vsel %vm863_vm5, %v815_v58, %v862_v35  ;;  %v833_v22 = vsel %vm796_vm3, %v832_v60, %v828_v59  ;;  %v842_v27 = vsel %vm796_vm3, %v841_v62, %v837_v61 }
 0x1b3   : > { %v866_v23 = vsel %vm865_vm6, %v824_v17, %v864_v21  ;;  %v851_v46 = vsel %vm796_vm3, %v850_v0, %v846_v63  ;;  %v2597_v54 = vsub.s32 3, %v2047_v30  ;;  %v887_v56 = vsub.s32 1, %v2047_v30 }
 0x1b4   : > { %v868_v45 = vsel %vm867_vm7, %v833_v22, %v866_v23  ;;  %v860_v48 = vsel %vm796_vm3, %v859_v19, %v855_v18  ;;  %v899_v59 = vsub.s32 4, %v2047_v30  ;;  %v2596_v0 = vsub.s32 5, %v2047_v30 }
 0x1b5   : > { %v870_v47 = vsel %vm869_vm8, %v842_v27, %v868_v45  ;;  %v2595_v21 = vsub.s32 6, %v2047_v30 }
 0x1b6   : > { %v872_v49 = vsel %vm871_vm9, %v851_v46, %v870_v47  ;;  %v911_v46 = vsub.s32 7, %v2047_v30 }
 0x1b7   : > { %v874_v52 = vsel %vm873_vm10, %v860_v48, %v872_v49 }
 0x1b8   : > { %v877_v53 = vsel %vm876_vm11, %v874_v52, -inf }
 0x1b9   : > { %878 = vmax.xlane.f32.xlu1 %v877_v53 }
 0x242   : > { %v879_v55 = vpop.xlane.xlu1 %878 }
 0x243   : > { %v884_v57 = vrot.slane %v879_v55, %v2054_v38  ;;  %v896_v60 = vrot.slane %v879_v55, %v2597_v54  ;;  %v888_v61 = vrot.slane %v879_v55, %v887_v56  ;;  %v900_v35 = vrot.slane %v879_v55, %v899_v59 }
 0x244   : > { %v904_v22 = vrot.slane %v879_v55, %v2596_v0  ;;  %v912_v52 = vrot.slane %v879_v55, %v911_v46 }
 0x245   : > { %v921_v58 = vsub.f32 %v2156_v29, %v884_v57  ;;  %v922_v62 = vsub.f32 %v2158_v31, %v884_v57  ;;  %v928_v17 = vsub.f32 %v2170_v37, %v896_v60  ;;  %v2598_v29 = vsub.s32 2, %v2047_v30 }
 0x246   : > { %v923_v18 = vsub.f32 %v2160_v32, %v888_v61  ;;  %v930_v31 = vsub.f32 %v2174_v40, %v900_v35  ;;  %v924_v45 = vsub.f32 %v2162_v33, %v888_v61  ;;  %v908_v32 = vrot.slane %v879_v55, %v2595_v21 }
 0x247   : > { %v937_v63 = vmul.f32 1.442695, %v921_v58  ;;  %v939_v19 = vmul.f32 1.442695, %v922_v62  ;;  %v951_v23 = vmul.f32 1.442695, %v928_v17  ;;  %v892_v27 = vrot.slane %v879_v55, %v2598_v29 }
 0x248   : > { %v941_v37 = vmul.f32 1.442695, %v923_v18  ;;  %v932_v47 = vsub.f32 %v2178_v42, %v904_v22  ;;  %v955_v48 = vmul.f32 1.442695, %v930_v31  ;;  %v943_v40 = vmul.f32 1.442695, %v924_v45 }
 0x249   : > { %1790 = vpow2.f32 %v937_v63  ;;  %v925_v49 = vsub.f32 %v2164_v28, %v892_v27  ;;  %v934_v33 = vsub.f32 %v2182_v44, %v908_v32  ;;  %v926_v57 = vsub.f32 %v2166_v34, %v892_v27 }
 0x24a   : > { %1792 = vpow2.f32 %v939_v19  ;;  %v959_v53 = vmul.f32 1.442695, %v932_v47  ;;  %v936_v42 = vsub.f32 %v2194_v51, %v912_v52  ;;  %v927_v62 = vsub.f32 %v2168_v36, %v896_v60 }
 0x24b   : > { %1794 = vpow2.f32 %v951_v23  ;;  %v945_v58 = vmul.f32 1.442695, %v925_v49  ;;  %v963_v28 = vmul.f32 1.442695, %v934_v33  ;;  %v947_v55 = vmul.f32 1.442695, %v926_v57 }
 0x24c   : > { %1796 = vpow2.f32 %v941_v37  ;;  %v967_v34 = vmul.f32 1.442695, %v936_v42  ;;  %v929_v17 = vsub.f32 %v2172_v39, %v900_v35  ;;  %v949_v18 = vmul.f32 1.442695, %v927_v62 }
 0x24d   : > { %1798 = vpow2.f32 %v955_v48  ;;  %v931_v51 = vsub.f32 %v2176_v41, %v904_v22  ;;  %v933_v35 = vsub.f32 %v2180_v43, %v908_v32  ;;  %v935_v22 = vsub.f32 %v2192_v50, %v912_v52 }
 0x24e   : > { %1800 = vpow2.f32 %v943_v40  ;;  %v953_v60 = vmul.f32 1.442695, %v929_v17 }
 0x24f   : > { %1802 = vpow2.f32 %v959_v53  ;;  %v957_v23 = vmul.f32 1.442695, %v931_v51  ;;  %v961_v45 = vmul.f32 1.442695, %v933_v35  ;;  %v965_v32 = vmul.f32 1.442695, %v935_v22 }
 0x250   : > { %1804 = vpow2.f32 %v945_v58 }
 0x251   : > { %1806 = vpow2.f32 %v963_v28 }
 0x252   : > { %1808 = vpow2.f32 %v947_v55 }
 0x253   : > { %1810 = vpow2.f32 %v967_v34 }
 0x254   : > { %1812 = vpow2.f32 %v949_v18 }
 0x255   : > { %1814 = vpow2.f32 %v953_v60 }
 0x256   : > { %v2268_v61 = vpop.eup %1790  ;;  %1816 = vpow2.f32 %v957_v23 }
 0x257   : > { %986 = vperm.xlu1 %1757, %v2268_v61   ;;  %v2273_v63 = vpop.eup %1792  ;;  %1818 = vpow2.f32 %v961_v45 }
 0x258   : > { %v2276_v44 = vpop.eup %1794  ;;  %1820 = vpow2.f32 %v965_v32 }
 0x259   : > { %v2279_v19 = vpop.eup %1796  ;;  %1007 = vperm.xlu0 %1756, %v2276_v44  }
 0x25a   : > { %v2283_v36 = vpop.eup %1798 }
 0x25b   : > { %989 = vperm.xlu1 %1757, %v2273_v63   ;;  %v2286_v31 = vpop.eup %1800 }
 0x25c   : > { %v2290_v39 = vpop.eup %1802 }
 0x25d   : > { %1013 = vperm.xlu0 %1756, %v2283_v36   ;;  %v2293_v27 = vpop.eup %1804 }
 0x25e   : > { %v2297_v41 = vpop.eup %1806 }
 0x25f   : > { %992 = vperm.xlu1 %1757, %v2279_v19   ;;  %v2300_v37 = vpop.eup %1808 }
 0x260   : > { %v2304_v43 = vpop.eup %1810 }
 0x261   : > { %1019 = vperm.xlu0 %1756, %v2290_v39   ;;  %v2306_v47 = vpop.eup %1812 }
 0x262   : > { %v2310_v50 = vpop.eup %1814 }
 0x263   : > { %995 = vperm.xlu1 %1757, %v2286_v31   ;;  %v2313_v48 = vpop.eup %1816 }
 0x264   : > { %v2316_v49 = vpop.eup %1818 }
 0x265   : > { %1025 = vperm.xlu0 %1756, %v2297_v41   ;;  %v1821_v40 = vpop.eup %1820 }
 0x267   : > { %998 = vperm.xlu1 %1757, %v2293_v27  }
 0x269   : > { %1031 = vperm.xlu0 %1756, %v2304_v43  }
 0x26b   : > { %1001 = vperm.xlu1 %1757, %v2300_v37  }
 0x26f   : > { %1004 = vperm.xlu1 %1757, %v2306_v47  }
 0x273   : > { %1010 = vperm.xlu1 %1757, %v2310_v50  }
 0x277   : > { %1016 = vperm.xlu1 %1757, %v2313_v48  }
 0x27b   : > { %1022 = vperm.xlu1 %1757, %v2316_v49  }
 0x27f   : > { %1028 = vperm.xlu1 %1757, %v1821_v40  }
 0x2d2   : > { %v987_v52 = vpop.permute.xlu1 %986 }
 0x2d3   : > { %v1036_v0 = vrot.slane %v987_v52, %v2151_v25 }
 0x2d4   : > { %v1008_v58 = vpop.permute.xlu0 %1007 }
 0x2d5   : > { %v1067_v21 = vrot.slane %v1008_v58, %v2154_v26 }
 0x2d6   : > { %v990_v33 = vpop.permute.xlu1 %989 }
 0x2d7   : > { %v1040_v23 = vrot.slane %v990_v33, %v2154_v26 }
 0x2d8   : > { %v1014_v28 = vpop.permute.xlu0 %1013 }
 0x2da   : > { %v993_v53 = vpop.permute.xlu1 %992 }
 0x2db   : > { %v1045_v22 = vrot.slane %v993_v53, %v2151_v25  ;;  %v1041_v53 = vsel %vm796_vm3, %v1040_v23, %v1036_v0 }
 0x2dc   : > { %v1020_v34 = vpop.permute.xlu0 %1019 }
 0x2de   : > { %v996_v57 = vpop.permute.xlu1 %995 }
 0x2df   : > { %v1049_v18 = vrot.slane %v996_v57, %v2154_v26 }
 0x2e0   : > { %v1026_v51 = vpop.permute.xlu0 %1025 }
 0x2e1   : > { %v1050_v57 = vsel %vm796_vm3, %v1049_v18, %v1045_v22  ;;  %v1094_v58 = vrot.slane %v1026_v51, %v2154_v26 }
 0x2e2   : > { %v999_v42 = vpop.permute.xlu1 %998  ;;  %v1105_v52 = vsel %vm861_vm4, %v1050_v57, %v1041_v53 }
 0x2e3   : > { %v1054_v32 = vrot.slane %v999_v42, %v2151_v25 }
 0x2e4   : > { %v1032_v18 = vpop.permute.xlu0 %1031 }
 0x2e6   : > { %v1002_v62 = vpop.permute.xlu1 %1001 }
 0x2e7   : > { %v1058_v60 = vrot.slane %v1002_v62, %v2154_v26  ;;  %v1076_v62 = vrot.slane %v1014_v28, %v2154_v26 }
 0x2e9   : > { %v1059_v33 = vsel %vm796_vm3, %v1058_v60, %v1054_v32 }
 0x2ea   : > { %v1005_v55 = vpop.permute.xlu1 %1004  ;;  %v1106_v28 = vsel %vm863_vm5, %v1059_v33, %v1105_v52 }
 0x2eb   : > { %v1063_v45 = vrot.slane %v1005_v55, %v2151_v25  ;;  %v1085_v55 = vrot.slane %v1020_v34, %v2154_v26 }
 0x2ed   : > { %v1068_v42 = vsel %vm796_vm3, %v1067_v21, %v1063_v45  ;;  %v1103_v21 = vrot.slane %v1032_v18, %v2154_v26 }
 0x2ee   : > { %v1011_v17 = vpop.permute.xlu1 %1010  ;;  %v1107_v22 = vsel %vm865_vm6, %v1068_v42, %v1106_v28  ;;  %v2601_v28 = vsub.s32 5, %v2047_v30 }
 0x2ef   : > { %v1072_v20 = vrot.slane %v1011_v17, %v2151_v25 }
 0x2f2   : > { %v1017_v35 = vpop.permute.xlu1 %1016 }
 0x2f3   : > { %v1081_v54 = vrot.slane %v1017_v35, %v2151_v25  ;;  %v1077_v35 = vsel %vm796_vm3, %v1076_v62, %v1072_v20 }
 0x2f5   : > { %v1086_v60 = vsel %vm796_vm3, %v1085_v55, %v1081_v54 }
 0x2f6   : > { %v1023_v29 = vpop.permute.xlu1 %1022 }
 0x2f7   : > { %v1090_v17 = vrot.slane %v1023_v29, %v2151_v25  ;;  %v1108_v29 = vsel %vm867_vm7, %v1077_v35, %v1107_v22  ;;  %v2602_v22 = vsub.s32 6, %v2047_v30 }
 0x2f8   : > { %v1109_v23 = vsel %vm869_vm8, %v1086_v60, %v1108_v29 }
 0x2f9   : > { %v1095_v0 = vsel %vm796_vm3, %v1094_v58, %v1090_v17 }
 0x2fa   : > { %v1029_v34 = vpop.permute.xlu1 %1028  ;;  %v1110_v20 = vsel %vm871_vm9, %v1095_v0, %v1109_v23 }
 0x2fb   : > { %v1099_v51 = vrot.slane %v1029_v34, %v2151_v25  ;;  %v1376_v34 = vld [vmem:[%s2589_s9 + $0x30] sm:$0xff] }
 0x2fd   : > { %v1104_v45 = vsel %vm796_vm3, %v1103_v21, %v1099_v51  ;;  %v1375_v21 = vld [vmem:[%s2589_s9 + $0x28] sm:$0xff] }
 0x2fe   : > { %v1111_v32 = vsel %vm873_vm10, %v1104_v45, %v1110_v20 }
 0x2ff   : > { %v1113_v54 = vsel %vm876_vm11, %v1111_v32, 0.0 }
 0x300   : > { %1114 = vadd.xlane.f32.xlu1 %v1113_v54 }
 0x389   : > { %v1115_v57 = vpop.xlane.xlu1 %1114 }
 0x38a   : > { %1822 = vrcp.f32 %v1115_v57 }
 0x397   : > { %v1823_v62 = vpop.eup %1822 }
 0x398   : > { %v1137_v33 = vrot.slane %v1823_v62, %v899_v59  ;;  %v1121_v53 = vrot.slane %v1823_v62, %v2054_v38  ;;  %v1149_v17 = vrot.slane %v1823_v62, %v911_v46  ;;  %v1125_v18 = vrot.slane %v1823_v62, %v887_v56 }
 0x399   : > { %v1141_v60 = vrot.slane %v1823_v62, %v2601_v28  ;;  %v1145_v0 = vrot.slane %v1823_v62, %v2602_v22 }
 0x39a   : > { %v1167_v55 = vmul.f32 %v2283_v36, %v1137_v33  ;;  %v1158_v42 = vmul.f32 %v2268_v61, %v1121_v53  ;;  %v1172_v58 = vmul.f32 %v1821_v40, %v1149_v17  ;;  %v1159_v52 = vmul.f32 %v2273_v63, %v1121_v53 }
 0x39b   : > { %v1160_v59 = vmul.f32 %v2279_v19, %v1125_v18  ;;  %v1161_v38 = vmul.f32 %v2286_v31, %v1125_v18  ;;  %v2599_v61 = vsub.s32 2, %v2047_v30  ;;  %v2600_v63 = vsub.s32 3, %v2047_v30  ;;  %v1380_v30 = vld [vmem:[%s2589_s9 + $0x50] sm:$0xff] }
 0x39c   : > { %1221 = vperm.xlu1 %1757, %v1167_v55   ;;  %1176 = vperm.xlu0 %1756, %v1158_v42   ;;  %v1166_v31 = vmul.f32 %v2310_v50, %v1137_v33  ;;  %v1173_v50 = vmul.f32 %v2304_v43, %v1149_v17  ;;  %v1342_v43 = vld [vmem:[%s413_s25] sm:$0xff] }
 0x39d   : > { %v1129_v36 = vrot.slane %v1823_v62, %v2599_v61  ;;  %v1133_v35 = vrot.slane %v1823_v62, %v2600_v63  ;;  %1343 = vst.msk [vmem:[#allocation4] sm:$0xff] %vm460_vm2, %v1342_v43 }
 0x39f   : > { %v1162_v46 = vmul.f32 %v2293_v27, %v1129_v36  ;;  %v1163_v40 = vmul.f32 %v2300_v37, %v1129_v36  ;;  %v1164_v56 = vmul.f32 %v2306_v47, %v1133_v35  ;;  %v1165_v19 = vmul.f32 %v2276_v44, %v1133_v35 }
 0x3a0   : > { %1246 = vperm.xlu1 %1757, %v1172_v58   ;;  %1181 = vperm.xlu0 %1756, %v1159_v52   ;;  %v1168_v27 = vmul.f32 %v2313_v48, %v1141_v60  ;;  %v1169_v37 = vmul.f32 %v2290_v39, %v1141_v60  ;;  %v1170_v47 = vmul.f32 %v2316_v49, %v1145_v0  ;;  %v1381_v48 = vld [vmem:[%s2589_s9 + $0x58] sm:$0xff]  ;;  %v2603_v39 = vmov 0.0  }
 0x3a1   : > { %v1171_v44 = vmul.f32 %v2297_v41, %v1145_v0  ;;  %1715 = vmatpush3.msra.mxu1 %v1381_v48  ;;  %v1379_v41 = vld [vmem:[%s2589_s9 + $0x48] sm:$0xff]  ;;  %v1377_v49 = vld [vmem:[%s2589_s9 + $0x38] sm:$0xff] }
 0x3a2   : > { %1716 = vmatprep.subr.mxu1 %v2603_v39 }
 0x3a3   : > { %1717 = vmatpush3.msra.mxu1 %v1380_v30 }
 0x3a4   : > { %1186 = vperm.xlu0 %1756, %v1160_v59   ;;  %1718 = vmatprep.subr.mxu1 %v2603_v39 }
 0x3a5   : > { %1719 = vmatpush3.msra.mxu1 %v1379_v41 }
 0x3a6   : > { %1720 = vmatprep.subr.mxu1 %v2603_v39 }
 0x3a8   : > { %1191 = vperm.xlu0 %1756, %v1161_v38  }
 0x3ac   : > { %1196 = vperm.xlu0 %1756, %v1162_v46  }
 0x3b0   : > { %1201 = vperm.xlu0 %1756, %v1163_v40  }
 0x3b4   : > { %1206 = vperm.xlu0 %1756, %v1164_v56  }
 0x3b8   : > { %1211 = vperm.xlu0 %1756, %v1165_v19  }
 0x3bc   : > { %1216 = vperm.xlu0 %1756, %v1166_v31  }
 0x3c0   : > { %1226 = vperm.xlu0 %1756, %v1168_v27  }
 0x3c4   : > { %1231 = vperm.xlu0 %1756, %v1169_v37  }
 0x3c8   : > { %1236 = vperm.xlu0 %1756, %v1170_v47  }
 0x3cc   : > { %1241 = vperm.xlu0 %1756, %v1171_v44  }
 0x3d0   : > { %1251 = vperm.xlu0 %1756, %v1173_v50  }
 0x3d4   : > { %1364 = vrot.lane.b32.xlu0 %v2041_v24, %s1844_s28  ;;  %v1378_v24 = vld [vmem:[%s2589_s9 + $0x40] sm:$0xff] }
 0x3d5   : > { %1721 = vmatpush3.msra.mxu1 %v1378_v24 }
 0x3d6   : > { %1722 = vmatprep.subr.mxu1 %v2603_v39 }
 0x3d7   : > { %1723 = vmatpush3.msra.mxu1 %v1377_v49 }
 0x3d8   : > { %1724 = vmatprep.subr.mxu1 %v2603_v39 }
 0x3d9   : > { %1725 = vmatpush3.msra.mxu1 %v1376_v34 }
 0x3da   : > { %1726 = vmatprep.subr.mxu1 %v2603_v39 }
 0x3db   : > { %1727 = vmatpush3.msra.mxu1 %v1375_v21 }
 0x3dc   : > { %1728 = vmatprep.subr.mxu1 %v2603_v39 }
 0x417   : > { %v2417_v29 = vpop.permute.xlu0 %1176  ;;  %v2443_v58 = vpop.permute.xlu1 %1221 }
 0x418   : > { %v1254_v57 = vmul.f32 %v2417_v29, %v1926_v1  ;;  %v1263_v40 = vmul.f32 %v2443_v58, %v1971_v10  ;;  %v1545_v22 = vrot.slane %v2443_v58, %v2154_v26  ;;  %v1505_v0 = vrot.slane %v2417_v29, %v2151_v25 }
 0x41a   : > { %v1270_v42 = vsel %vm460_vm2, %v1254_v57, 0.0  ;;  %v1307_v60 = vsel %vm460_vm2, %v1263_v40, 0.0 }
 0x41b   : > { %v2419_v51 = vpop.permute.xlu0 %1181  ;;  %v2462_v63 = vpop.permute.xlu1 %1246 }
 0x41c   : > { %v1255_v54 = vmul.f32 %v2419_v51, %v1931_v2  ;;  %v1509_v30 = vrot.slane %v2419_v51, %v2154_v26  ;;  %v1568_v43 = vrot.slane %v2462_v63, %v2151_v25 }
 0x41e   : > { %v1271_v53 = vsel %vm460_vm2, %v1255_v54, 0.0 }
 0x41f   : > { %v2421_v23 = vpop.permute.xlu0 %1186  ;;  %v1272_v2 = vadd.f32 %v1271_v53, %v1270_v42 }
 0x420   : > { %v1256_v55 = vmul.f32 %v2421_v23, %v1936_v3  ;;  %v1514_v34 = vrot.slane %v2421_v23, %v2151_v25 }
 0x421   : > { %v1273_v61 = vrot.slane %v1272_v2, 4 }
 0x422   : > { %v1279_v18 = vsel %vm460_vm2, %v1256_v55, 0.0 }
 0x423   : > { %v2423_v45 = vpop.permute.xlu0 %1191  ;;  %v1274_v28 = vadd.f32 %v1273_v61, %v1272_v2 }
 0x424   : > { %v1257_v33 = vmul.f32 %v2423_v45, %v1941_v4 }
 0x425   : > { %v1275_v48 = vrot.slane %v1274_v28, 2 }
 0x426   : > { %v1280_v52 = vsel %vm460_vm2, %v1257_v33, 0.0 }
 0x427   : > { %v2425_v20 = vpop.permute.xlu0 %1196  ;;  %v1281_v59 = vadd.f32 %v1280_v52, %v1279_v18  ;;  %v2492_v53 = vadd.f32 %v1275_v48, %v1274_v28 }
 0x428   : > { %v1258_v4 = vmul.f32 %v2425_v20, %v1946_v5 }
 0x429   : > { %v1282_v35 = vrot.slane %v1281_v59, 4 }
 0x42a   : > { %v1288_v5 = vsel %vm460_vm2, %v1258_v4, 0.0 }
 0x42b   : > { %v2427_v32 = vpop.permute.xlu0 %1201  ;;  %v1283_v47 = vadd.f32 %v1282_v35, %v1281_v59 }
 0x42c   : > { %v1259_v1 = vmul.f32 %v2427_v32, %v1951_v6  ;;  %v1527_v24 = vrot.slane %v2427_v32, %v2154_v26  ;;  %v1510_v32 = vsel %vm796_vm3, %v1509_v30, %v1505_v0 }
 0x42e   : > { %v1289_v36 = vsel %vm460_vm2, %v1259_v1, 0.0 }
 0x42f   : > { %v2433_v62 = vpop.permute.xlu0 %1206  ;;  %v1290_v56 = vadd.f32 %v1289_v36, %v1288_v5 }
 0x430   : > { %v1260_v46 = vmul.f32 %v2433_v62, %v1956_v7 }
 0x431   : > { %v1291_v44 = vrot.slane %v1290_v56, 4 }
 0x432   : > { %v1297_v7 = vsel %vm460_vm2, %v1260_v46, 0.0 }
 0x433   : > { %v2441_v17 = vpop.permute.xlu0 %1211  ;;  %v1292_v54 = vadd.f32 %v1291_v44, %v1290_v56 }
 0x434   : > { %v1261_v3 = vmul.f32 %v2441_v17, %v1961_v8  ;;  %v1536_v23 = vrot.slane %v2441_v17, %v2154_v26 }
 0x435   : > { %v1293_v61 = vrot.slane %v1292_v54, 2 }
 0x436   : > { %v1298_v8 = vsel %vm460_vm2, %v1261_v3, 0.0 }
 0x437   : > { %v2453_v38 = vpop.permute.xlu0 %1216  ;;  %v1299_v10 = vadd.f32 %v1298_v8, %v1297_v7 }
 0x438   : > { %v1262_v6 = vmul.f32 %v2453_v38, %v1966_v9  ;;  %v1268_v9 = vmul.f32 %v2462_v63, %v1998_v15  ;;  %v1518_v15 = vrot.slane %v2423_v45, %v2154_v26  ;;  %v1284_v45 = vrot.slane %v1283_v47, 2 }
 0x439   : > { %v1300_v49 = vrot.slane %v1299_v10, 4  ;;  %v1541_v2 = vrot.slane %v2453_v38, %v2151_v25 }
 0x43a   : > { %v1306_v19 = vsel %vm460_vm2, %v1262_v6, 0.0  ;;  %v1519_v55 = vsel %vm796_vm3, %v1518_v15, %v1514_v34  ;;  %v1285_v3 = vadd.f32 %v1284_v45, %v1283_v47 }
 0x43b   : > { %v1227_v31 = vpop.permute.xlu0 %1226  ;;  %v1308_v27 = vadd.f32 %v1307_v60, %v1306_v19  ;;  %v1301_v58 = vadd.f32 %v1300_v49, %v1299_v10  ;;  %v1574_v59 = vsel %vm861_vm4, %v1519_v55, %v1510_v32  ;;  %v1546_v5 = vsel %vm796_vm3, %v1545_v22, %v1541_v2  ;;  %v1371_v2 = vld [vmem:[%s2589_s9 + $0x8] sm:$0xff] }
 0x43c   : > { %v1264_v37 = vmul.f32 %v1227_v31, %v1976_v11  ;;  %v1333_v11 = vsel %vm460_vm2, %v1268_v9, 0.0  ;;  %v1550_v6 = vrot.slane %v1227_v31, %v2151_v25  ;;  %v1294_v9 = vadd.f32 %v1293_v61, %v1292_v54 }
 0x43d   : > { %v1309_v21 = vrot.slane %v1308_v27, 4  ;;  %v1302_v63 = vrot.slane %v1301_v58, 2 }
 0x43e   : > { %v1315_v29 = vsel %vm460_vm2, %v1264_v37, 0.0  ;;  %v1286_v37 = vrot.slane %v1285_v3, 1 }
 0x43f   : > { %v1232_v50 = vpop.permute.xlu0 %1231  ;;  %v1310_v1 = vadd.f32 %v1309_v21, %v1308_v27  ;;  %v1303_v22 = vadd.f32 %v1302_v63, %v1301_v58 }
 0x440   : > { %v1265_v41 = vmul.f32 %v1232_v50, %v1981_v12  ;;  %v1523_v12 = vrot.slane %v2425_v20, %v2151_v25  ;;  %v1532_v20 = vrot.slane %v2433_v62, %v2151_v25  ;;  %v1554_v18 = vrot.slane %v1232_v50, %v2154_v26 }
 0x441   : > { %v1311_v8 = vrot.slane %v1310_v1, 2  ;;  %v1304_v34 = vrot.slane %v1303_v22, 1  ;;  %v1287_v45 = vadd.f32 %v1286_v37, %v1285_v3 }
 0x442   : > { %v1316_v51 = vsel %vm460_vm2, %v1265_v41, 0.0  ;;  %v1528_v42 = vsel %vm796_vm3, %v1527_v24, %v1523_v12  ;;  %v1537_v46 = vsel %vm796_vm3, %v1536_v23, %v1532_v20  ;;  %v1555_v35 = vsel %vm796_vm3, %v1554_v18, %v1550_v6 }
 0x443   : > { %v1317_v57 = vadd.f32 %v1316_v51, %v1315_v29  ;;  %v1237_v33 = vpop.permute.xlu0 %1236  ;;  %v1575_v62 = vsel %vm863_vm5, %v1528_v42, %v1574_v59  ;;  %v1312_v44 = vadd.f32 %v1311_v8, %v1310_v1  ;;  %v1305_v23 = vadd.f32 %v1304_v34, %v1303_v22 }
 0x444   : > { %v1266_v4 = vmul.f32 %v1237_v33, %v1988_v13  ;;  %v1559_v13 = vrot.slane %v1237_v33, %v2151_v25  ;;  %v1576_v31 = vsel %vm865_vm6, %v1537_v46, %v1575_v62  ;;  %v1372_v33 = vld [vmem:[%s2589_s9 + $0x10] sm:$0xff] }
 0x445   : > { %v1318_v52 = vrot.slane %v1317_v57, 4  ;;  %v1577_v10 = vsel %vm867_vm7, %v1546_v5, %v1576_v31  ;;  %v1313_v51 = vrot.slane %v1312_v44, 1  ;;  %v1680_v5 = vld [vmem:[%s2590_s10] ss:$0 sm:$0xff] }
 0x446   : > { %v1324_v56 = vsel %vm460_vm2, %v1266_v4, 0.0  ;;  %v1578_v0 = vsel %vm869_vm8, %v1555_v35, %v1577_v10 }
 0x447   : > { %v1319_v17 = vadd.f32 %v1318_v52, %v1317_v57  ;;  %v1242_v36 = vpop.permute.xlu0 %1241  ;;  %v1314_v52 = vadd.f32 %v1313_v51, %v1312_v44 }
 0x448   : > { %v1267_v38 = vmul.f32 %v1242_v36, %v1993_v14  ;;  %v1563_v40 = vrot.slane %v1242_v36, %v2154_v26  ;;  %v448_v36 = vld [vmem:[#allocation3] sm:$0xff] }
 0x449   : > { %v1320_v28 = vrot.slane %v1319_v17, 2  ;;  %1471 = vrot.lane.b32.xlu0 %v448_v36, %s1845_s18 }
 0x44a   : > { %v1325_v19 = vsel %vm460_vm2, %v1267_v38, 0.0  ;;  %v1564_v7 = vsel %vm796_vm3, %v1563_v40, %v1559_v13 }
 0x44b   : > { %v1326_v14 = vadd.f32 %v1325_v19, %v1324_v56  ;;  %v1252_v60 = vpop.permute.xlu0 %1251  ;;  %v1579_v50 = vsel %vm871_vm9, %v1564_v7, %v1578_v0  ;;  %v1321_v15 = vadd.f32 %v1320_v28, %v1319_v17 }
 0x44c   : > { %v1269_v25 = vmul.f32 %v1252_v60, %v2011_v16  ;;  %v1572_v27 = vrot.slane %v1252_v60, %v2154_v26  ;;  %v1295_v16 = vrot.slane %v1294_v9, 1  ;;  %v1277_v26 = vrot.slane %v2492_v53, 1 }
 0x44d   : > { %v1327_v47 = vrot.slane %v1326_v14, 4  ;;  %v1322_v12 = vrot.slane %v1321_v15, 1 }
 0x44e   : > { %v1334_v48 = vsel %vm460_vm2, %v1269_v25, 0.0  ;;  %v1573_v30 = vsel %vm796_vm3, %v1572_v27, %v1568_v43  ;;  %v1374_v43 = vld [vmem:[%s2589_s9 + $0x20] sm:$0xff]  ;;  %v1296_v32 = vadd.f32 %v1295_v16, %v1294_v9  ;;  %v1278_v55 = vadd.f32 %v1277_v26, %v2492_v53 }
 0x44f   : > { %v1328_v41 = vadd.f32 %v1327_v47, %v1326_v14  ;;  %v1335_v24 = vadd.f32 %v1334_v48, %v1333_v11  ;;  %v1580_v49 = vsel %vm873_vm10, %v1573_v30, %v1579_v50  ;;  %1729 = vmatpush3.msra.mxu1 %v1374_v43  ;;  %v1373_v11 = vld [vmem:[%s2589_s9 + $0x18] sm:$0xff]  ;;  %v1323_v20 = vadd.f32 %v1322_v12, %v1321_v15  ;;  %v1370_v53 = vld [vmem:[%s2589_s9] sm:$0xff]  ;;  %v1365_v62 = vpop.permute.xlu0 %1364 }
 0x450   : > { %1582 = vst.msk [vmem:[%s421_s15] sm:$0xff] %vm876_vm11, %v1580_v49  ;;  %1730 = vmatprep.subr.mxu1 %v2603_v39  ;;  %v1352_v18 = vsel %vm861_vm4, %v1287_v45, %v1278_v55 }
 0x451   : > { %v1329_v21 = vrot.slane %v1328_v41, 2  ;;  %v1336_v29 = vrot.slane %v1335_v24, 4  ;;  %1731 = vmatpush3.msra.mxu1 %v1373_v11  ;;  %v1353_v3 = vsel %vm863_vm5, %v1296_v32, %v1352_v18 }
 0x452   : > { %1732 = vmatprep.subr.mxu1 %v2603_v39  ;;  %v1354_v61 = vsel %vm865_vm6, %v1305_v23, %v1353_v3 }
 0x453   : > { %v1330_v54 = vadd.f32 %v1329_v21, %v1328_v41  ;;  %v1337_v57 = vadd.f32 %v1336_v29, %v1335_v24  ;;  %1733 = vmatpush3.msra.mxu1 %v1372_v33  ;;  %v1355_v17 = vsel %vm867_vm7, %v1314_v52, %v1354_v61 }
 0x454   : > { %1734 = vmatprep.subr.mxu1 %v2603_v39  ;;  %v1356_v6 = vsel %vm869_vm8, %v1323_v20, %v1355_v17 }
 0x455   : > { %v1338_v42 = vrot.slane %v1337_v57, 2  ;;  %v1331_v58 = vrot.slane %v1330_v54, 1  ;;  %1735 = vmatpush3.msra.mxu1 %v1371_v2 }
 0x456   : > { %1736 = vmatprep.subr.mxu1 %v2603_v39 }
 0x457   : > { %v1339_v1 = vadd.f32 %v1338_v42, %v1337_v57  ;;  %v1332_v4 = vadd.f32 %v1331_v58, %v1330_v54  ;;  %1737 = vmatpush3.msra.mxu1 %v1370_v53 }
 0x459   : > { %v1340_v59 = vrot.slane %v1339_v1, 1  ;;  %v1357_v38 = vsel %vm871_vm9, %v1332_v4, %v1356_v6 }
 0x45b   : > { %v1341_v46 = vadd.f32 %v1340_v59, %v1339_v1 }
 0x45d   : > { %v1358_v40 = vsel %vm873_vm10, %v1341_v46, %v1357_v38 }
 0x45e   : > { %1359 = vrot.lane.b32.xlu1 %v1358_v40, %s1845_s18 }
 0x4bb   : > { %v1472_v9 = vpop.permute.xlu0 %1471 }
 0x4d0   : > { %v1360_v39 = vpop.permute.xlu1 %1359 }
 0x4d1   : > { %1363 = vst.msk [vmem:[#allocation4] sm:$0xff] %vm1362_vm12, %v1360_v39 }
 0x4d2   : > { %1368 = vst.msk [vmem:[#allocation4] sm:$0xff] %vm1367_vm13, %v1365_v62 }
 0x4d9   : > { %v1369_v63 = vld [vmem:[#allocation4] sm:$0xff] }
 0x4da   : > { %1739 = vmatmul.mubr.msk.f32.vlgmr.msra.gmra.mxu1 %vm1389_vm14, %v1369_v63 }
 0x59a   : > { %v1459_v13 = vpop.f32.mrf.mxu1 }
 0x59b   : > { %v1460_v8 = vadd.f32 %v1680_v5, %v1459_v13 }
 0x59c   : > { %v1740_v35 = vpop.f32.mrf.mxu1 }
 0x59d   : > { %1824 = vtanh.f32 %v1460_v8  ;;  %v1682_v19 = vmul.f32 -1.442695, %v1460_v8 }
 0x59f   : > { %1826 = vpow2.f32 %v1682_v19 }
 0x5aa   : > { %v1825_v56 = vpop.eup %1824 }
 0x5ab   : > { %1476 = vrot.lane.b32.xlu1 %v1825_v56, %s1844_s28 }
 0x5ac   : > { %v1827_v31 = vpop.eup %1826 }
 0x5ad   : > { %v1466_v28 = vadd.f32 1.0, %v1827_v31 }
 0x5af   : > { %1828 = vrcp.f32 %v1466_v28 }
 0x5bc   : > { %v1829_v14 = vpop.eup %1828 }
 0x5bd   : > { %v1474_v10 = vmul.f32 %v1829_v14, %v1472_v9 }
 0x61d   : > { %v1477_v7 = vpop.permute.xlu1 %1476 }
 0x61e   : > { %v1479_v60 = vmul.f32 %v1829_v14, %v1477_v7 }
 0x620   : > { %1481 = vrot.lane.b32.xlu1 %v1479_v60, %s1845_s18 }
 0x692   : > { %v1482_v25 = vpop.permute.xlu1 %1481 }
 0x693   : > { %v1484_v27 = vadd.f32 %v1482_v25, %v1474_v10 }
 0x695   : > { %1830 = vtanh.f32 %v1484_v27 }
 0x6a2   : > { %v1831_v37 = vpop.eup %1830 }
 0x6a3   : > { %1487 = vrot.lane.b32.xlu0 %v1831_v37, %s1844_s28 }
 0x6a7   : > { %1497 = vrot.lane.b32.xlu0 %v1484_v27, %s1846_s26 }
 0x715   : > { %v1488_v22 = vpop.permute.xlu0 %1487 }
 0x716   : > { %v1490_v0 = vmul.f32 %v1829_v14, %v1488_v22 }
 0x718   : > { %1492 = vrot.lane.b32.xlu1 %v1490_v0, %s1845_s18 }
 0x719   : > { %v1498_v47 = vpop.permute.xlu0 %1497 }
 0x71a   : > { %1500 = vst.msk [vmem:[#allocation3] sm:$0xff] %vm460_vm2, %v1498_v47 }
 0x78a   : > { %v1493_v44 = vpop.permute.xlu1 %1492 }
 0x78b   : > { %1495 = vst.msk [vmem:[#allocation2] sm:$0xff] %vm460_vm2, %v1493_v44  ;;  %1501 = vst.msk [vmem:[%s417_s27] sm:$0xff] %vm460_vm2, %v1493_v44 }
 0x78c PF: > { %s25_s23 = sadd.s32 1, %s1838_s23  }
 0x78d   : > { %p22_p5 = scmp.ge.s32.totalorder %s25_s23, 9  }
 0x78f   :  { %24 = sbr.rel (!%p22_p5) target bundleno = 3 (0x3), region = 110 }

</bundles_post_ra>
